<compile_context>
chip_gen: v7x
topology: tpu7x:2x2x1
jax: 0.10.0
libtpu: 0.0.40
codegen_flags: <defaults>
</compile_context>

<pallas_src>
import functools

import jax
import jax.numpy as jnp
from jax.experimental import pallas as pl
from jax.experimental.pallas import tpu as pltpu


def _linear(v, w, b):
    # v: (Nb, Cin); w: (Cin, Cout); b: (1, Cout)
    cin, cout = w.shape
    if cin >= 128 and cout >= 8:
        # Production sizes: hit the MXU.
        return jnp.dot(v, w, preferred_element_type=jnp.float32) + b
    # Toy sizes: tiny broadcast-multiply + sublane reduce on the VPU/XLU.
    return jnp.sum(v[:, :, None] * w[None, :, :], axis=1) + b


def _mlp_sigmoid(v, w1, b1, w2, b2):
    h = jnp.maximum(_linear(v, w1, b1), 0.0)        # Linear + ReLU
    return jax.nn.sigmoid(_linear(h, w2, b2))       # Linear + Sigmoid


def cbam_kernel(x_ref, mask_ref,
                w1m_ref, b1m_ref, w2m_ref, b2m_ref,
                w1a_ref, b1a_ref, w2a_ref, b2a_ref,
                convw_ref, convb_ref,
                o_ref, *, H, W):
    Nb, C, HW = x_ref.shape
    x = x_ref[...].astype(jnp.float32)               # (Nb, C, HW) lane-dense

    # ---------------- Channel attention ----------------
    max_in = jnp.max(x, axis=2)                      # (Nb, C)  AdaptiveMaxPool2d(1)
    avg_in = jnp.sum(x, axis=2) * (1.0 / HW)         # (Nb, C)  AdaptiveAvgPool2d(1)

    max_w = _mlp_sigmoid(max_in, w1m_ref[...], b1m_ref[...], w2m_ref[...], b2m_ref[...])
    avg_w = _mlp_sigmoid(avg_in, w1a_ref[...], b1a_ref[...], w2a_ref[...], b2a_ref[...])
    mc = jax.nn.sigmoid(max_w + avg_w)               # (Nb, C)  (matches PyTorch module)

    x_ca = mc[:, :, None] * x                        # (Nb, C, HW)

    # ---------------- Spatial attention ----------------
    maxc = jnp.max(x_ca, axis=1)                     # (Nb, HW)  max over channels
    avgc = jnp.sum(x_ca, axis=1) * (1.0 / C)         # (Nb, HW)  mean over channels

    # 7x7 conv with padding=3, done on the flattened HW axis:
    #   shifted[p] = feat[p + (dh*W + dw)]  (circular via roll), then masked to zero
    #   wherever row+dh / col+dw fall outside the image (mask precomputed host-side).
    accs = [jnp.zeros((Nb, HW), jnp.float32) for _ in range(4)]
    for kh in range(7):
        dh = kh - 3
        for kw in range(7):
            dw = kw - 3
            t = kh * 7 + kw
            d = dh * W + dw
            s = (-d) % HW
            if s:
                sm = pltpu.roll(maxc, shift=s, axis=1)
                sa = pltpu.roll(avgc, shift=s, axis=1)
            else:
                sm, sa = maxc, avgc
            w_max = convw_ref[t]                     # conv weight, input channel 0 (max map)
            w_avg = convw_ref[49 + t]                # conv weight, input channel 1 (avg map)
            m = mask_ref[pl.ds(t, 1), :]             # (1, HW) boundary mask for this tap
            accs[t % 4] = accs[t % 4] + (w_max * sm + w_avg * sa) * m

    conv = (accs[0] + accs[1]) + (accs[2] + accs[3]) + convb_ref[0]
    ms = jax.nn.sigmoid(conv)                        # (Nb, HW)

    o_ref[...] = (ms[:, None, :] * x_ca).astype(o_ref.dtype)


def cbam_pallas(x, params, *, batch_block=None, vmem_limit_bytes=40 * 1024 * 1024):
    N, C, H, W = x.shape
    HW = H * W
    Hd = params["w1m"].shape[1]
    dtype = x.dtype

    # ---- pick batch block: largest divisor of N whose double-buffered in+out slabs
    #      fit half the VMEM budget; keep >=2 grid steps so both v7x TCs get work.
    if batch_block is None:
        itemsize = jnp.dtype(dtype).itemsize
        per_batch = 2 * 2 * C * HW * itemsize        # input + output, double-buffered
        budget = vmem_limit_bytes // 2               # headroom for weights/masks/temps
        nb = max(1, min(N, budget // max(per_batch, 1)))
        while N % nb:
            nb -= 1
        if N >= 2 and N // nb < 2:                   # at least 2 steps for megacore/v7x
            nb = N // 2
            while N % nb:
                nb -= 1
        batch_block = max(1, nb)
    assert N % batch_block == 0
    grid = (N // batch_block,)

    xf = x.reshape(N, C, HW)                         # lane-dense layout for the kernel

    # Precompute the 49 boundary masks of the 7x7 'same' conv on the flattened HW axis.
    rows = jnp.arange(H)[:, None]
    cols = jnp.arange(W)[None, :]
    masks = []
    for kh in range(7):
        for kw in range(7):
            dh, dw = kh - 3, kw - 3
            m = (rows + dh >= 0) & (rows + dh < H) & (cols + dw >= 0) & (cols + dw < W)
            masks.append(m.reshape(HW))
    mask = jnp.stack(masks, axis=0).astype(jnp.float32)   # (49, HW)

    kernel = functools.partial(cbam_kernel, H=H, W=W)

    def full(shp):
        return pl.BlockSpec(shp, lambda n: (0,) * len(shp))

    smem_spec = pl.BlockSpec(memory_space=pltpu.MemorySpace.SMEM)

    out = pl.pallas_call(
        kernel,
        out_shape=jax.ShapeDtypeStruct((N, C, HW), dtype),
        grid=grid,
        in_specs=[
            pl.BlockSpec((batch_block, C, HW), lambda n: (n, 0, 0)),   # x (flattened)
            full((49, HW)),                                            # conv boundary masks
            full((C, Hd)), full((1, Hd)), full((Hd, C)), full((1, C)), # max-branch MLP
            full((C, Hd)), full((1, Hd)), full((Hd, C)), full((1, C)), # avg-branch MLP
            smem_spec,   # conv weight, flattened (2*7*7,)
            smem_spec,   # conv bias, (1,)
        ],
        out_specs=pl.BlockSpec((batch_block, C, HW), lambda n: (n, 0, 0)),
        compiler_params=pltpu.CompilerParams(
            dimension_semantics=("parallel",),
            vmem_limit_bytes=vmem_limit_bytes,
        ),
    )(
        xf, mask,
        params["w1m"], params["b1m"], params["w2m"], params["b2m"],
        params["w1a"], params["b1a"], params["w2a"], params["b2a"],
        params["convw"], params["convb"],
    )
    return out.reshape(N, C, H, W)


def cbam_reference(x, params):
    """Pure-JAX reference (mirrors the PyTorch forward)."""
    def mlp(v, w1, b1, w2, b2):
        h = jnp.maximum(v @ w1 + b1, 0.0)
        return jax.nn.sigmoid(h @ w2 + b2)

    max_in = jnp.max(x, axis=(2, 3))
    avg_in = jnp.mean(x, axis=(2, 3))
    mc = jax.nn.sigmoid(
        mlp(max_in, params["w1m"], params["b1m"], params["w2m"], params["b2m"])
        + mlp(avg_in, params["w1a"], params["b1a"], params["w2a"], params["b2a"])
    )
    x_ca = mc[:, :, None, None] * x

    maxc = jnp.max(x_ca, axis=1, keepdims=True)
    avgc = jnp.mean(x_ca, axis=1, keepdims=True)
    xcat = jnp.concatenate([maxc, avgc], axis=1)
    w = params["convw"].reshape(1, 2, 7, 7)
    conv = jax.lax.conv_general_dilated(
        xcat, w, (1, 1), [(3, 3), (3, 3)],
        dimension_numbers=("NCHW", "OIHW", "NCHW"),
    ) + params["convb"][0]
    return jax.nn.sigmoid(conv) * x_ca


if __name__ == "__main__":
    key = jax.random.PRNGKey(0)
    N, C, H, W = 2, 4, 16, 16
    Hd = int(C * 0.5)

    keys = jax.random.split(key, 11)
    x = jax.random.normal(keys[0], (N, C, H, W), jnp.float32)
    params = {
        "w1m": jax.random.normal(keys[1], (C, Hd), jnp.float32) * 0.2,
        "b1m": jax.random.normal(keys[2], (1, Hd), jnp.float32) * 0.1,
        "w2m": jax.random.normal(keys[3], (Hd, C), jnp.float32) * 0.2,
        "b2m": jax.random.normal(keys[4], (1, C), jnp.float32) * 0.1,
        "w1a": jax.random.normal(keys[5], (C, Hd), jnp.float32) * 0.2,
        "b1a": jax.random.normal(keys[6], (1, Hd), jnp.float32) * 0.1,
        "w2a": jax.random.normal(keys[7], (Hd, C), jnp.float32) * 0.2,
        "b2a": jax.random.normal(keys[8], (1, C), jnp.float32) * 0.1,
        "convw": jax.random.normal(keys[9], (2 * 7 * 7,), jnp.float32) * 0.1,
        "convb": jax.random.normal(keys[10], (1,), jnp.float32) * 0.1,
    }

    out = cbam_pallas(x, params)
    jax.block_until_ready(out)

    ref = cbam_reference(x, params)
    assert jnp.allclose(out, ref, atol=2e-3, rtol=2e-3), "Pallas CBAM mismatch vs reference"

    print("KERNEL_OK")
</pallas_src>

<mosaic_0001>
module attributes {stable_mosaic.version = 11 : i64} {
  func.func @cbam_kernel(%arg0: i32, %arg1: memref<1x4x256xf32, #tpu.memory_space<vmem>>, %arg2: memref<49x256xf32, #tpu.memory_space<vmem>>, %arg3: memref<4x2xf32, #tpu.memory_space<vmem>>, %arg4: memref<1x2xf32, #tpu.memory_space<vmem>>, %arg5: memref<2x4xf32, #tpu.memory_space<vmem>>, %arg6: memref<1x4xf32, #tpu.memory_space<vmem>>, %arg7: memref<4x2xf32, #tpu.memory_space<vmem>>, %arg8: memref<1x2xf32, #tpu.memory_space<vmem>>, %arg9: memref<2x4xf32, #tpu.memory_space<vmem>>, %arg10: memref<1x4xf32, #tpu.memory_space<vmem>>, %arg11: memref<98xf32, #tpu.memory_space<smem>>, %arg12: memref<1xf32, #tpu.memory_space<smem>>, %arg13: memref<1x4x256xf32, #tpu.memory_space<vmem>>) attributes {dimension_semantics = [#tpu.dimension_semantics<parallel>], iteration_bounds = array<i64: 2>, scalar_prefetch = 0 : i64, scratch_operands = 0 : i64, tpu.core_type = #tpu.core_type<tc>, window_params = [{transform_indices = @transform_0, window_bounds = array<i64: 1, 4, 256>}, {pipeline_mode = #tpu.pipeline_mode<synchronous>, transform_indices = @transform_1, window_bounds = array<i64: 49, 256>}, {pipeline_mode = #tpu.pipeline_mode<synchronous>, transform_indices = @transform_2, window_bounds = array<i64: 4, 2>}, {pipeline_mode = #tpu.pipeline_mode<synchronous>, transform_indices = @transform_3, window_bounds = array<i64: 1, 2>}, {pipeline_mode = #tpu.pipeline_mode<synchronous>, transform_indices = @transform_4, window_bounds = array<i64: 2, 4>}, {pipeline_mode = #tpu.pipeline_mode<synchronous>, transform_indices = @transform_5, window_bounds = array<i64: 1, 4>}, {pipeline_mode = #tpu.pipeline_mode<synchronous>, transform_indices = @transform_6, window_bounds = array<i64: 4, 2>}, {pipeline_mode = #tpu.pipeline_mode<synchronous>, transform_indices = @transform_7, window_bounds = array<i64: 1, 2>}, {pipeline_mode = #tpu.pipeline_mode<synchronous>, transform_indices = @transform_8, window_bounds = array<i64: 2, 4>}, {pipeline_mode = #tpu.pipeline_mode<synchronous>, transform_indices = @transform_9, window_bounds = array<i64: 1, 4>}, {transform_indices = @transform_10, window_bounds = array<i64: 98>}, {transform_indices = @transform_11, window_bounds = array<i64: 1>}, {transform_indices = @transform_12, window_bounds = array<i64: 1, 4, 256>}]} {
    %c0 = arith.constant 0 : index
    %c0_0 = arith.constant 0 : index
    %c0_1 = arith.constant 0 : index
    %0 = vector.load %arg1[%c0, %c0_0, %c0_1] : memref<1x4x256xf32, #tpu.memory_space<vmem>>, vector<1x4x256xf32>
    %cst = arith.constant dense<0xFF800000> : vector<1x4xf32>
    %1 = vector.multi_reduction <maximumf>, %0, %cst [2] : vector<1x4x256xf32> to vector<1x4xf32>
    %cst_2 = arith.constant dense<0.000000e+00> : vector<1x4xf32>
    %2 = vector.multi_reduction <add>, %0, %cst_2 [2] : vector<1x4x256xf32> to vector<1x4xf32>
    %cst_3 = arith.constant 3.906250e-03 : f32
    %3 = vector.broadcast %cst_3 : f32 to vector<1x4xf32>
    %4 = arith.mulf %2, %3 : vector<1x4xf32>
    %c0_4 = arith.constant 0 : index
    %c0_5 = arith.constant 0 : index
    %5 = vector.load %arg3[%c0_4, %c0_5] : memref<4x2xf32, #tpu.memory_space<vmem>>, vector<4x2xf32>
    %c0_6 = arith.constant 0 : index
    %c0_7 = arith.constant 0 : index
    %6 = vector.load %arg4[%c0_6, %c0_7] : memref<1x2xf32, #tpu.memory_space<vmem>>, vector<1x2xf32>
    %c0_8 = arith.constant 0 : index
    %c0_9 = arith.constant 0 : index
    %7 = vector.load %arg5[%c0_8, %c0_9] : memref<2x4xf32, #tpu.memory_space<vmem>>, vector<2x4xf32>
    %c0_10 = arith.constant 0 : index
    %c0_11 = arith.constant 0 : index
    %8 = vector.load %arg6[%c0_10, %c0_11] : memref<1x4xf32, #tpu.memory_space<vmem>>, vector<1x4xf32>
    %9 = vector.shape_cast %1 : vector<1x4xf32> to vector<1x4x1xf32>
    %10 = vector.shape_cast %5 : vector<4x2xf32> to vector<1x4x2xf32>
    %11 = vector.broadcast %9 : vector<1x4x1xf32> to vector<1x4x2xf32>
    %12 = arith.mulf %11, %10 : vector<1x4x2xf32>
    %cst_12 = arith.constant dense<0.000000e+00> : vector<1x2xf32>
    %13 = vector.multi_reduction <add>, %12, %cst_12 [1] : vector<1x4x2xf32> to vector<1x2xf32>
    %14 = arith.addf %13, %6 : vector<1x2xf32>
    %cst_13 = arith.constant 0.000000e+00 : f32
    %15 = vector.broadcast %cst_13 : f32 to vector<1x2xf32>
    %16 = arith.maximumf %14, %15 : vector<1x2xf32>
    %17 = vector.shape_cast %16 : vector<1x2xf32> to vector<1x2x1xf32>
    %18 = vector.shape_cast %7 : vector<2x4xf32> to vector<1x2x4xf32>
    %19 = vector.broadcast %17 : vector<1x2x1xf32> to vector<1x2x4xf32>
    %20 = arith.mulf %19, %18 : vector<1x2x4xf32>
    %cst_14 = arith.constant dense<0.000000e+00> : vector<1x4xf32>
    %21 = vector.multi_reduction <add>, %20, %cst_14 [1] : vector<1x2x4xf32> to vector<1x4xf32>
    %22 = arith.addf %21, %8 : vector<1x4xf32>
    %23 = arith.negf %22 : vector<1x4xf32>
    %24 = math.exp %23 : vector<1x4xf32>
    %cst_15 = arith.constant 1.000000e+00 : f32
    %25 = vector.broadcast %cst_15 : f32 to vector<1x4xf32>
    %26 = arith.addf %25, %24 : vector<1x4xf32>
    %27 = arith.divf %25, %26 : vector<1x4xf32>
    %c0_16 = arith.constant 0 : index
    %c0_17 = arith.constant 0 : index
    %28 = vector.load %arg7[%c0_16, %c0_17] : memref<4x2xf32, #tpu.memory_space<vmem>>, vector<4x2xf32>
    %c0_18 = arith.constant 0 : index
    %c0_19 = arith.constant 0 : index
    %29 = vector.load %arg8[%c0_18, %c0_19] : memref<1x2xf32, #tpu.memory_space<vmem>>, vector<1x2xf32>
    %c0_20 = arith.constant 0 : index
    %c0_21 = arith.constant 0 : index
    %30 = vector.load %arg9[%c0_20, %c0_21] : memref<2x4xf32, #tpu.memory_space<vmem>>, vector<2x4xf32>
    %c0_22 = arith.constant 0 : index
    %c0_23 = arith.constant 0 : index
    %31 = vector.load %arg10[%c0_22, %c0_23] : memref<1x4xf32, #tpu.memory_space<vmem>>, vector<1x4xf32>
    %32 = vector.shape_cast %4 : vector<1x4xf32> to vector<1x4x1xf32>
    %33 = vector.shape_cast %28 : vector<4x2xf32> to vector<1x4x2xf32>
    %34 = vector.broadcast %32 : vector<1x4x1xf32> to vector<1x4x2xf32>
    %35 = arith.mulf %34, %33 : vector<1x4x2xf32>
    %cst_24 = arith.constant dense<0.000000e+00> : vector<1x2xf32>
    %36 = vector.multi_reduction <add>, %35, %cst_24 [1] : vector<1x4x2xf32> to vector<1x2xf32>
    %37 = arith.addf %36, %29 : vector<1x2xf32>
    %cst_25 = arith.constant 0.000000e+00 : f32
    %38 = vector.broadcast %cst_25 : f32 to vector<1x2xf32>
    %39 = arith.maximumf %37, %38 : vector<1x2xf32>
    %40 = vector.shape_cast %39 : vector<1x2xf32> to vector<1x2x1xf32>
    %41 = vector.shape_cast %30 : vector<2x4xf32> to vector<1x2x4xf32>
    %42 = vector.broadcast %40 : vector<1x2x1xf32> to vector<1x2x4xf32>
    %43 = arith.mulf %42, %41 : vector<1x2x4xf32>
    %cst_26 = arith.constant dense<0.000000e+00> : vector<1x4xf32>
    %44 = vector.multi_reduction <add>, %43, %cst_26 [1] : vector<1x2x4xf32> to vector<1x4xf32>
    %45 = arith.addf %44, %31 : vector<1x4xf32>
    %46 = arith.negf %45 : vector<1x4xf32>
    %47 = math.exp %46 : vector<1x4xf32>
    %cst_27 = arith.constant 1.000000e+00 : f32
    %48 = vector.broadcast %cst_27 : f32 to vector<1x4xf32>
    %49 = arith.addf %48, %47 : vector<1x4xf32>
    %50 = arith.divf %48, %49 : vector<1x4xf32>
    %51 = arith.addf %27, %50 : vector<1x4xf32>
    %52 = arith.negf %51 : vector<1x4xf32>
    %53 = math.exp %52 : vector<1x4xf32>
    %cst_28 = arith.constant 1.000000e+00 : f32
    %54 = vector.broadcast %cst_28 : f32 to vector<1x4xf32>
    %55 = arith.addf %54, %53 : vector<1x4xf32>
    %56 = arith.divf %54, %55 : vector<1x4xf32>
    %57 = vector.shape_cast %56 : vector<1x4xf32> to vector<1x4x1xf32>
    %58 = vector.broadcast %57 : vector<1x4x1xf32> to vector<1x4x256xf32>
    %59 = arith.mulf %58, %0 : vector<1x4x256xf32>
    %cst_29 = arith.constant dense<0xFF800000> : vector<1x256xf32>
    %60 = vector.multi_reduction <maximumf>, %59, %cst_29 [1] : vector<1x4x256xf32> to vector<1x256xf32>
    %cst_30 = arith.constant dense<0.000000e+00> : vector<1x256xf32>
    %61 = vector.multi_reduction <add>, %59, %cst_30 [1] : vector<1x4x256xf32> to vector<1x256xf32>
    %cst_31 = arith.constant 2.500000e-01 : f32
    %62 = vector.broadcast %cst_31 : f32 to vector<1x256xf32>
    %63 = arith.mulf %61, %62 : vector<1x256xf32>
    %cst_32 = arith.constant 0.000000e+00 : f32
    %64 = vector.broadcast %cst_32 : f32 to vector<1x256xf32>
    %cst_33 = arith.constant 0.000000e+00 : f32
    %65 = vector.broadcast %cst_33 : f32 to vector<1x256xf32>
    %cst_34 = arith.constant 0.000000e+00 : f32
    %66 = vector.broadcast %cst_34 : f32 to vector<1x256xf32>
    %cst_35 = arith.constant 0.000000e+00 : f32
    %67 = vector.broadcast %cst_35 : f32 to vector<1x256xf32>
    %c51_i32 = arith.constant 51 : i32
    %68 = tpu.dynamic_rotate %60 by %c51_i32 dim 1 : vector<1x256xf32>, i32 -> vector<1x256xf32>
    %c51_i32_36 = arith.constant 51 : i32
    %69 = tpu.dynamic_rotate %63 by %c51_i32_36 dim 1 : vector<1x256xf32>, i32 -> vector<1x256xf32>
    %c0_37 = arith.constant 0 : index
    %70 = memref.load %arg11[%c0_37] : memref<98xf32, #tpu.memory_space<smem>>
    %c49 = arith.constant 49 : index
    %71 = memref.load %arg11[%c49] : memref<98xf32, #tpu.memory_space<smem>>
    %c0_38 = arith.constant 0 : index
    %c0_39 = arith.constant 0 : index
    %72 = vector.load %arg2[%c0_38, %c0_39] : memref<49x256xf32, #tpu.memory_space<vmem>>, vector<1x256xf32>
    %73 = vector.broadcast %70 : f32 to vector<1x256xf32>
    %74 = arith.mulf %73, %68 : vector<1x256xf32>
    %75 = vector.broadcast %71 : f32 to vector<1x256xf32>
    %76 = arith.mulf %75, %69 : vector<1x256xf32>
    %77 = arith.addf %74, %76 : vector<1x256xf32>
    %78 = arith.mulf %77, %72 : vector<1x256xf32>
    %79 = arith.addf %64, %78 : vector<1x256xf32>
    %c50_i32 = arith.constant 50 : i32
    %80 = tpu.dynamic_rotate %60 by %c50_i32 dim 1 : vector<1x256xf32>, i32 -> vector<1x256xf32>
    %c50_i32_40 = arith.constant 50 : i32
    %81 = tpu.dynamic_rotate %63 by %c50_i32_40 dim 1 : vector<1x256xf32>, i32 -> vector<1x256xf32>
    %c1 = arith.constant 1 : index
    %82 = memref.load %arg11[%c1] : memref<98xf32, #tpu.memory_space<smem>>
    %c50 = arith.constant 50 : index
    %83 = memref.load %arg11[%c50] : memref<98xf32, #tpu.memory_space<smem>>
    %c1_41 = arith.constant 1 : index
    %c0_42 = arith.constant 0 : index
    %84 = vector.load %arg2[%c1_41, %c0_42] : memref<49x256xf32, #tpu.memory_space<vmem>>, vector<1x256xf32>
    %85 = vector.broadcast %82 : f32 to vector<1x256xf32>
    %86 = arith.mulf %85, %80 : vector<1x256xf32>
    %87 = vector.broadcast %83 : f32 to vector<1x256xf32>
    %88 = arith.mulf %87, %81 : vector<1x256xf32>
    %89 = arith.addf %86, %88 : vector<1x256xf32>
    %90 = arith.mulf %89, %84 : vector<1x256xf32>
    %91 = arith.addf %65, %90 : vector<1x256xf32>
    %c49_i32 = arith.constant 49 : i32
    %92 = tpu.dynamic_rotate %60 by %c49_i32 dim 1 : vector<1x256xf32>, i32 -> vector<1x256xf32>
    %c49_i32_43 = arith.constant 49 : i32
    %93 = tpu.dynamic_rotate %63 by %c49_i32_43 dim 1 : vector<1x256xf32>, i32 -> vector<1x256xf32>
    %c2 = arith.constant 2 : index
    %94 = memref.load %arg11[%c2] : memref<98xf32, #tpu.memory_space<smem>>
    %c51 = arith.constant 51 : index
    %95 = memref.load %arg11[%c51] : memref<98xf32, #tpu.memory_space<smem>>
    %c2_44 = arith.constant 2 : index
    %c0_45 = arith.constant 0 : index
    %96 = vector.load %arg2[%c2_44, %c0_45] : memref<49x256xf32, #tpu.memory_space<vmem>>, vector<1x256xf32>
    %97 = vector.broadcast %94 : f32 to vector<1x256xf32>
    %98 = arith.mulf %97, %92 : vector<1x256xf32>
    %99 = vector.broadcast %95 : f32 to vector<1x256xf32>
    %100 = arith.mulf %99, %93 : vector<1x256xf32>
    %101 = arith.addf %98, %100 : vector<1x256xf32>
    %102 = arith.mulf %101, %96 : vector<1x256xf32>
    %103 = arith.addf %66, %102 : vector<1x256xf32>
    %c48_i32 = arith.constant 48 : i32
    %104 = tpu.dynamic_rotate %60 by %c48_i32 dim 1 : vector<1x256xf32>, i32 -> vector<1x256xf32>
    %c48_i32_46 = arith.constant 48 : i32
    %105 = tpu.dynamic_rotate %63 by %c48_i32_46 dim 1 : vector<1x256xf32>, i32 -> vector<1x256xf32>
    %c3 = arith.constant 3 : index
    %106 = memref.load %arg11[%c3] : memref<98xf32, #tpu.memory_space<smem>>
    %c52 = arith.constant 52 : index
    %107 = memref.load %arg11[%c52] : memref<98xf32, #tpu.memory_space<smem>>
    %c3_47 = arith.constant 3 : index
    %c0_48 = arith.constant 0 : index
    %108 = vector.load %arg2[%c3_47, %c0_48] : memref<49x256xf32, #tpu.memory_space<vmem>>, vector<1x256xf32>
    %109 = vector.broadcast %106 : f32 to vector<1x256xf32>
    %110 = arith.mulf %109, %104 : vector<1x256xf32>
    %111 = vector.broadcast %107 : f32 to vector<1x256xf32>
    %112 = arith.mulf %111, %105 : vector<1x256xf32>
    %113 = arith.addf %110, %112 : vector<1x256xf32>
    %114 = arith.mulf %113, %108 : vector<1x256xf32>
    %115 = arith.addf %67, %114 : vector<1x256xf32>
    %c47_i32 = arith.constant 47 : i32
    %116 = tpu.dynamic_rotate %60 by %c47_i32 dim 1 : vector<1x256xf32>, i32 -> vector<1x256xf32>
    %c47_i32_49 = arith.constant 47 : i32
    %117 = tpu.dynamic_rotate %63 by %c47_i32_49 dim 1 : vector<1x256xf32>, i32 -> vector<1x256xf32>
    %c4 = arith.constant 4 : index
    %118 = memref.load %arg11[%c4] : memref<98xf32, #tpu.memory_space<smem>>
    %c53 = arith.constant 53 : index
    %119 = memref.load %arg11[%c53] : memref<98xf32, #tpu.memory_space<smem>>
    %c4_50 = arith.constant 4 : index
    %c0_51 = arith.constant 0 : index
    %120 = vector.load %arg2[%c4_50, %c0_51] : memref<49x256xf32, #tpu.memory_space<vmem>>, vector<1x256xf32>
    %121 = vector.broadcast %118 : f32 to vector<1x256xf32>
    %122 = arith.mulf %121, %116 : vector<1x256xf32>
    %123 = vector.broadcast %119 : f32 to vector<1x256xf32>
    %124 = arith.mulf %123, %117 : vector<1x256xf32>
    %125 = arith.addf %122, %124 : vector<1x256xf32>
    %126 = arith.mulf %125, %120 : vector<1x256xf32>
    %127 = arith.addf %79, %126 : vector<1x256xf32>
    %c46_i32 = arith.constant 46 : i32
    %128 = tpu.dynamic_rotate %60 by %c46_i32 dim 1 : vector<1x256xf32>, i32 -> vector<1x256xf32>
    %c46_i32_52 = arith.constant 46 : i32
    %129 = tpu.dynamic_rotate %63 by %c46_i32_52 dim 1 : vector<1x256xf32>, i32 -> vector<1x256xf32>
    %c5 = arith.constant 5 : index
    %130 = memref.load %arg11[%c5] : memref<98xf32, #tpu.memory_space<smem>>
    %c54 = arith.constant 54 : index
    %131 = memref.load %arg11[%c54] : memref<98xf32, #tpu.memory_space<smem>>
    %c5_53 = arith.constant 5 : index
    %c0_54 = arith.constant 0 : index
    %132 = vector.load %arg2[%c5_53, %c0_54] : memref<49x256xf32, #tpu.memory_space<vmem>>, vector<1x256xf32>
    %133 = vector.broadcast %130 : f32 to vector<1x256xf32>
    %134 = arith.mulf %133, %128 : vector<1x256xf32>
    %135 = vector.broadcast %131 : f32 to vector<1x256xf32>
    %136 = arith.mulf %135, %129 : vector<1x256xf32>
    %137 = arith.addf %134, %136 : vector<1x256xf32>
    %138 = arith.mulf %137, %132 : vector<1x256xf32>
    %139 = arith.addf %91, %138 : vector<1x256xf32>
    %c45_i32 = arith.constant 45 : i32
    %140 = tpu.dynamic_rotate %60 by %c45_i32 dim 1 : vector<1x256xf32>, i32 -> vector<1x256xf32>
    %c45_i32_55 = arith.constant 45 : i32
    %141 = tpu.dynamic_rotate %63 by %c45_i32_55 dim 1 : vector<1x256xf32>, i32 -> vector<1x256xf32>
    %c6 = arith.constant 6 : index
    %142 = memref.load %arg11[%c6] : memref<98xf32, #tpu.memory_space<smem>>
    %c55 = arith.constant 55 : index
    %143 = memref.load %arg11[%c55] : memref<98xf32, #tpu.memory_space<smem>>
    %c6_56 = arith.constant 6 : index
    %c0_57 = arith.constant 0 : index
    %144 = vector.load %arg2[%c6_56, %c0_57] : memref<49x256xf32, #tpu.memory_space<vmem>>, vector<1x256xf32>
    %145 = vector.broadcast %142 : f32 to vector<1x256xf32>
    %146 = arith.mulf %145, %140 : vector<1x256xf32>
    %147 = vector.broadcast %143 : f32 to vector<1x256xf32>
    %148 = arith.mulf %147, %141 : vector<1x256xf32>
    %149 = arith.addf %146, %148 : vector<1x256xf32>
    %150 = arith.mulf %149, %144 : vector<1x256xf32>
    %151 = arith.addf %103, %150 : vector<1x256xf32>
    %c35_i32 = arith.constant 35 : i32
    %152 = tpu.dynamic_rotate %60 by %c35_i32 dim 1 : vector<1x256xf32>, i32 -> vector<1x256xf32>
    %c35_i32_58 = arith.constant 35 : i32
    %153 = tpu.dynamic_rotate %63 by %c35_i32_58 dim 1 : vector<1x256xf32>, i32 -> vector<1x256xf32>
    %c7 = arith.constant 7 : index
    %154 = memref.load %arg11[%c7] : memref<98xf32, #tpu.memory_space<smem>>
    %c56 = arith.constant 56 : index
    %155 = memref.load %arg11[%c56] : memref<98xf32, #tpu.memory_space<smem>>
    %c7_59 = arith.constant 7 : index
    %c0_60 = arith.constant 0 : index
    %156 = vector.load %arg2[%c7_59, %c0_60] : memref<49x256xf32, #tpu.memory_space<vmem>>, vector<1x256xf32>
    %157 = vector.broadcast %154 : f32 to vector<1x256xf32>
    %158 = arith.mulf %157, %152 : vector<1x256xf32>
    %159 = vector.broadcast %155 : f32 to vector<1x256xf32>
    %160 = arith.mulf %159, %153 : vector<1x256xf32>
    %161 = arith.addf %158, %160 : vector<1x256xf32>
    %162 = arith.mulf %161, %156 : vector<1x256xf32>
    %163 = arith.addf %115, %162 : vector<1x256xf32>
    %c34_i32 = arith.constant 34 : i32
    %164 = tpu.dynamic_rotate %60 by %c34_i32 dim 1 : vector<1x256xf32>, i32 -> vector<1x256xf32>
    %c34_i32_61 = arith.constant 34 : i32
    %165 = tpu.dynamic_rotate %63 by %c34_i32_61 dim 1 : vector<1x256xf32>, i32 -> vector<1x256xf32>
    %c8 = arith.constant 8 : index
    %166 = memref.load %arg11[%c8] : memref<98xf32, #tpu.memory_space<smem>>
    %c57 = arith.constant 57 : index
    %167 = memref.load %arg11[%c57] : memref<98xf32, #tpu.memory_space<smem>>
    %c8_62 = arith.constant 8 : index
    %c0_63 = arith.constant 0 : index
    %168 = vector.load %arg2[%c8_62, %c0_63] : memref<49x256xf32, #tpu.memory_space<vmem>>, vector<1x256xf32>
    %169 = vector.broadcast %166 : f32 to vector<1x256xf32>
    %170 = arith.mulf %169, %164 : vector<1x256xf32>
    %171 = vector.broadcast %167 : f32 to vector<1x256xf32>
    %172 = arith.mulf %171, %165 : vector<1x256xf32>
    %173 = arith.addf %170, %172 : vector<1x256xf32>
    %174 = arith.mulf %173, %168 : vector<1x256xf32>
    %175 = arith.addf %127, %174 : vector<1x256xf32>
    %c33_i32 = arith.constant 33 : i32
    %176 = tpu.dynamic_rotate %60 by %c33_i32 dim 1 : vector<1x256xf32>, i32 -> vector<1x256xf32>
    %c33_i32_64 = arith.constant 33 : i32
    %177 = tpu.dynamic_rotate %63 by %c33_i32_64 dim 1 : vector<1x256xf32>, i32 -> vector<1x256xf32>
    %c9 = arith.constant 9 : index
    %178 = memref.load %arg11[%c9] : memref<98xf32, #tpu.memory_space<smem>>
    %c58 = arith.constant 58 : index
    %179 = memref.load %arg11[%c58] : memref<98xf32, #tpu.memory_space<smem>>
    %c9_65 = arith.constant 9 : index
    %c0_66 = arith.constant 0 : index
    %180 = vector.load %arg2[%c9_65, %c0_66] : memref<49x256xf32, #tpu.memory_space<vmem>>, vector<1x256xf32>
    %181 = vector.broadcast %178 : f32 to vector<1x256xf32>
    %182 = arith.mulf %181, %176 : vector<1x256xf32>
    %183 = vector.broadcast %179 : f32 to vector<1x256xf32>
    %184 = arith.mulf %183, %177 : vector<1x256xf32>
    %185 = arith.addf %182, %184 : vector<1x256xf32>
    %186 = arith.mulf %185, %180 : vector<1x256xf32>
    %187 = arith.addf %139, %186 : vector<1x256xf32>
    %c32_i32 = arith.constant 32 : i32
    %188 = tpu.dynamic_rotate %60 by %c32_i32 dim 1 : vector<1x256xf32>, i32 -> vector<1x256xf32>
    %c32_i32_67 = arith.constant 32 : i32
    %189 = tpu.dynamic_rotate %63 by %c32_i32_67 dim 1 : vector<1x256xf32>, i32 -> vector<1x256xf32>
    %c10 = arith.constant 10 : index
    %190 = memref.load %arg11[%c10] : memref<98xf32, #tpu.memory_space<smem>>
    %c59 = arith.constant 59 : index
    %191 = memref.load %arg11[%c59] : memref<98xf32, #tpu.memory_space<smem>>
    %c10_68 = arith.constant 10 : index
    %c0_69 = arith.constant 0 : index
    %192 = vector.load %arg2[%c10_68, %c0_69] : memref<49x256xf32, #tpu.memory_space<vmem>>, vector<1x256xf32>
    %193 = vector.broadcast %190 : f32 to vector<1x256xf32>
    %194 = arith.mulf %193, %188 : vector<1x256xf32>
    %195 = vector.broadcast %191 : f32 to vector<1x256xf32>
    %196 = arith.mulf %195, %189 : vector<1x256xf32>
    %197 = arith.addf %194, %196 : vector<1x256xf32>
    %198 = arith.mulf %197, %192 : vector<1x256xf32>
    %199 = arith.addf %151, %198 : vector<1x256xf32>
    %c31_i32 = arith.constant 31 : i32
    %200 = tpu.dynamic_rotate %60 by %c31_i32 dim 1 : vector<1x256xf32>, i32 -> vector<1x256xf32>
    %c31_i32_70 = arith.constant 31 : i32
    %201 = tpu.dynamic_rotate %63 by %c31_i32_70 dim 1 : vector<1x256xf32>, i32 -> vector<1x256xf32>
    %c11 = arith.constant 11 : index
    %202 = memref.load %arg11[%c11] : memref<98xf32, #tpu.memory_space<smem>>
    %c60 = arith.constant 60 : index
    %203 = memref.load %arg11[%c60] : memref<98xf32, #tpu.memory_space<smem>>
    %c11_71 = arith.constant 11 : index
    %c0_72 = arith.constant 0 : index
    %204 = vector.load %arg2[%c11_71, %c0_72] : memref<49x256xf32, #tpu.memory_space<vmem>>, vector<1x256xf32>
    %205 = vector.broadcast %202 : f32 to vector<1x256xf32>
    %206 = arith.mulf %205, %200 : vector<1x256xf32>
    %207 = vector.broadcast %203 : f32 to vector<1x256xf32>
    %208 = arith.mulf %207, %201 : vector<1x256xf32>
    %209 = arith.addf %206, %208 : vector<1x256xf32>
    %210 = arith.mulf %209, %204 : vector<1x256xf32>
    %211 = arith.addf %163, %210 : vector<1x256xf32>
    %c30_i32 = arith.constant 30 : i32
    %212 = tpu.dynamic_rotate %60 by %c30_i32 dim 1 : vector<1x256xf32>, i32 -> vector<1x256xf32>
    %c30_i32_73 = arith.constant 30 : i32
    %213 = tpu.dynamic_rotate %63 by %c30_i32_73 dim 1 : vector<1x256xf32>, i32 -> vector<1x256xf32>
    %c12 = arith.constant 12 : index
    %214 = memref.load %arg11[%c12] : memref<98xf32, #tpu.memory_space<smem>>
    %c61 = arith.constant 61 : index
    %215 = memref.load %arg11[%c61] : memref<98xf32, #tpu.memory_space<smem>>
    %c12_74 = arith.constant 12 : index
    %c0_75 = arith.constant 0 : index
    %216 = vector.load %arg2[%c12_74, %c0_75] : memref<49x256xf32, #tpu.memory_space<vmem>>, vector<1x256xf32>
    %217 = vector.broadcast %214 : f32 to vector<1x256xf32>
    %218 = arith.mulf %217, %212 : vector<1x256xf32>
    %219 = vector.broadcast %215 : f32 to vector<1x256xf32>
    %220 = arith.mulf %219, %213 : vector<1x256xf32>
    %221 = arith.addf %218, %220 : vector<1x256xf32>
    %222 = arith.mulf %221, %216 : vector<1x256xf32>
    %223 = arith.addf %175, %222 : vector<1x256xf32>
    %c29_i32 = arith.constant 29 : i32
    %224 = tpu.dynamic_rotate %60 by %c29_i32 dim 1 : vector<1x256xf32>, i32 -> vector<1x256xf32>
    %c29_i32_76 = arith.constant 29 : i32
    %225 = tpu.dynamic_rotate %63 by %c29_i32_76 dim 1 : vector<1x256xf32>, i32 -> vector<1x256xf32>
    %c13 = arith.constant 13 : index
    %226 = memref.load %arg11[%c13] : memref<98xf32, #tpu.memory_space<smem>>
    %c62 = arith.constant 62 : index
    %227 = memref.load %arg11[%c62] : memref<98xf32, #tpu.memory_space<smem>>
    %c13_77 = arith.constant 13 : index
    %c0_78 = arith.constant 0 : index
    %228 = vector.load %arg2[%c13_77, %c0_78] : memref<49x256xf32, #tpu.memory_space<vmem>>, vector<1x256xf32>
    %229 = vector.broadcast %226 : f32 to vector<1x256xf32>
    %230 = arith.mulf %229, %224 : vector<1x256xf32>
    %231 = vector.broadcast %227 : f32 to vector<1x256xf32>
    %232 = arith.mulf %231, %225 : vector<1x256xf32>
    %233 = arith.addf %230, %232 : vector<1x256xf32>
    %234 = arith.mulf %233, %228 : vector<1x256xf32>
    %235 = arith.addf %187, %234 : vector<1x256xf32>
    %c19_i32 = arith.constant 19 : i32
    %236 = tpu.dynamic_rotate %60 by %c19_i32 dim 1 : vector<1x256xf32>, i32 -> vector<1x256xf32>
    %c19_i32_79 = arith.constant 19 : i32
    %237 = tpu.dynamic_rotate %63 by %c19_i32_79 dim 1 : vector<1x256xf32>, i32 -> vector<1x256xf32>
    %c14 = arith.constant 14 : index
    %238 = memref.load %arg11[%c14] : memref<98xf32, #tpu.memory_space<smem>>
    %c63 = arith.constant 63 : index
    %239 = memref.load %arg11[%c63] : memref<98xf32, #tpu.memory_space<smem>>
    %c14_80 = arith.constant 14 : index
    %c0_81 = arith.constant 0 : index
    %240 = vector.load %arg2[%c14_80, %c0_81] : memref<49x256xf32, #tpu.memory_space<vmem>>, vector<1x256xf32>
    %241 = vector.broadcast %238 : f32 to vector<1x256xf32>
    %242 = arith.mulf %241, %236 : vector<1x256xf32>
    %243 = vector.broadcast %239 : f32 to vector<1x256xf32>
    %244 = arith.mulf %243, %237 : vector<1x256xf32>
    %245 = arith.addf %242, %244 : vector<1x256xf32>
    %246 = arith.mulf %245, %240 : vector<1x256xf32>
    %247 = arith.addf %199, %246 : vector<1x256xf32>
    %c18_i32 = arith.constant 18 : i32
    %248 = tpu.dynamic_rotate %60 by %c18_i32 dim 1 : vector<1x256xf32>, i32 -> vector<1x256xf32>
    %c18_i32_82 = arith.constant 18 : i32
    %249 = tpu.dynamic_rotate %63 by %c18_i32_82 dim 1 : vector<1x256xf32>, i32 -> vector<1x256xf32>
    %c15 = arith.constant 15 : index
    %250 = memref.load %arg11[%c15] : memref<98xf32, #tpu.memory_space<smem>>
    %c64 = arith.constant 64 : index
    %251 = memref.load %arg11[%c64] : memref<98xf32, #tpu.memory_space<smem>>
    %c15_83 = arith.constant 15 : index
    %c0_84 = arith.constant 0 : index
    %252 = vector.load %arg2[%c15_83, %c0_84] : memref<49x256xf32, #tpu.memory_space<vmem>>, vector<1x256xf32>
    %253 = vector.broadcast %250 : f32 to vector<1x256xf32>
    %254 = arith.mulf %253, %248 : vector<1x256xf32>
    %255 = vector.broadcast %251 : f32 to vector<1x256xf32>
    %256 = arith.mulf %255, %249 : vector<1x256xf32>
    %257 = arith.addf %254, %256 : vector<1x256xf32>
    %258 = arith.mulf %257, %252 : vector<1x256xf32>
    %259 = arith.addf %211, %258 : vector<1x256xf32>
    %c17_i32 = arith.constant 17 : i32
    %260 = tpu.dynamic_rotate %60 by %c17_i32 dim 1 : vector<1x256xf32>, i32 -> vector<1x256xf32>
    %c17_i32_85 = arith.constant 17 : i32
    %261 = tpu.dynamic_rotate %63 by %c17_i32_85 dim 1 : vector<1x256xf32>, i32 -> vector<1x256xf32>
    %c16 = arith.constant 16 : index
    %262 = memref.load %arg11[%c16] : memref<98xf32, #tpu.memory_space<smem>>
    %c65 = arith.constant 65 : index
    %263 = memref.load %arg11[%c65] : memref<98xf32, #tpu.memory_space<smem>>
    %c16_86 = arith.constant 16 : index
    %c0_87 = arith.constant 0 : index
    %264 = vector.load %arg2[%c16_86, %c0_87] : memref<49x256xf32, #tpu.memory_space<vmem>>, vector<1x256xf32>
    %265 = vector.broadcast %262 : f32 to vector<1x256xf32>
    %266 = arith.mulf %265, %260 : vector<1x256xf32>
    %267 = vector.broadcast %263 : f32 to vector<1x256xf32>
    %268 = arith.mulf %267, %261 : vector<1x256xf32>
    %269 = arith.addf %266, %268 : vector<1x256xf32>
    %270 = arith.mulf %269, %264 : vector<1x256xf32>
    %271 = arith.addf %223, %270 : vector<1x256xf32>
    %c16_i32 = arith.constant 16 : i32
    %272 = tpu.dynamic_rotate %60 by %c16_i32 dim 1 : vector<1x256xf32>, i32 -> vector<1x256xf32>
    %c16_i32_88 = arith.constant 16 : i32
    %273 = tpu.dynamic_rotate %63 by %c16_i32_88 dim 1 : vector<1x256xf32>, i32 -> vector<1x256xf32>
    %c17 = arith.constant 17 : index
    %274 = memref.load %arg11[%c17] : memref<98xf32, #tpu.memory_space<smem>>
    %c66 = arith.constant 66 : index
    %275 = memref.load %arg11[%c66] : memref<98xf32, #tpu.memory_space<smem>>
    %c17_89 = arith.constant 17 : index
    %c0_90 = arith.constant 0 : index
    %276 = vector.load %arg2[%c17_89, %c0_90] : memref<49x256xf32, #tpu.memory_space<vmem>>, vector<1x256xf32>
    %277 = vector.broadcast %274 : f32 to vector<1x256xf32>
    %278 = arith.mulf %277, %272 : vector<1x256xf32>
    %279 = vector.broadcast %275 : f32 to vector<1x256xf32>
    %280 = arith.mulf %279, %273 : vector<1x256xf32>
    %281 = arith.addf %278, %280 : vector<1x256xf32>
    %282 = arith.mulf %281, %276 : vector<1x256xf32>
    %283 = arith.addf %235, %282 : vector<1x256xf32>
    %c15_i32 = arith.constant 15 : i32
    %284 = tpu.dynamic_rotate %60 by %c15_i32 dim 1 : vector<1x256xf32>, i32 -> vector<1x256xf32>
    %c15_i32_91 = arith.constant 15 : i32
    %285 = tpu.dynamic_rotate %63 by %c15_i32_91 dim 1 : vector<1x256xf32>, i32 -> vector<1x256xf32>
    %c18 = arith.constant 18 : index
    %286 = memref.load %arg11[%c18] : memref<98xf32, #tpu.memory_space<smem>>
    %c67 = arith.constant 67 : index
    %287 = memref.load %arg11[%c67] : memref<98xf32, #tpu.memory_space<smem>>
    %c18_92 = arith.constant 18 : index
    %c0_93 = arith.constant 0 : index
    %288 = vector.load %arg2[%c18_92, %c0_93] : memref<49x256xf32, #tpu.memory_space<vmem>>, vector<1x256xf32>
    %289 = vector.broadcast %286 : f32 to vector<1x256xf32>
    %290 = arith.mulf %289, %284 : vector<1x256xf32>
    %291 = vector.broadcast %287 : f32 to vector<1x256xf32>
    %292 = arith.mulf %291, %285 : vector<1x256xf32>
    %293 = arith.addf %290, %292 : vector<1x256xf32>
    %294 = arith.mulf %293, %288 : vector<1x256xf32>
    %295 = arith.addf %247, %294 : vector<1x256xf32>
    %c14_i32 = arith.constant 14 : i32
    %296 = tpu.dynamic_rotate %60 by %c14_i32 dim 1 : vector<1x256xf32>, i32 -> vector<1x256xf32>
    %c14_i32_94 = arith.constant 14 : i32
    %297 = tpu.dynamic_rotate %63 by %c14_i32_94 dim 1 : vector<1x256xf32>, i32 -> vector<1x256xf32>
    %c19 = arith.constant 19 : index
    %298 = memref.load %arg11[%c19] : memref<98xf32, #tpu.memory_space<smem>>
    %c68 = arith.constant 68 : index
    %299 = memref.load %arg11[%c68] : memref<98xf32, #tpu.memory_space<smem>>
    %c19_95 = arith.constant 19 : index
    %c0_96 = arith.constant 0 : index
    %300 = vector.load %arg2[%c19_95, %c0_96] : memref<49x256xf32, #tpu.memory_space<vmem>>, vector<1x256xf32>
    %301 = vector.broadcast %298 : f32 to vector<1x256xf32>
    %302 = arith.mulf %301, %296 : vector<1x256xf32>
    %303 = vector.broadcast %299 : f32 to vector<1x256xf32>
    %304 = arith.mulf %303, %297 : vector<1x256xf32>
    %305 = arith.addf %302, %304 : vector<1x256xf32>
    %306 = arith.mulf %305, %300 : vector<1x256xf32>
    %307 = arith.addf %259, %306 : vector<1x256xf32>
    %c13_i32 = arith.constant 13 : i32
    %308 = tpu.dynamic_rotate %60 by %c13_i32 dim 1 : vector<1x256xf32>, i32 -> vector<1x256xf32>
    %c13_i32_97 = arith.constant 13 : i32
    %309 = tpu.dynamic_rotate %63 by %c13_i32_97 dim 1 : vector<1x256xf32>, i32 -> vector<1x256xf32>
    %c20 = arith.constant 20 : index
    %310 = memref.load %arg11[%c20] : memref<98xf32, #tpu.memory_space<smem>>
    %c69 = arith.constant 69 : index
    %311 = memref.load %arg11[%c69] : memref<98xf32, #tpu.memory_space<smem>>
    %c20_98 = arith.constant 20 : index
    %c0_99 = arith.constant 0 : index
    %312 = vector.load %arg2[%c20_98, %c0_99] : memref<49x256xf32, #tpu.memory_space<vmem>>, vector<1x256xf32>
    %313 = vector.broadcast %310 : f32 to vector<1x256xf32>
    %314 = arith.mulf %313, %308 : vector<1x256xf32>
    %315 = vector.broadcast %311 : f32 to vector<1x256xf32>
    %316 = arith.mulf %315, %309 : vector<1x256xf32>
    %317 = arith.addf %314, %316 : vector<1x256xf32>
    %318 = arith.mulf %317, %312 : vector<1x256xf32>
    %319 = arith.addf %271, %318 : vector<1x256xf32>
    %c3_i32 = arith.constant 3 : i32
    %320 = tpu.dynamic_rotate %60 by %c3_i32 dim 1 : vector<1x256xf32>, i32 -> vector<1x256xf32>
    %c3_i32_100 = arith.constant 3 : i32
    %321 = tpu.dynamic_rotate %63 by %c3_i32_100 dim 1 : vector<1x256xf32>, i32 -> vector<1x256xf32>
    %c21 = arith.constant 21 : index
    %322 = memref.load %arg11[%c21] : memref<98xf32, #tpu.memory_space<smem>>
    %c70 = arith.constant 70 : index
    %323 = memref.load %arg11[%c70] : memref<98xf32, #tpu.memory_space<smem>>
    %c21_101 = arith.constant 21 : index
    %c0_102 = arith.constant 0 : index
    %324 = vector.load %arg2[%c21_101, %c0_102] : memref<49x256xf32, #tpu.memory_space<vmem>>, vector<1x256xf32>
    %325 = vector.broadcast %322 : f32 to vector<1x256xf32>
    %326 = arith.mulf %325, %320 : vector<1x256xf32>
    %327 = vector.broadcast %323 : f32 to vector<1x256xf32>
    %328 = arith.mulf %327, %321 : vector<1x256xf32>
    %329 = arith.addf %326, %328 : vector<1x256xf32>
    %330 = arith.mulf %329, %324 : vector<1x256xf32>
    %331 = arith.addf %283, %330 : vector<1x256xf32>
    %c2_i32 = arith.constant 2 : i32
    %332 = tpu.dynamic_rotate %60 by %c2_i32 dim 1 : vector<1x256xf32>, i32 -> vector<1x256xf32>
    %c2_i32_103 = arith.constant 2 : i32
    %333 = tpu.dynamic_rotate %63 by %c2_i32_103 dim 1 : vector<1x256xf32>, i32 -> vector<1x256xf32>
    %c22 = arith.constant 22 : index
    %334 = memref.load %arg11[%c22] : memref<98xf32, #tpu.memory_space<smem>>
    %c71 = arith.constant 71 : index
    %335 = memref.load %arg11[%c71] : memref<98xf32, #tpu.memory_space<smem>>
    %c22_104 = arith.constant 22 : index
    %c0_105 = arith.constant 0 : index
    %336 = vector.load %arg2[%c22_104, %c0_105] : memref<49x256xf32, #tpu.memory_space<vmem>>, vector<1x256xf32>
    %337 = vector.broadcast %334 : f32 to vector<1x256xf32>
    %338 = arith.mulf %337, %332 : vector<1x256xf32>
    %339 = vector.broadcast %335 : f32 to vector<1x256xf32>
    %340 = arith.mulf %339, %333 : vector<1x256xf32>
    %341 = arith.addf %338, %340 : vector<1x256xf32>
    %342 = arith.mulf %341, %336 : vector<1x256xf32>
    %343 = arith.addf %295, %342 : vector<1x256xf32>
    %c1_i32 = arith.constant 1 : i32
    %344 = tpu.dynamic_rotate %60 by %c1_i32 dim 1 : vector<1x256xf32>, i32 -> vector<1x256xf32>
    %c1_i32_106 = arith.constant 1 : i32
    %345 = tpu.dynamic_rotate %63 by %c1_i32_106 dim 1 : vector<1x256xf32>, i32 -> vector<1x256xf32>
    %c23 = arith.constant 23 : index
    %346 = memref.load %arg11[%c23] : memref<98xf32, #tpu.memory_space<smem>>
    %c72 = arith.constant 72 : index
    %347 = memref.load %arg11[%c72] : memref<98xf32, #tpu.memory_space<smem>>
    %c23_107 = arith.constant 23 : index
    %c0_108 = arith.constant 0 : index
    %348 = vector.load %arg2[%c23_107, %c0_108] : memref<49x256xf32, #tpu.memory_space<vmem>>, vector<1x256xf32>
    %349 = vector.broadcast %346 : f32 to vector<1x256xf32>
    %350 = arith.mulf %349, %344 : vector<1x256xf32>
    %351 = vector.broadcast %347 : f32 to vector<1x256xf32>
    %352 = arith.mulf %351, %345 : vector<1x256xf32>
    %353 = arith.addf %350, %352 : vector<1x256xf32>
    %354 = arith.mulf %353, %348 : vector<1x256xf32>
    %355 = arith.addf %307, %354 : vector<1x256xf32>
    %c24 = arith.constant 24 : index
    %356 = memref.load %arg11[%c24] : memref<98xf32, #tpu.memory_space<smem>>
    %c73 = arith.constant 73 : index
    %357 = memref.load %arg11[%c73] : memref<98xf32, #tpu.memory_space<smem>>
    %c24_109 = arith.constant 24 : index
    %c0_110 = arith.constant 0 : index
    %358 = vector.load %arg2[%c24_109, %c0_110] : memref<49x256xf32, #tpu.memory_space<vmem>>, vector<1x256xf32>
    %359 = vector.broadcast %356 : f32 to vector<1x256xf32>
    %360 = arith.mulf %359, %60 : vector<1x256xf32>
    %361 = vector.broadcast %357 : f32 to vector<1x256xf32>
    %362 = arith.mulf %361, %63 : vector<1x256xf32>
    %363 = arith.addf %360, %362 : vector<1x256xf32>
    %364 = arith.mulf %363, %358 : vector<1x256xf32>
    %365 = arith.addf %319, %364 : vector<1x256xf32>
    %c255_i32 = arith.constant 255 : i32
    %366 = tpu.dynamic_rotate %60 by %c255_i32 dim 1 : vector<1x256xf32>, i32 -> vector<1x256xf32>
    %c255_i32_111 = arith.constant 255 : i32
    %367 = tpu.dynamic_rotate %63 by %c255_i32_111 dim 1 : vector<1x256xf32>, i32 -> vector<1x256xf32>
    %c25 = arith.constant 25 : index
    %368 = memref.load %arg11[%c25] : memref<98xf32, #tpu.memory_space<smem>>
    %c74 = arith.constant 74 : index
    %369 = memref.load %arg11[%c74] : memref<98xf32, #tpu.memory_space<smem>>
    %c25_112 = arith.constant 25 : index
    %c0_113 = arith.constant 0 : index
    %370 = vector.load %arg2[%c25_112, %c0_113] : memref<49x256xf32, #tpu.memory_space<vmem>>, vector<1x256xf32>
    %371 = vector.broadcast %368 : f32 to vector<1x256xf32>
    %372 = arith.mulf %371, %366 : vector<1x256xf32>
    %373 = vector.broadcast %369 : f32 to vector<1x256xf32>
    %374 = arith.mulf %373, %367 : vector<1x256xf32>
    %375 = arith.addf %372, %374 : vector<1x256xf32>
    %376 = arith.mulf %375, %370 : vector<1x256xf32>
    %377 = arith.addf %331, %376 : vector<1x256xf32>
    %c254_i32 = arith.constant 254 : i32
    %378 = tpu.dynamic_rotate %60 by %c254_i32 dim 1 : vector<1x256xf32>, i32 -> vector<1x256xf32>
    %c254_i32_114 = arith.constant 254 : i32
    %379 = tpu.dynamic_rotate %63 by %c254_i32_114 dim 1 : vector<1x256xf32>, i32 -> vector<1x256xf32>
    %c26 = arith.constant 26 : index
    %380 = memref.load %arg11[%c26] : memref<98xf32, #tpu.memory_space<smem>>
    %c75 = arith.constant 75 : index
    %381 = memref.load %arg11[%c75] : memref<98xf32, #tpu.memory_space<smem>>
    %c26_115 = arith.constant 26 : index
    %c0_116 = arith.constant 0 : index
    %382 = vector.load %arg2[%c26_115, %c0_116] : memref<49x256xf32, #tpu.memory_space<vmem>>, vector<1x256xf32>
    %383 = vector.broadcast %380 : f32 to vector<1x256xf32>
    %384 = arith.mulf %383, %378 : vector<1x256xf32>
    %385 = vector.broadcast %381 : f32 to vector<1x256xf32>
    %386 = arith.mulf %385, %379 : vector<1x256xf32>
    %387 = arith.addf %384, %386 : vector<1x256xf32>
    %388 = arith.mulf %387, %382 : vector<1x256xf32>
    %389 = arith.addf %343, %388 : vector<1x256xf32>
    %c253_i32 = arith.constant 253 : i32
    %390 = tpu.dynamic_rotate %60 by %c253_i32 dim 1 : vector<1x256xf32>, i32 -> vector<1x256xf32>
    %c253_i32_117 = arith.constant 253 : i32
    %391 = tpu.dynamic_rotate %63 by %c253_i32_117 dim 1 : vector<1x256xf32>, i32 -> vector<1x256xf32>
    %c27 = arith.constant 27 : index
    %392 = memref.load %arg11[%c27] : memref<98xf32, #tpu.memory_space<smem>>
    %c76 = arith.constant 76 : index
    %393 = memref.load %arg11[%c76] : memref<98xf32, #tpu.memory_space<smem>>
    %c27_118 = arith.constant 27 : index
    %c0_119 = arith.constant 0 : index
    %394 = vector.load %arg2[%c27_118, %c0_119] : memref<49x256xf32, #tpu.memory_space<vmem>>, vector<1x256xf32>
    %395 = vector.broadcast %392 : f32 to vector<1x256xf32>
    %396 = arith.mulf %395, %390 : vector<1x256xf32>
    %397 = vector.broadcast %393 : f32 to vector<1x256xf32>
    %398 = arith.mulf %397, %391 : vector<1x256xf32>
    %399 = arith.addf %396, %398 : vector<1x256xf32>
    %400 = arith.mulf %399, %394 : vector<1x256xf32>
    %401 = arith.addf %355, %400 : vector<1x256xf32>
    %c243_i32 = arith.constant 243 : i32
    %402 = tpu.dynamic_rotate %60 by %c243_i32 dim 1 : vector<1x256xf32>, i32 -> vector<1x256xf32>
    %c243_i32_120 = arith.constant 243 : i32
    %403 = tpu.dynamic_rotate %63 by %c243_i32_120 dim 1 : vector<1x256xf32>, i32 -> vector<1x256xf32>
    %c28 = arith.constant 28 : index
    %404 = memref.load %arg11[%c28] : memref<98xf32, #tpu.memory_space<smem>>
    %c77 = arith.constant 77 : index
    %405 = memref.load %arg11[%c77] : memref<98xf32, #tpu.memory_space<smem>>
    %c28_121 = arith.constant 28 : index
    %c0_122 = arith.constant 0 : index
    %406 = vector.load %arg2[%c28_121, %c0_122] : memref<49x256xf32, #tpu.memory_space<vmem>>, vector<1x256xf32>
    %407 = vector.broadcast %404 : f32 to vector<1x256xf32>
    %408 = arith.mulf %407, %402 : vector<1x256xf32>
    %409 = vector.broadcast %405 : f32 to vector<1x256xf32>
    %410 = arith.mulf %409, %403 : vector<1x256xf32>
    %411 = arith.addf %408, %410 : vector<1x256xf32>
    %412 = arith.mulf %411, %406 : vector<1x256xf32>
    %413 = arith.addf %365, %412 : vector<1x256xf32>
    %c242_i32 = arith.constant 242 : i32
    %414 = tpu.dynamic_rotate %60 by %c242_i32 dim 1 : vector<1x256xf32>, i32 -> vector<1x256xf32>
    %c242_i32_123 = arith.constant 242 : i32
    %415 = tpu.dynamic_rotate %63 by %c242_i32_123 dim 1 : vector<1x256xf32>, i32 -> vector<1x256xf32>
    %c29 = arith.constant 29 : index
    %416 = memref.load %arg11[%c29] : memref<98xf32, #tpu.memory_space<smem>>
    %c78 = arith.constant 78 : index
    %417 = memref.load %arg11[%c78] : memref<98xf32, #tpu.memory_space<smem>>
    %c29_124 = arith.constant 29 : index
    %c0_125 = arith.constant 0 : index
    %418 = vector.load %arg2[%c29_124, %c0_125] : memref<49x256xf32, #tpu.memory_space<vmem>>, vector<1x256xf32>
    %419 = vector.broadcast %416 : f32 to vector<1x256xf32>
    %420 = arith.mulf %419, %414 : vector<1x256xf32>
    %421 = vector.broadcast %417 : f32 to vector<1x256xf32>
    %422 = arith.mulf %421, %415 : vector<1x256xf32>
    %423 = arith.addf %420, %422 : vector<1x256xf32>
    %424 = arith.mulf %423, %418 : vector<1x256xf32>
    %425 = arith.addf %377, %424 : vector<1x256xf32>
    %c241_i32 = arith.constant 241 : i32
    %426 = tpu.dynamic_rotate %60 by %c241_i32 dim 1 : vector<1x256xf32>, i32 -> vector<1x256xf32>
    %c241_i32_126 = arith.constant 241 : i32
    %427 = tpu.dynamic_rotate %63 by %c241_i32_126 dim 1 : vector<1x256xf32>, i32 -> vector<1x256xf32>
    %c30 = arith.constant 30 : index
    %428 = memref.load %arg11[%c30] : memref<98xf32, #tpu.memory_space<smem>>
    %c79 = arith.constant 79 : index
    %429 = memref.load %arg11[%c79] : memref<98xf32, #tpu.memory_space<smem>>
    %c30_127 = arith.constant 30 : index
    %c0_128 = arith.constant 0 : index
    %430 = vector.load %arg2[%c30_127, %c0_128] : memref<49x256xf32, #tpu.memory_space<vmem>>, vector<1x256xf32>
    %431 = vector.broadcast %428 : f32 to vector<1x256xf32>
    %432 = arith.mulf %431, %426 : vector<1x256xf32>
    %433 = vector.broadcast %429 : f32 to vector<1x256xf32>
    %434 = arith.mulf %433, %427 : vector<1x256xf32>
    %435 = arith.addf %432, %434 : vector<1x256xf32>
    %436 = arith.mulf %435, %430 : vector<1x256xf32>
    %437 = arith.addf %389, %436 : vector<1x256xf32>
    %c240_i32 = arith.constant 240 : i32
    %438 = tpu.dynamic_rotate %60 by %c240_i32 dim 1 : vector<1x256xf32>, i32 -> vector<1x256xf32>
    %c240_i32_129 = arith.constant 240 : i32
    %439 = tpu.dynamic_rotate %63 by %c240_i32_129 dim 1 : vector<1x256xf32>, i32 -> vector<1x256xf32>
    %c31 = arith.constant 31 : index
    %440 = memref.load %arg11[%c31] : memref<98xf32, #tpu.memory_space<smem>>
    %c80 = arith.constant 80 : index
    %441 = memref.load %arg11[%c80] : memref<98xf32, #tpu.memory_space<smem>>
    %c31_130 = arith.constant 31 : index
    %c0_131 = arith.constant 0 : index
    %442 = vector.load %arg2[%c31_130, %c0_131] : memref<49x256xf32, #tpu.memory_space<vmem>>, vector<1x256xf32>
    %443 = vector.broadcast %440 : f32 to vector<1x256xf32>
    %444 = arith.mulf %443, %438 : vector<1x256xf32>
    %445 = vector.broadcast %441 : f32 to vector<1x256xf32>
    %446 = arith.mulf %445, %439 : vector<1x256xf32>
    %447 = arith.addf %444, %446 : vector<1x256xf32>
    %448 = arith.mulf %447, %442 : vector<1x256xf32>
    %449 = arith.addf %401, %448 : vector<1x256xf32>
    %c239_i32 = arith.constant 239 : i32
    %450 = tpu.dynamic_rotate %60 by %c239_i32 dim 1 : vector<1x256xf32>, i32 -> vector<1x256xf32>
    %c239_i32_132 = arith.constant 239 : i32
    %451 = tpu.dynamic_rotate %63 by %c239_i32_132 dim 1 : vector<1x256xf32>, i32 -> vector<1x256xf32>
    %c32 = arith.constant 32 : index
    %452 = memref.load %arg11[%c32] : memref<98xf32, #tpu.memory_space<smem>>
    %c81 = arith.constant 81 : index
    %453 = memref.load %arg11[%c81] : memref<98xf32, #tpu.memory_space<smem>>
    %c32_133 = arith.constant 32 : index
    %c0_134 = arith.constant 0 : index
    %454 = vector.load %arg2[%c32_133, %c0_134] : memref<49x256xf32, #tpu.memory_space<vmem>>, vector<1x256xf32>
    %455 = vector.broadcast %452 : f32 to vector<1x256xf32>
    %456 = arith.mulf %455, %450 : vector<1x256xf32>
    %457 = vector.broadcast %453 : f32 to vector<1x256xf32>
    %458 = arith.mulf %457, %451 : vector<1x256xf32>
    %459 = arith.addf %456, %458 : vector<1x256xf32>
    %460 = arith.mulf %459, %454 : vector<1x256xf32>
    %461 = arith.addf %413, %460 : vector<1x256xf32>
    %c238_i32 = arith.constant 238 : i32
    %462 = tpu.dynamic_rotate %60 by %c238_i32 dim 1 : vector<1x256xf32>, i32 -> vector<1x256xf32>
    %c238_i32_135 = arith.constant 238 : i32
    %463 = tpu.dynamic_rotate %63 by %c238_i32_135 dim 1 : vector<1x256xf32>, i32 -> vector<1x256xf32>
    %c33 = arith.constant 33 : index
    %464 = memref.load %arg11[%c33] : memref<98xf32, #tpu.memory_space<smem>>
    %c82 = arith.constant 82 : index
    %465 = memref.load %arg11[%c82] : memref<98xf32, #tpu.memory_space<smem>>
    %c33_136 = arith.constant 33 : index
    %c0_137 = arith.constant 0 : index
    %466 = vector.load %arg2[%c33_136, %c0_137] : memref<49x256xf32, #tpu.memory_space<vmem>>, vector<1x256xf32>
    %467 = vector.broadcast %464 : f32 to vector<1x256xf32>
    %468 = arith.mulf %467, %462 : vector<1x256xf32>
    %469 = vector.broadcast %465 : f32 to vector<1x256xf32>
    %470 = arith.mulf %469, %463 : vector<1x256xf32>
    %471 = arith.addf %468, %470 : vector<1x256xf32>
    %472 = arith.mulf %471, %466 : vector<1x256xf32>
    %473 = arith.addf %425, %472 : vector<1x256xf32>
    %c237_i32 = arith.constant 237 : i32
    %474 = tpu.dynamic_rotate %60 by %c237_i32 dim 1 : vector<1x256xf32>, i32 -> vector<1x256xf32>
    %c237_i32_138 = arith.constant 237 : i32
    %475 = tpu.dynamic_rotate %63 by %c237_i32_138 dim 1 : vector<1x256xf32>, i32 -> vector<1x256xf32>
    %c34 = arith.constant 34 : index
    %476 = memref.load %arg11[%c34] : memref<98xf32, #tpu.memory_space<smem>>
    %c83 = arith.constant 83 : index
    %477 = memref.load %arg11[%c83] : memref<98xf32, #tpu.memory_space<smem>>
    %c34_139 = arith.constant 34 : index
    %c0_140 = arith.constant 0 : index
    %478 = vector.load %arg2[%c34_139, %c0_140] : memref<49x256xf32, #tpu.memory_space<vmem>>, vector<1x256xf32>
    %479 = vector.broadcast %476 : f32 to vector<1x256xf32>
    %480 = arith.mulf %479, %474 : vector<1x256xf32>
    %481 = vector.broadcast %477 : f32 to vector<1x256xf32>
    %482 = arith.mulf %481, %475 : vector<1x256xf32>
    %483 = arith.addf %480, %482 : vector<1x256xf32>
    %484 = arith.mulf %483, %478 : vector<1x256xf32>
    %485 = arith.addf %437, %484 : vector<1x256xf32>
    %c227_i32 = arith.constant 227 : i32
    %486 = tpu.dynamic_rotate %60 by %c227_i32 dim 1 : vector<1x256xf32>, i32 -> vector<1x256xf32>
    %c227_i32_141 = arith.constant 227 : i32
    %487 = tpu.dynamic_rotate %63 by %c227_i32_141 dim 1 : vector<1x256xf32>, i32 -> vector<1x256xf32>
    %c35 = arith.constant 35 : index
    %488 = memref.load %arg11[%c35] : memref<98xf32, #tpu.memory_space<smem>>
    %c84 = arith.constant 84 : index
    %489 = memref.load %arg11[%c84] : memref<98xf32, #tpu.memory_space<smem>>
    %c35_142 = arith.constant 35 : index
    %c0_143 = arith.constant 0 : index
    %490 = vector.load %arg2[%c35_142, %c0_143] : memref<49x256xf32, #tpu.memory_space<vmem>>, vector<1x256xf32>
    %491 = vector.broadcast %488 : f32 to vector<1x256xf32>
    %492 = arith.mulf %491, %486 : vector<1x256xf32>
    %493 = vector.broadcast %489 : f32 to vector<1x256xf32>
    %494 = arith.mulf %493, %487 : vector<1x256xf32>
    %495 = arith.addf %492, %494 : vector<1x256xf32>
    %496 = arith.mulf %495, %490 : vector<1x256xf32>
    %497 = arith.addf %449, %496 : vector<1x256xf32>
    %c226_i32 = arith.constant 226 : i32
    %498 = tpu.dynamic_rotate %60 by %c226_i32 dim 1 : vector<1x256xf32>, i32 -> vector<1x256xf32>
    %c226_i32_144 = arith.constant 226 : i32
    %499 = tpu.dynamic_rotate %63 by %c226_i32_144 dim 1 : vector<1x256xf32>, i32 -> vector<1x256xf32>
    %c36 = arith.constant 36 : index
    %500 = memref.load %arg11[%c36] : memref<98xf32, #tpu.memory_space<smem>>
    %c85 = arith.constant 85 : index
    %501 = memref.load %arg11[%c85] : memref<98xf32, #tpu.memory_space<smem>>
    %c36_145 = arith.constant 36 : index
    %c0_146 = arith.constant 0 : index
    %502 = vector.load %arg2[%c36_145, %c0_146] : memref<49x256xf32, #tpu.memory_space<vmem>>, vector<1x256xf32>
    %503 = vector.broadcast %500 : f32 to vector<1x256xf32>
    %504 = arith.mulf %503, %498 : vector<1x256xf32>
    %505 = vector.broadcast %501 : f32 to vector<1x256xf32>
    %506 = arith.mulf %505, %499 : vector<1x256xf32>
    %507 = arith.addf %504, %506 : vector<1x256xf32>
    %508 = arith.mulf %507, %502 : vector<1x256xf32>
    %509 = arith.addf %461, %508 : vector<1x256xf32>
    %c225_i32 = arith.constant 225 : i32
    %510 = tpu.dynamic_rotate %60 by %c225_i32 dim 1 : vector<1x256xf32>, i32 -> vector<1x256xf32>
    %c225_i32_147 = arith.constant 225 : i32
    %511 = tpu.dynamic_rotate %63 by %c225_i32_147 dim 1 : vector<1x256xf32>, i32 -> vector<1x256xf32>
    %c37 = arith.constant 37 : index
    %512 = memref.load %arg11[%c37] : memref<98xf32, #tpu.memory_space<smem>>
    %c86 = arith.constant 86 : index
    %513 = memref.load %arg11[%c86] : memref<98xf32, #tpu.memory_space<smem>>
    %c37_148 = arith.constant 37 : index
    %c0_149 = arith.constant 0 : index
    %514 = vector.load %arg2[%c37_148, %c0_149] : memref<49x256xf32, #tpu.memory_space<vmem>>, vector<1x256xf32>
    %515 = vector.broadcast %512 : f32 to vector<1x256xf32>
    %516 = arith.mulf %515, %510 : vector<1x256xf32>
    %517 = vector.broadcast %513 : f32 to vector<1x256xf32>
    %518 = arith.mulf %517, %511 : vector<1x256xf32>
    %519 = arith.addf %516, %518 : vector<1x256xf32>
    %520 = arith.mulf %519, %514 : vector<1x256xf32>
    %521 = arith.addf %473, %520 : vector<1x256xf32>
    %c224_i32 = arith.constant 224 : i32
    %522 = tpu.dynamic_rotate %60 by %c224_i32 dim 1 : vector<1x256xf32>, i32 -> vector<1x256xf32>
    %c224_i32_150 = arith.constant 224 : i32
    %523 = tpu.dynamic_rotate %63 by %c224_i32_150 dim 1 : vector<1x256xf32>, i32 -> vector<1x256xf32>
    %c38 = arith.constant 38 : index
    %524 = memref.load %arg11[%c38] : memref<98xf32, #tpu.memory_space<smem>>
    %c87 = arith.constant 87 : index
    %525 = memref.load %arg11[%c87] : memref<98xf32, #tpu.memory_space<smem>>
    %c38_151 = arith.constant 38 : index
    %c0_152 = arith.constant 0 : index
    %526 = vector.load %arg2[%c38_151, %c0_152] : memref<49x256xf32, #tpu.memory_space<vmem>>, vector<1x256xf32>
    %527 = vector.broadcast %524 : f32 to vector<1x256xf32>
    %528 = arith.mulf %527, %522 : vector<1x256xf32>
    %529 = vector.broadcast %525 : f32 to vector<1x256xf32>
    %530 = arith.mulf %529, %523 : vector<1x256xf32>
    %531 = arith.addf %528, %530 : vector<1x256xf32>
    %532 = arith.mulf %531, %526 : vector<1x256xf32>
    %533 = arith.addf %485, %532 : vector<1x256xf32>
    %c223_i32 = arith.constant 223 : i32
    %534 = tpu.dynamic_rotate %60 by %c223_i32 dim 1 : vector<1x256xf32>, i32 -> vector<1x256xf32>
    %c223_i32_153 = arith.constant 223 : i32
    %535 = tpu.dynamic_rotate %63 by %c223_i32_153 dim 1 : vector<1x256xf32>, i32 -> vector<1x256xf32>
    %c39 = arith.constant 39 : index
    %536 = memref.load %arg11[%c39] : memref<98xf32, #tpu.memory_space<smem>>
    %c88 = arith.constant 88 : index
    %537 = memref.load %arg11[%c88] : memref<98xf32, #tpu.memory_space<smem>>
    %c39_154 = arith.constant 39 : index
    %c0_155 = arith.constant 0 : index
    %538 = vector.load %arg2[%c39_154, %c0_155] : memref<49x256xf32, #tpu.memory_space<vmem>>, vector<1x256xf32>
    %539 = vector.broadcast %536 : f32 to vector<1x256xf32>
    %540 = arith.mulf %539, %534 : vector<1x256xf32>
    %541 = vector.broadcast %537 : f32 to vector<1x256xf32>
    %542 = arith.mulf %541, %535 : vector<1x256xf32>
    %543 = arith.addf %540, %542 : vector<1x256xf32>
    %544 = arith.mulf %543, %538 : vector<1x256xf32>
    %545 = arith.addf %497, %544 : vector<1x256xf32>
    %c222_i32 = arith.constant 222 : i32
    %546 = tpu.dynamic_rotate %60 by %c222_i32 dim 1 : vector<1x256xf32>, i32 -> vector<1x256xf32>
    %c222_i32_156 = arith.constant 222 : i32
    %547 = tpu.dynamic_rotate %63 by %c222_i32_156 dim 1 : vector<1x256xf32>, i32 -> vector<1x256xf32>
    %c40 = arith.constant 40 : index
    %548 = memref.load %arg11[%c40] : memref<98xf32, #tpu.memory_space<smem>>
    %c89 = arith.constant 89 : index
    %549 = memref.load %arg11[%c89] : memref<98xf32, #tpu.memory_space<smem>>
    %c40_157 = arith.constant 40 : index
    %c0_158 = arith.constant 0 : index
    %550 = vector.load %arg2[%c40_157, %c0_158] : memref<49x256xf32, #tpu.memory_space<vmem>>, vector<1x256xf32>
    %551 = vector.broadcast %548 : f32 to vector<1x256xf32>
    %552 = arith.mulf %551, %546 : vector<1x256xf32>
    %553 = vector.broadcast %549 : f32 to vector<1x256xf32>
    %554 = arith.mulf %553, %547 : vector<1x256xf32>
    %555 = arith.addf %552, %554 : vector<1x256xf32>
    %556 = arith.mulf %555, %550 : vector<1x256xf32>
    %557 = arith.addf %509, %556 : vector<1x256xf32>
    %c221_i32 = arith.constant 221 : i32
    %558 = tpu.dynamic_rotate %60 by %c221_i32 dim 1 : vector<1x256xf32>, i32 -> vector<1x256xf32>
    %c221_i32_159 = arith.constant 221 : i32
    %559 = tpu.dynamic_rotate %63 by %c221_i32_159 dim 1 : vector<1x256xf32>, i32 -> vector<1x256xf32>
    %c41 = arith.constant 41 : index
    %560 = memref.load %arg11[%c41] : memref<98xf32, #tpu.memory_space<smem>>
    %c90 = arith.constant 90 : index
    %561 = memref.load %arg11[%c90] : memref<98xf32, #tpu.memory_space<smem>>
    %c41_160 = arith.constant 41 : index
    %c0_161 = arith.constant 0 : index
    %562 = vector.load %arg2[%c41_160, %c0_161] : memref<49x256xf32, #tpu.memory_space<vmem>>, vector<1x256xf32>
    %563 = vector.broadcast %560 : f32 to vector<1x256xf32>
    %564 = arith.mulf %563, %558 : vector<1x256xf32>
    %565 = vector.broadcast %561 : f32 to vector<1x256xf32>
    %566 = arith.mulf %565, %559 : vector<1x256xf32>
    %567 = arith.addf %564, %566 : vector<1x256xf32>
    %568 = arith.mulf %567, %562 : vector<1x256xf32>
    %569 = arith.addf %521, %568 : vector<1x256xf32>
    %c211_i32 = arith.constant 211 : i32
    %570 = tpu.dynamic_rotate %60 by %c211_i32 dim 1 : vector<1x256xf32>, i32 -> vector<1x256xf32>
    %c211_i32_162 = arith.constant 211 : i32
    %571 = tpu.dynamic_rotate %63 by %c211_i32_162 dim 1 : vector<1x256xf32>, i32 -> vector<1x256xf32>
    %c42 = arith.constant 42 : index
    %572 = memref.load %arg11[%c42] : memref<98xf32, #tpu.memory_space<smem>>
    %c91 = arith.constant 91 : index
    %573 = memref.load %arg11[%c91] : memref<98xf32, #tpu.memory_space<smem>>
    %c42_163 = arith.constant 42 : index
    %c0_164 = arith.constant 0 : index
    %574 = vector.load %arg2[%c42_163, %c0_164] : memref<49x256xf32, #tpu.memory_space<vmem>>, vector<1x256xf32>
    %575 = vector.broadcast %572 : f32 to vector<1x256xf32>
    %576 = arith.mulf %575, %570 : vector<1x256xf32>
    %577 = vector.broadcast %573 : f32 to vector<1x256xf32>
    %578 = arith.mulf %577, %571 : vector<1x256xf32>
    %579 = arith.addf %576, %578 : vector<1x256xf32>
    %580 = arith.mulf %579, %574 : vector<1x256xf32>
    %581 = arith.addf %533, %580 : vector<1x256xf32>
    %c210_i32 = arith.constant 210 : i32
    %582 = tpu.dynamic_rotate %60 by %c210_i32 dim 1 : vector<1x256xf32>, i32 -> vector<1x256xf32>
    %c210_i32_165 = arith.constant 210 : i32
    %583 = tpu.dynamic_rotate %63 by %c210_i32_165 dim 1 : vector<1x256xf32>, i32 -> vector<1x256xf32>
    %c43 = arith.constant 43 : index
    %584 = memref.load %arg11[%c43] : memref<98xf32, #tpu.memory_space<smem>>
    %c92 = arith.constant 92 : index
    %585 = memref.load %arg11[%c92] : memref<98xf32, #tpu.memory_space<smem>>
    %c43_166 = arith.constant 43 : index
    %c0_167 = arith.constant 0 : index
    %586 = vector.load %arg2[%c43_166, %c0_167] : memref<49x256xf32, #tpu.memory_space<vmem>>, vector<1x256xf32>
    %587 = vector.broadcast %584 : f32 to vector<1x256xf32>
    %588 = arith.mulf %587, %582 : vector<1x256xf32>
    %589 = vector.broadcast %585 : f32 to vector<1x256xf32>
    %590 = arith.mulf %589, %583 : vector<1x256xf32>
    %591 = arith.addf %588, %590 : vector<1x256xf32>
    %592 = arith.mulf %591, %586 : vector<1x256xf32>
    %593 = arith.addf %545, %592 : vector<1x256xf32>
    %c209_i32 = arith.constant 209 : i32
    %594 = tpu.dynamic_rotate %60 by %c209_i32 dim 1 : vector<1x256xf32>, i32 -> vector<1x256xf32>
    %c209_i32_168 = arith.constant 209 : i32
    %595 = tpu.dynamic_rotate %63 by %c209_i32_168 dim 1 : vector<1x256xf32>, i32 -> vector<1x256xf32>
    %c44 = arith.constant 44 : index
    %596 = memref.load %arg11[%c44] : memref<98xf32, #tpu.memory_space<smem>>
    %c93 = arith.constant 93 : index
    %597 = memref.load %arg11[%c93] : memref<98xf32, #tpu.memory_space<smem>>
    %c44_169 = arith.constant 44 : index
    %c0_170 = arith.constant 0 : index
    %598 = vector.load %arg2[%c44_169, %c0_170] : memref<49x256xf32, #tpu.memory_space<vmem>>, vector<1x256xf32>
    %599 = vector.broadcast %596 : f32 to vector<1x256xf32>
    %600 = arith.mulf %599, %594 : vector<1x256xf32>
    %601 = vector.broadcast %597 : f32 to vector<1x256xf32>
    %602 = arith.mulf %601, %595 : vector<1x256xf32>
    %603 = arith.addf %600, %602 : vector<1x256xf32>
    %604 = arith.mulf %603, %598 : vector<1x256xf32>
    %605 = arith.addf %557, %604 : vector<1x256xf32>
    %c208_i32 = arith.constant 208 : i32
    %606 = tpu.dynamic_rotate %60 by %c208_i32 dim 1 : vector<1x256xf32>, i32 -> vector<1x256xf32>
    %c208_i32_171 = arith.constant 208 : i32
    %607 = tpu.dynamic_rotate %63 by %c208_i32_171 dim 1 : vector<1x256xf32>, i32 -> vector<1x256xf32>
    %c45 = arith.constant 45 : index
    %608 = memref.load %arg11[%c45] : memref<98xf32, #tpu.memory_space<smem>>
    %c94 = arith.constant 94 : index
    %609 = memref.load %arg11[%c94] : memref<98xf32, #tpu.memory_space<smem>>
    %c45_172 = arith.constant 45 : index
    %c0_173 = arith.constant 0 : index
    %610 = vector.load %arg2[%c45_172, %c0_173] : memref<49x256xf32, #tpu.memory_space<vmem>>, vector<1x256xf32>
    %611 = vector.broadcast %608 : f32 to vector<1x256xf32>
    %612 = arith.mulf %611, %606 : vector<1x256xf32>
    %613 = vector.broadcast %609 : f32 to vector<1x256xf32>
    %614 = arith.mulf %613, %607 : vector<1x256xf32>
    %615 = arith.addf %612, %614 : vector<1x256xf32>
    %616 = arith.mulf %615, %610 : vector<1x256xf32>
    %617 = arith.addf %569, %616 : vector<1x256xf32>
    %c207_i32 = arith.constant 207 : i32
    %618 = tpu.dynamic_rotate %60 by %c207_i32 dim 1 : vector<1x256xf32>, i32 -> vector<1x256xf32>
    %c207_i32_174 = arith.constant 207 : i32
    %619 = tpu.dynamic_rotate %63 by %c207_i32_174 dim 1 : vector<1x256xf32>, i32 -> vector<1x256xf32>
    %c46 = arith.constant 46 : index
    %620 = memref.load %arg11[%c46] : memref<98xf32, #tpu.memory_space<smem>>
    %c95 = arith.constant 95 : index
    %621 = memref.load %arg11[%c95] : memref<98xf32, #tpu.memory_space<smem>>
    %c46_175 = arith.constant 46 : index
    %c0_176 = arith.constant 0 : index
    %622 = vector.load %arg2[%c46_175, %c0_176] : memref<49x256xf32, #tpu.memory_space<vmem>>, vector<1x256xf32>
    %623 = vector.broadcast %620 : f32 to vector<1x256xf32>
    %624 = arith.mulf %623, %618 : vector<1x256xf32>
    %625 = vector.broadcast %621 : f32 to vector<1x256xf32>
    %626 = arith.mulf %625, %619 : vector<1x256xf32>
    %627 = arith.addf %624, %626 : vector<1x256xf32>
    %628 = arith.mulf %627, %622 : vector<1x256xf32>
    %629 = arith.addf %581, %628 : vector<1x256xf32>
    %c206_i32 = arith.constant 206 : i32
    %630 = tpu.dynamic_rotate %60 by %c206_i32 dim 1 : vector<1x256xf32>, i32 -> vector<1x256xf32>
    %c206_i32_177 = arith.constant 206 : i32
    %631 = tpu.dynamic_rotate %63 by %c206_i32_177 dim 1 : vector<1x256xf32>, i32 -> vector<1x256xf32>
    %c47 = arith.constant 47 : index
    %632 = memref.load %arg11[%c47] : memref<98xf32, #tpu.memory_space<smem>>
    %c96 = arith.constant 96 : index
    %633 = memref.load %arg11[%c96] : memref<98xf32, #tpu.memory_space<smem>>
    %c47_178 = arith.constant 47 : index
    %c0_179 = arith.constant 0 : index
    %634 = vector.load %arg2[%c47_178, %c0_179] : memref<49x256xf32, #tpu.memory_space<vmem>>, vector<1x256xf32>
    %635 = vector.broadcast %632 : f32 to vector<1x256xf32>
    %636 = arith.mulf %635, %630 : vector<1x256xf32>
    %637 = vector.broadcast %633 : f32 to vector<1x256xf32>
    %638 = arith.mulf %637, %631 : vector<1x256xf32>
    %639 = arith.addf %636, %638 : vector<1x256xf32>
    %640 = arith.mulf %639, %634 : vector<1x256xf32>
    %641 = arith.addf %593, %640 : vector<1x256xf32>
    %c205_i32 = arith.constant 205 : i32
    %642 = tpu.dynamic_rotate %60 by %c205_i32 dim 1 : vector<1x256xf32>, i32 -> vector<1x256xf32>
    %c205_i32_180 = arith.constant 205 : i32
    %643 = tpu.dynamic_rotate %63 by %c205_i32_180 dim 1 : vector<1x256xf32>, i32 -> vector<1x256xf32>
    %c48 = arith.constant 48 : index
    %644 = memref.load %arg11[%c48] : memref<98xf32, #tpu.memory_space<smem>>
    %c97 = arith.constant 97 : index
    %645 = memref.load %arg11[%c97] : memref<98xf32, #tpu.memory_space<smem>>
    %c48_181 = arith.constant 48 : index
    %c0_182 = arith.constant 0 : index
    %646 = vector.load %arg2[%c48_181, %c0_182] : memref<49x256xf32, #tpu.memory_space<vmem>>, vector<1x256xf32>
    %647 = vector.broadcast %644 : f32 to vector<1x256xf32>
    %648 = arith.mulf %647, %642 : vector<1x256xf32>
    %649 = vector.broadcast %645 : f32 to vector<1x256xf32>
    %650 = arith.mulf %649, %643 : vector<1x256xf32>
    %651 = arith.addf %648, %650 : vector<1x256xf32>
    %652 = arith.mulf %651, %646 : vector<1x256xf32>
    %653 = arith.addf %605, %652 : vector<1x256xf32>
    %654 = arith.addf %653, %617 : vector<1x256xf32>
    %655 = arith.addf %629, %641 : vector<1x256xf32>
    %656 = arith.addf %654, %655 : vector<1x256xf32>
    %c0_183 = arith.constant 0 : index
    %657 = memref.load %arg12[%c0_183] : memref<1xf32, #tpu.memory_space<smem>>
    %658 = vector.broadcast %657 : f32 to vector<1x256xf32>
    %659 = arith.addf %656, %658 : vector<1x256xf32>
    %660 = arith.negf %659 : vector<1x256xf32>
    %661 = math.exp %660 : vector<1x256xf32>
    %cst_184 = arith.constant 1.000000e+00 : f32
    %662 = vector.broadcast %cst_184 : f32 to vector<1x256xf32>
    %663 = arith.addf %662, %661 : vector<1x256xf32>
    %664 = arith.divf %662, %663 : vector<1x256xf32>
    %665 = vector.shape_cast %664 : vector<1x256xf32> to vector<1x1x256xf32>
    %666 = vector.broadcast %665 : vector<1x1x256xf32> to vector<1x4x256xf32>
    %667 = arith.mulf %666, %59 : vector<1x4x256xf32>
    %c0_185 = arith.constant 0 : index
    %c0_186 = arith.constant 0 : index
    %c0_187 = arith.constant 0 : index
    %668 = vector.load %arg13[%c0_185, %c0_186, %c0_187] : memref<1x4x256xf32, #tpu.memory_space<vmem>>, vector<1x4x256xf32>
    tpu.vector_store %arg13[%c0_185, %c0_186, %c0_187], %667 {strides = array<i32>} : memref<1x4x256xf32, #tpu.memory_space<vmem>>, vector<1x4x256xf32>,
    return
  }
  func.func @transform_0(%arg0: i32) -> (i32, i32, i32) {
    %c0_i32 = arith.constant 0 : i32
    %c0_i32_0 = arith.constant 0 : i32
    %c0_i32_1 = arith.constant 0 : i32
    return %arg0, %c0_i32, %c0_i32_0 : i32, i32, i32
  }
  func.func @transform_1(%arg0: i32) -> (i32, i32) {
    %c0_i32 = arith.constant 0 : i32
    %c0_i32_0 = arith.constant 0 : i32
    %c0_i32_1 = arith.constant 0 : i32
    return %c0_i32, %c0_i32_0 : i32, i32
  }
  func.func @transform_2(%arg0: i32) -> (i32, i32) {
    %c0_i32 = arith.constant 0 : i32
    %c0_i32_0 = arith.constant 0 : i32
    %c0_i32_1 = arith.constant 0 : i32
    return %c0_i32, %c0_i32_0 : i32, i32
  }
  func.func @transform_3(%arg0: i32) -> (i32, i32) {
    %c0_i32 = arith.constant 0 : i32
    %c0_i32_0 = arith.constant 0 : i32
    %c0_i32_1 = arith.constant 0 : i32
    return %c0_i32, %c0_i32_0 : i32, i32
  }
  func.func @transform_4(%arg0: i32) -> (i32, i32) {
    %c0_i32 = arith.constant 0 : i32
    %c0_i32_0 = arith.constant 0 : i32
    %c0_i32_1 = arith.constant 0 : i32
    return %c0_i32, %c0_i32_0 : i32, i32
  }
  func.func @transform_5(%arg0: i32) -> (i32, i32) {
    %c0_i32 = arith.constant 0 : i32
    %c0_i32_0 = arith.constant 0 : i32
    %c0_i32_1 = arith.constant 0 : i32
    return %c0_i32, %c0_i32_0 : i32, i32
  }
  func.func @transform_6(%arg0: i32) -> (i32, i32) {
    %c0_i32 = arith.constant 0 : i32
    %c0_i32_0 = arith.constant 0 : i32
    %c0_i32_1 = arith.constant 0 : i32
    return %c0_i32, %c0_i32_0 : i32, i32
  }
  func.func @transform_7(%arg0: i32) -> (i32, i32) {
    %c0_i32 = arith.constant 0 : i32
    %c0_i32_0 = arith.constant 0 : i32
    %c0_i32_1 = arith.constant 0 : i32
    return %c0_i32, %c0_i32_0 : i32, i32
  }
  func.func @transform_8(%arg0: i32) -> (i32, i32) {
    %c0_i32 = arith.constant 0 : i32
    %c0_i32_0 = arith.constant 0 : i32
    %c0_i32_1 = arith.constant 0 : i32
    return %c0_i32, %c0_i32_0 : i32, i32
  }
  func.func @transform_9(%arg0: i32) -> (i32, i32) {
    %c0_i32 = arith.constant 0 : i32
    %c0_i32_0 = arith.constant 0 : i32
    %c0_i32_1 = arith.constant 0 : i32
    return %c0_i32, %c0_i32_0 : i32, i32
  }
  func.func @transform_10(%arg0: i32) -> i32 {
    %c0_i32 = arith.constant 0 : i32
    %c0_i32_0 = arith.constant 0 : i32
    return %c0_i32 : i32
  }
  func.func @transform_11(%arg0: i32) -> i32 {
    %c0_i32 = arith.constant 0 : i32
    %c0_i32_0 = arith.constant 0 : i32
    return %c0_i32 : i32
  }
  func.func @transform_12(%arg0: i32) -> (i32, i32, i32) {
    %c0_i32 = arith.constant 0 : i32
    %c0_i32_0 = arith.constant 0 : i32
    %c0_i32_1 = arith.constant 0 : i32
    return %arg0, %c0_i32, %c0_i32_0 : i32, i32, i32
  }
}

</mosaic_0001>

<bundles_post_ra>
// kernel: tpu_custom_call.1
= control target key start
LH: loop header
LB: loop body
LE: loop exit
PB: predicated region body
PF: predicated region fallthrough
CT: control target
= control target key end

     0   :  { %s6260_s0 = inlined_call_operand.hbm [shape: f32[2,4,256], index: 0, kind: input, shape index: {}]   ;;  %s6261_s1 = inlined_call_operand.hbm [shape: f32[49,256], index: 1, kind: input, shape index: {}]   ;;  %s6262_s2 = inlined_call_operand.vmem [shape: f32[4,2], index: 2, kind: input, shape index: {}]   ;;  %s6263_s3 = inlined_call_operand.vmem [shape: f32[1,2], index: 3, kind: input, shape index: {}]   ;;  %s6264_s4 = inlined_call_operand.vmem [shape: f32[2,4], index: 4, kind: input, shape index: {}]   ;;  %s6265_s5 = inlined_call_operand.vmem [shape: f32[1,4], index: 5, kind: input, shape index: {}]   ;;  %s6266_s6 = inlined_call_operand.vmem [shape: f32[4,2], index: 6, kind: input, shape index: {}]   ;;  %s6267_s7 = inlined_call_operand.vmem [shape: f32[1,2], index: 7, kind: input, shape index: {}]   ;;  %s6268_s8 = inlined_call_operand.vmem [shape: f32[2,4], index: 8, kind: input, shape index: {}]   ;;  %s6269_s9 = inlined_call_operand.vmem [shape: f32[1,4], index: 9, kind: input, shape index: {}]   ;;  %s6270_s10 = inlined_call_operand.vmem [shape: f32[98], index: 10, kind: input, shape index: {}]   ;;  %s6271_s11 = inlined_call_operand.<no memory space> [shape: f32[1], index: 11, kind: input, shape index: {}]   ;;  %s6272_s12 = inlined_call_operand.hbm [shape: f32[2,4,256], index: 12, kind: output, shape index: {}]  }
   0x1   :  { %6518 = sst [smem:[#allocation127_spill]] %s6260_s0 }
   0x2   :  { %6519 = sst [smem:[#allocation128_spill]] %s6261_s1 }
   0x3   :  { %6520 = sst [smem:[#allocation129_spill]] %s6262_s2 }
   0x4   :  { %6521 = sst [smem:[#allocation130_spill]] %s6263_s3 }
   0x5   :  { %6522 = sst [smem:[#allocation131_spill]] %s6264_s4 }
   0x6   :  { %6523 = sst [smem:[#allocation132_spill]] %s6265_s5 }
   0x7   :  { %6524 = sst [smem:[#allocation133_spill]] %s6266_s6 }
   0x8   :  { %6525 = sst [smem:[#allocation134_spill]] %s6267_s7 }
   0x9   :  { %6526 = sst [smem:[#allocation135_spill]] %s6268_s8 }
   0xa   :  { %6527 = sst [smem:[#allocation136_spill]] %s6269_s9 }
   0xb   :  { %6528 = sst [smem:[#allocation137_spill]] %s6270_s10 }
   0xc   :  { %6529 = sst [smem:[#allocation138_spill]] %s6272_s12 }
   0xd   :  { %17 = sst [smem:[#allocation2]] %s6271_s11 }
   0xe   :  { %18 = vsyncpa [#allocation4], 0 }
   0xf   :  { %20 = vsyncpa [#allocation4 + $0x1], 0 }
  0x10   :  { %21 = vsyncpa [#allocation8], 0 }
  0x11   :  { %22 = vsyncpa [#allocation6], 0 }
  0x12   :  { %23 = vsyncpa [#allocation5], 0 }
  0x13   :  { %25 = vsyncpa [#allocation5 + $0x1], 0  ;;  %s3219_s23 = smov 0   ;;  %s3221_s24 = smov 0  }
  0x14   :  { %s3223_s25 = smov 0   ;;  %s3225_s26 = smov 0  }
  0x15 LB: > { %6530 = sst [smem:[#allocation15_spill]] %s3083_s23  ;;  %s3240_s11 = sadd.s32 4294967295, %s3095_s26   ;;  %s3095_s26 = sphi %s3225_s26, %s7071_s26   ;;  %s3091_s25 = sphi %s3223_s25, %s7074_s25   ;;  %s3087_s24 = sphi %s3221_s24, %s7073_s24   ;;  %s3083_s23 = sphi %s3219_s23, %s7072_s23  }
  0x16   : > { %6531 = sst [smem:[#allocation16_spill]] %s3087_s24  ;;  %s2688_s27 = sadd.s32 4294967294, %s3095_s26  }
  0x17   : > { %6532 = sst [smem:[#allocation17_spill]] %s3091_s25  ;;  %p51_p0 = scmp.ne.s32.totalorder %s3087_s24, %s3083_s23 }
  0x18   : > { %6533 = sst [smem:[#allocation18_spill]] %s3095_s26  ;;  %p6273_p1 = scmp.eq.s32.totalorder %s3240_s11, 0 }
  0x19   : > { %6534 = sst [smem:[#allocation19_spill]] %s3240_s11  ;;  %p312_p3 = scmp.eq.s32.totalorder %s2688_s27, 1 }
  0x1a   : > { %p3249_p4 = por %p6273_p1, %p51_p0  ;;  %p2689_p5 = scmp.ge.s32.totalorder %s3095_s26, 1 }
  0x1b   : > { %p3254_p6 = por %p312_p3, %p51_p0  ;;  %p319_p7 = scmp.lt.s32.totalorder %s3095_s26, 3 }
  0x1c   : > { %s6535_s28 = scalar_select %p3249_p4, 1, 0 }
  0x1d   : > { %s6536_s29 = scalar_select %p3254_p6, 1, 0 }
  0x1e   : > { %p3259_p8 = pnand %p2689_p5, %p319_p7  ;;  %s3097_s13 = smov [#allocation7]  }
  0x1f   : > { %6537 = sst [smem:[#allocation20_spill]] %s6536_s29  ;;  %s331_s14 = sshll.u32 %s3097_s13, 4  ;;  %s332_s14 = int_to_ptr.vmem [resolvable:$true] %s331_s14 }
  0x20   : > { %s6538_s30 = scalar_select %p3259_p8, 1, 0 }
  0x21   : > { %p2822_p9 = pneg %p3259_p8  ;;  %s6539_s10 = sld [smem:[#allocation137_spill]] }
  0x22   : > { %s6541_s1 = sld [smem:[#allocation128_spill]] }
  0x23   : > { %p3271_p11 = pnand %p2822_p9, %p6273_p1 }
  0x25   : > { %p2950_p13 = pneg %p3271_p11 }
  0x27   : > { %s369_s17 = sshll.u32 %s6539_s10, 4  ;;  %s3275_s17 = int_to_ptr.vmem [resolvable:$true] %s369_s17 }
  0x28   : > { %s2948_s21 = scalar_lea.hbm %s6541_s1, 1792 }
  0x29   : > { %p2949_p12 = scmp.ne.s32.totalorder %s6541_s1, %s2948_s21  ;;  %p2955_p5 = scmp.lt.u32.totalorder %s2948_s21, %s6541_s1 }
  0x2b   : > { %p2951_p0 = pnand %p2950_p13, %p2949_p12 }
  0x2d   : > { %p2952_p3 = pneg %p2951_p0 }
  0x2f   : > { %p2957_p7 = pnand %p2955_p5, %p2952_p3 }
  0x31   : > { %2960 = shalt.err (!%p2957_p7)
}
  0x32   : > { %s2961_s16 = scalar_lea.vmem %s332_s14, 1792  ;;  %p2969_p2 = scmp.lt.s32.totalorder %s332_s14, %s332_s14 }
  0x33   : > { %p2962_p9 = scmp.ne.s32.totalorder %s332_s14, %s2961_s16  ;;  %p2970_p6 = scmp.lt.s32.totalorder %s2961_s16, %s2961_s16 }
  0x35   : > { %p2964_p10 = pnand %p2962_p9, %p2950_p13  ;;  %p2971_p4 = por %p2970_p6, %p2969_p2 }
  0x37   : > { %p2965_p1 = pneg %p2964_p10 }
  0x39   : > { %p2972_p8 = pnand %p2971_p4, %p2965_p1 }
  0x3b   : > { %2975 = shalt.err (!%p2972_p8)
}
  0x3c   : > { %s3098_s19 = smov 256   ;;  %s3099_s20 = smov 16  }
  0x3d   : > { %2825 = dma.hbm_to_vmem [thread:$0]  (!%p3271_p11), %s6541_s1, 1792, %s332_s14, [#allocation8], %s3098_s19, %s3098_s19, %s3099_s20  }
  0x3e   : > { %s2976_s27 = scalar_lea.vmem %s3275_s17, 16  ;;  %p2984_p1 = scmp.lt.s32.totalorder %s3275_s17, %s3275_s17 }
  0x3f   : > { %p2977_p12 = scmp.ne.s32.totalorder %s3275_s17, %s2976_s27  ;;  %p2985_p4 = scmp.lt.s32.totalorder %s2976_s27, %s2976_s27 }
  0x41   : > { %p2979_p10 = pnand %p2977_p12, %p2950_p13  ;;  %p2986_p6 = por %p2985_p4, %p2984_p1 }
  0x43   : > { %p2980_p2 = pneg %p2979_p10 }
  0x45   : > { %p2987_p8 = pnand %p2986_p6, %p2980_p2 }
  0x47   : > { %2990 = shalt.err (!%p2987_p8)
}
  0x48   : > { %s3100_s13 = smov [#allocation9]   ;;  %s3310_s14 = sadd.s32 1, %s3095_s26  }
  0x49   : > { %2828 = dma.vmem_to_smem (!%p3271_p11), %s3275_s17, 16, %s3100_s13, [#allocation6]  }
  0x4a   : > { %6542 = sst [smem:[#allocation21_spill]] %s3310_s14  ;;  %s38_s15 = sadd.s32 1, %s3091_s25 }
  0x4b   : > { %s35_s16 = ssub.s32 %s3095_s26, %s3310_s14  ;;  %p45_p13 = scmp.ne.s32.totalorder %s3091_s25, %s3087_s24 }
  0x4c   : > { %p36_p0 = scmp.eq.s32.totalorder %s35_s16, 0  ;;  %p46_p3 = scmp.eq.s32.totalorder %s3095_s26, 0 }
  0x4d   : > { %p6543_p5 = scmp.eq.s32.totalorder %s3240_s11, 1  ;;  %p2839_p9 = scmp.lt.s32.totalorder %s3095_s26, 2 }
  0x4e   : > { %s3326_s19 = scalar_select %p36_p0, %s3091_s25, %s38_s15  }
  0x4f   : > { %p3320_p7 = por %p6543_p5, %p45_p13  ;;  %p47_p12 = por %p46_p3, %p45_p13 }
  0x50   : > { %6546 = sst [smem:[#allocation23_spill]] %s3326_s19  ;;  %s383_s20 = sand.u32 1, %s3091_s25  }
  0x51   : > { %s6544_s18 = scalar_select %p3320_p7, 1, 0 }
  0x52   : > { %s2693_s21 = sshll.u32 %s383_s20, 3  ;;  %s2808_s17 = sshll.u32 %s3095_s26, 7 }
  0x53   : > { %6545 = sst [smem:[#allocation22_spill]] %s6544_s18  ;;  %s6547_s0 = sld [smem:[#allocation127_spill]] }
  0x54   : > { %s387_s16 = scalar_lea.vmem [#allocation3], %s2693_s21  ;;  %p3337_p11 = pnand %p2839_p9, %p47_p12 }
  0x55   : > { %s395_s1 = sshll.u32 %s387_s16, 4  ;;  %s384_s10 = scalar_lea.sflag [#allocation4], %s383_s20  ;;  %s3335_s1 = int_to_ptr.vmem [resolvable:$true] %s395_s1 }
  0x56   : > { %p2993_p2 = pneg %p3337_p11 }
  0x59   : > { %s3333_s13 = scalar_lea.hbm %s6547_s0, %s2808_s17  ;;  %s2996_s22 = scalar_lea.hbm %s6547_s0, 256 }
  0x5a   : > { %s2991_s19 = scalar_lea.hbm %s3333_s13, 128  ;;  %p2997_p6 = scmp.lt.u32.totalorder %s3333_s13, %s6547_s0 }
  0x5b   : > { %p2992_p10 = scmp.ne.s32.totalorder %s3333_s13, %s2991_s19  ;;  %p2998_p8 = scmp.lt.u32.totalorder %s2996_s22, %s2991_s19 }
  0x5c   : > { %p3000_p0 = scmp.lt.u32.totalorder %s2991_s19, %s3333_s13 }
  0x5d   : > { %p2994_p1 = pnand %p2993_p2, %p2992_p10  ;;  %p2999_p13 = por %p2998_p8, %p2997_p6 }
  0x5f   : > { %p2995_p4 = pneg %p2994_p1  ;;  %p3001_p3 = por %p3000_p0, %p2999_p13 }
  0x61   : > { %p3002_p5 = pnand %p3001_p3, %p2995_p4 }
  0x63   : > { %3005 = shalt.err (!%p3002_p5)
}
  0x64   : > { %s3006_s20 = scalar_lea.vmem %s3335_s1, 128  ;;  %s3101_s17 = smov [#allocation3]  }
  0x65   : > { %p3007_p9 = scmp.ne.s32.totalorder %s3335_s1, %s3006_s20  ;;  %s3011_s21 = sshll.u32 %s3101_s17, 4  ;;  %s3012_s21 = int_to_ptr.vmem [resolvable:$false] %s3011_s21 }
  0x66   : > { %s3013_s27 = scalar_lea.vmem %s3012_s21, 256  ;;  %p3014_p1 = scmp.lt.s32.totalorder %s3335_s1, %s3012_s21 }
  0x67   : > { %p3009_p12 = pnand %p3007_p9, %p2993_p2  ;;  %p3015_p6 = scmp.lt.s32.totalorder %s3013_s27, %s3006_s20 }
  0x69   : > { %p3010_p10 = pneg %p3009_p12  ;;  %p3016_p8 = por %p3015_p6, %p3014_p1 }
  0x6b   : > { %p3017_p13 = pnand %p3016_p8, %p3010_p10 }
  0x6d   : > { %3020 = shalt.err (!%p3017_p13)
}
  0x6e   : > { %2832 = dma.hbm_to_vmem [thread:$0]  (!%p3337_p11), %s3333_s13, 128, %s3335_s1, %s384_s10  }
  0x6f   : > { %p6549_p4 = scmp.ne.s32.totalorder %s6538_s30, 0 }
  0x71   : > { %404 = sbr.rel (%p6549_p4) target bundleno = 1233 (0x4d1), region = 68 }
  0x78   : > { %s3369_s19 = sand.u32 1, %s3087_s24   ;;  %p6551_p2 = scmp.ne.s32.totalorder %s6535_s28, 0 }
  0x79   : > { %6550 = sst [smem:[#allocation24_spill]] %s3369_s19  ;;  %s6276_s22 = sshll.u32 %s3369_s19, 3 }
  0x7a   : > { %s407_s16 = scalar_lea.sflag [#allocation4], %s3369_s19  ;;  %s410_s20 = scalar_lea.vmem [#allocation3], %s6276_s22 }
  0x7b   : > { %3066 = dma.done.wait (%p6551_p2), %s407_s16, 128  }
  0x7c   : > { %3068 = vsyncadd (%p6551_p2), %s407_s16, 4294967168  ;;  %p6552_p11 = scmp.eq.s32.totalorder %s3240_s11, 0 }
  0x7e   : > { %3070 = dma.done.wait (%p6552_p11), [#allocation8], 1792   ;;  %p6553_p0 = pmov %p6552_p11 }
  0x80   : > { %3072 = vsyncadd (%p6553_p0), [#allocation8], 4294965504  ;;  %p6554_p3 = pmov %p6553_p0 }
  0x81   : > { %p6555_p5 = pmov %p6553_p0 }
  0x82   : > { %3074 = dma.done.wait (%p6554_p3), [#allocation6], 16  }
  0x83   : > { %3076 = vsyncadd (%p6555_p5), [#allocation6], 4294967280 }
  0x84   : > { %423 = sfence }
  0x85   : > { %v3387_v0 = vld [vmem:[%s410_s20] sm:$0xff]  ;;  %vm464_vm0 = vcmask 1043456   ;;  %s6556_s6 = sld [smem:[#allocation133_spill]]  ;;  %s6557_s2 = sld [smem:[#allocation129_spill]]  ;;  %vm481_vm1 = vcmask 11264   ;;  %v6359_v25 = vlaneseq  ;;  %vm499_vm2 = vcmask 25600  }
  0x86   : > { %v3391_v1 = vcombine.high %v3387_v0, %v3387_v0  ;;  %v470_v2 = vsel %vm464_vm0, %v3387_v0, 0.0  ;;  %v465_v4 = vsel %vm464_vm0, %v3387_v0, -inf  ;;  %s6558_s3 = sld [smem:[#allocation130_spill]]  ;;  %s6559_s7 = sld [smem:[#allocation134_spill]] }
  0x87   : > { %v3414_v32 = vshrl.u32 %v6359_v25, 7  ;;  %s6560_s4 = sld [smem:[#allocation131_spill]]  ;;  %s6561_s8 = sld [smem:[#allocation135_spill]] }
  0x88   : > { %v471_v3 = vsel %vm464_vm0, %v3391_v1, 0.0  ;;  %v466_v5 = vsel %vm464_vm0, %v3391_v1, -inf  ;;  %s6562_s5 = sld [smem:[#allocation132_spill]]  ;;  %s6563_s9 = sld [smem:[#allocation136_spill]] }
  0x89   : > { %v472_v6 = vadd.f32 %v471_v3, %v470_v2  ;;  %v467_v7 = vmax.f32 %v465_v4, %v466_v5  ;;  %v3417_v36 = vsub.s32 0, %v3414_v32  ;;  %s3102_s15 = smov 49   ;;  %s6277_s17 = smov 51  }
  0x8a   : > { %s3104_s21 = smov 48   ;;  %s3105_s27 = smov 47  }
  0x8b   : > { %473 = vadd.xlane.f32.xlu0 %v472_v6  ;;  %v514_v8 = vld [vmem:[%s6556_s6] sm:$0xf]  ;;  %s3106_s16 = smov 50   ;;  %s6279_s20 = smov 46  }
  0x8c   : > { %v476_v11 = vld [vmem:[%s6557_s2] sm:$0xf]  ;;  %s6281_s1 = smov 45   ;;  %s6283_s10 = smov 35  }
  0x8d   : > { %v477_v29 = vld [vmem:[%s6558_s3] sm:$0x1]  ;;  %s6285_s28 = smov 34   ;;  %s6287_s30 = smov 33  }
  0x8e   : > { %v515_v30 = vld [vmem:[%s6559_s7] sm:$0x1]  ;;  %s6289_s13 = smov 32   ;;  %s6291_s22 = smov 31  }
  0x8f   : > { %468 = vmax.xlane.f32.xlu0 %v467_v7  ;;  %v478_v40 = vld [vmem:[%s6560_s4] sm:$0x3]  ;;  %s3932_s0 = sld [smem:[#allocation9 + $0x4]]  ;;  %s3934_s2 = sld [smem:[#allocation9 + $0x5]] }
  0x90   : > { %v516_v43 = vld [vmem:[%s6561_s8] sm:$0x3]  ;;  %s3936_s3 = sld [smem:[#allocation9 + $0x6]]  ;;  %s6646_s4 = smov 115  }
  0x91   : > { %v479_v56 = vld [vmem:[%s6562_s5] sm:$0x1]  ;;  %s3945_s5 = sld [smem:[#allocation9 + $0x8]]  ;;  %s3947_s6 = sld [smem:[#allocation9 + $0x9]] }
  0x92   : > { %v517_v61 = vld [vmem:[%s6563_s9] sm:$0x1]  ;;  %s3949_s7 = sld [smem:[#allocation9 + $0xa]]  ;;  %s3951_s8 = sld [smem:[#allocation9 + $0xb]] }
  0x93   : > { %s3958_s9 = sld [smem:[#allocation9 + $0xc]]  ;;  %s3960_s25 = sld [smem:[#allocation9 + $0xd]] }
  0x94   : > { %s6652_s24 = smov 114   ;;  %s3980_s14 = sld [smem:[#allocation9 + $0x11]] }
  0x95   : > { %6645 = sst [smem:[#allocation84_spill]] %s3932_s0  ;;  %s3983_s26 = sld [smem:[#allocation9 + $0x12]] }
  0x96   : > { %s3985_s29 = sld [smem:[#allocation9 + $0x13]]  ;;  %s3994_s23 = sld [smem:[#allocation9 + $0x15]] }
  0x97   : > { %s3997_s12 = sld [smem:[#allocation9 + $0x16]]  ;;  %s3999_s18 = sld [smem:[#allocation9 + $0x17]] }
  0x98   : > { %6647 = sst [smem:[#allocation85_spill]] %s3951_s8  ;;  %s6657_s19 = smov 113  }
  0x99   : > { %6650 = sst [smem:[#allocation88_spill]] %s3960_s25  ;;  %s4008_s11 = sld [smem:[#allocation9 + $0x19]] }
  0x9a   : > { %s6667_s0 = smov 127   ;;  %s4067_s8 = sld [smem:[#allocation9 + $0x23]] }
  0x9b   : > { %s6673_s25 = smov 111  }
  0x9d   : > { %6656 = sst [smem:[#allocation92_spill]] %s3999_s18  ;;  %s6679_s18 = smov 110  }
  0x9f   : > { %6658 = sst [smem:[#allocation93_spill]] %s4008_s11 }
  0xa0   : > { %6672 = sst [smem:[#allocation105_spill]] %s4067_s8 }
  0xa1   : > { %s4186_s8 = sld [smem:[#allocation9 + $0x2a]] }
 0x118   : > { %v474_v9 = vpop.xlane.xlu0 %473 }
 0x119   : > { %v475_v10 = vmul.f32 0.00390625, %v474_v9 }
 0x11b   : > { %v518_v12 = vmul.f32 %v514_v8, %v475_v10 }
 0x11c   : > { %v469_v13 = vpop.xlane.xlu0 %468 }
 0x11d   : > { %v519_v14 = vsel %vm481_vm1, %v518_v12, 0.0  ;;  %v480_v15 = vmul.f32 %v476_v11, %v469_v13 }
 0x11e   : > { %v520_v16 = vrot.slane %v519_v14, 4 }
 0x11f   : > { %v482_v17 = vsel %vm481_vm1, %v480_v15, 0.0 }
 0x120   : > { %v521_v18 = vadd.f32 %v520_v16, %v519_v14  ;;  %v483_v19 = vrot.slane %v482_v17, 4 }
 0x122   : > { %v522_v20 = vrot.slane %v521_v18, 2  ;;  %v484_v21 = vadd.f32 %v483_v19, %v482_v17 }
 0x124   : > { %v485_v22 = vrot.slane %v484_v21, 2  ;;  %v523_v23 = vadd.f32 %v522_v20, %v521_v18 }
 0x126   : > { %v486_v24 = vadd.f32 %v485_v22, %v484_v21  ;;  %v524_v26 = vrot.slane %v523_v23, 1 }
 0x128   : > { %v487_v27 = vrot.slane %v486_v24, 1  ;;  %v525_v28 = vadd.f32 %v524_v26, %v523_v23 }
 0x12a   : > { %v488_v31 = vadd.f32 %v487_v27, %v486_v24  ;;  %v526_v34 = vadd.f32 %v525_v28, %v515_v30 }
 0x12c   : > { %v489_v33 = vadd.f32 %v488_v31, %v477_v29  ;;  %v527_v38 = vmax.f32 %v526_v34, 0.0 }
 0x12e   : > { %v490_v35 = vmax.f32 %v489_v33, 0.0  ;;  %v531_v39 = vrot.slane %v527_v38, %v3417_v36 }
 0x130   : > { %v494_v37 = vrot.slane %v490_v35, %v3417_v36 }
 0x132   : > { %496 = vbcast.lane.b32.xlu1 %v494_v37, 256 }
 0x136   : > { %533 = vbcast.lane.b32.xlu1 %v531_v39, 256 }
 0x1a4   : > { %v497_v41 = vpop.permute.xlu1 %496 }
 0x1a5   : > { %v498_v42 = vmul.f32 %v497_v41, %v478_v40 }
 0x1a7   : > { %v500_v44 = vsel %vm499_vm2, %v498_v42, 0.0 }
 0x1a8   : > { %v501_v45 = vrot.slane %v500_v44, 4  ;;  %v534_v46 = vpop.permute.xlu1 %533 }
 0x1a9   : > { %v535_v47 = vmul.f32 %v534_v46, %v516_v43 }
 0x1aa   : > { %v502_v48 = vadd.f32 %v501_v45, %v500_v44 }
 0x1ab   : > { %v536_v49 = vsel %vm499_vm2, %v535_v47, 0.0 }
 0x1ac   : > { %v503_v50 = vrot.slane %v502_v48, 2  ;;  %v537_v51 = vrot.slane %v536_v49, 4 }
 0x1ae   : > { %v504_v52 = vadd.f32 %v503_v50, %v502_v48  ;;  %v538_v53 = vadd.f32 %v537_v51, %v536_v49 }
 0x1b0   : > { %v505_v54 = vrot.slane %v504_v52, 1  ;;  %v539_v55 = vrot.slane %v538_v53, 2 }
 0x1b2   : > { %v506_v57 = vadd.f32 %v505_v54, %v504_v52  ;;  %v540_v58 = vadd.f32 %v539_v55, %v538_v53 }
 0x1b4   : > { %v507_v59 = vadd.f32 %v506_v57, %v479_v56  ;;  %v541_v60 = vrot.slane %v540_v58, 1 }
 0x1b6   : > { %v2701_v62 = vmul.f32 -1.442695, %v507_v59  ;;  %v542_v63 = vadd.f32 %v541_v60, %v540_v58 }
 0x1b8   : > { %2928 = vpow2.f32 %v2701_v62  ;;  %v543_v2 = vadd.f32 %v542_v63, %v517_v61 }
 0x1ba   : > { %v2702_v3 = vmul.f32 -1.442695, %v543_v2 }
 0x1bc   : > { %2930 = vpow2.f32 %v2702_v3 }
 0x1c2   : > { %v2929_v4 = vpop.eup %2928 }
 0x1c3   : > { %v511_v5 = vadd.f32 1.0, %v2929_v4 }
 0x1c5   : > { %2932 = vrcp.f32 %v511_v5 }
 0x1c6   : > { %v2931_v6 = vpop.eup %2930 }
 0x1c7   : > { %v547_v7 = vadd.f32 1.0, %v2931_v6 }
 0x1c9   : > { %2934 = vrcp.f32 %v547_v7 }
 0x1cf   : > { %v2933_v8 = vpop.eup %2932 }
 0x1d3   : > { %v2935_v9 = vpop.eup %2934 }
 0x1d4   : > { %v550_v10 = vadd.f32 %v2935_v9, %v2933_v8 }
 0x1d6   : > { %v2703_v11 = vmul.f32 -1.442695, %v550_v10 }
 0x1d8   : > { %2936 = vpow2.f32 %v2703_v11 }
 0x1e2   : > { %v2937_v12 = vpop.eup %2936 }
 0x1e3   : > { %v554_v13 = vadd.f32 1.0, %v2937_v12 }
 0x1e5   : > { %2938 = vrcp.f32 %v554_v13 }
 0x1ef   : > { %v2939_v14 = vpop.eup %2938 }
 0x1f0   : > { %v560_v15 = vrot.slane %v2939_v14, %v3417_v36 }
 0x1f2   : > { %562 = vbcast.lane.b32.xlu0 %v560_v15, 256 }
 0x264   : > { %v563_v16 = vpop.permute.xlu0 %562 }
 0x265   : > { %v3435_v17 = vmul.f32 %v563_v16, %v3387_v0  ;;  %v3438_v18 = vmul.f32 %v563_v16, %v3391_v1 }
 0x267   : > { %6564 = vst [vmem:[#allocation25_spill] sm:$0xff] %v3435_v17  ;;  %6565 = vst [vmem:[#allocation26_spill] sm:$0xff] %v3438_v18  ;;  %v566_v19 = vsel %vm464_vm0, %v3435_v17, -inf  ;;  %v573_v20 = vsel %vm464_vm0, %v3438_v18, -inf  ;;  %v580_v56 = vsel %vm464_vm0, %v3435_v17, 0.0  ;;  %v587_v10 = vsel %vm464_vm0, %v3438_v18, 0.0 }
 0x268   : > { %v567_v21 = vrot.slane %v566_v19, 4  ;;  %v574_v22 = vrot.slane %v573_v20, 4  ;;  %v581_v57 = vrot.slane %v580_v56, 4  ;;  %v588_v12 = vrot.slane %v587_v10, 4 }
 0x26a   : > { %v568_v23 = vmax.f32 %v566_v19, %v567_v21  ;;  %v575_v24 = vmax.f32 %v573_v20, %v574_v22  ;;  %v582_v60 = vadd.f32 %v581_v57, %v580_v56  ;;  %v589_v15 = vadd.f32 %v588_v12, %v587_v10 }
 0x26c   : > { %v569_v26 = vrot.slane %v568_v23, 2  ;;  %v576_v27 = vrot.slane %v575_v24, 2  ;;  %v583_v63 = vrot.slane %v582_v60, 2  ;;  %v590_v21 = vrot.slane %v589_v15, 2 }
 0x26e   : > { %v570_v28 = vmax.f32 %v568_v23, %v569_v26  ;;  %v577_v29 = vmax.f32 %v575_v24, %v576_v27  ;;  %v584_v4 = vadd.f32 %v583_v63, %v582_v60  ;;  %v591_v24 = vadd.f32 %v590_v21, %v589_v15 }
 0x270   : > { %v571_v30 = vrot.slane %v570_v28, 1  ;;  %v578_v31 = vrot.slane %v577_v29, 1  ;;  %v585_v7 = vrot.slane %v584_v4, 1 }
 0x272   : > { %v3444_v0 = vmax.f32 %v570_v28, %v571_v30  ;;  %v3450_v1 = vmax.f32 %v577_v29, %v578_v31  ;;  %v586_v11 = vadd.f32 %v585_v7, %v584_v4  ;;  %v592_v28 = vrot.slane %v591_v24, 1 }
 0x274   : > { %677 = vrot.lane.b32.xlu0 %v3444_v0, %s3102_s15  ;;  %596 = vrot.lane.b32.xlu1 %v3444_v0, %s6277_s17  ;;  %v3704_v16 = vmul.f32 0.25, %v586_v11  ;;  %v593_v31 = vadd.f32 %v592_v28, %v591_v24 }
 0x276   : > { %v3746_v60 = vmul.f32 0.25, %v593_v31 }
 0x278   : > { %717 = vrot.lane.b32.xlu0 %v3444_v0, %s3104_s21  ;;  %598 = vrot.lane.b32.xlu1 %v3450_v1, %s6277_s17  ;;  %s6293_s17 = smov 30  }
 0x27c   : > { %757 = vrot.lane.b32.xlu0 %v3444_v0, %s3105_s27  ;;  %637 = vrot.lane.b32.xlu1 %v3444_v0, %s3106_s16 }
 0x280   : > { %797 = vrot.lane.b32.xlu0 %v3444_v0, %s6279_s20  ;;  %639 = vrot.lane.b32.xlu1 %v3450_v1, %s3106_s16 }
 0x284   : > { %837 = vrot.lane.b32.xlu0 %v3444_v0, %s6281_s1  ;;  %679 = vrot.lane.b32.xlu1 %v3450_v1, %s3102_s15 }
 0x288   : > { %877 = vrot.lane.b32.xlu0 %v3444_v0, %s6283_s10  ;;  %719 = vrot.lane.b32.xlu1 %v3450_v1, %s3104_s21 }
 0x28c   : > { %917 = vrot.lane.b32.xlu0 %v3444_v0, %s6285_s28  ;;  %759 = vrot.lane.b32.xlu1 %v3450_v1, %s3105_s27 }
 0x290   : > { %957 = vrot.lane.b32.xlu0 %v3444_v0, %s6287_s30  ;;  %799 = vrot.lane.b32.xlu1 %v3450_v1, %s6279_s20  ;;  %s6295_s20 = smov 29  }
 0x294   : > { %997 = vrot.lane.b32.xlu0 %v3444_v0, %s6289_s13  ;;  %839 = vrot.lane.b32.xlu1 %v3450_v1, %s6281_s1  ;;  %s6297_s1 = smov 19  }
 0x298   : > { %1037 = vrot.lane.b32.xlu0 %v3444_v0, %s6291_s22  ;;  %879 = vrot.lane.b32.xlu1 %v3450_v1, %s6283_s10  ;;  %s6299_s10 = smov 18  }
 0x29c   : > { %1077 = vrot.lane.b32.xlu0 %v3444_v0, %s6293_s17  ;;  %919 = vrot.lane.b32.xlu1 %v3450_v1, %s6285_s28  ;;  %s6301_s28 = smov 17  }
 0x2a0   : > { %1117 = vrot.lane.b32.xlu0 %v3444_v0, %s6295_s20  ;;  %959 = vrot.lane.b32.xlu1 %v3450_v1, %s6287_s30  ;;  %s6303_s30 = smov 16  }
 0x2a4   : > { %1157 = vrot.lane.b32.xlu0 %v3444_v0, %s6297_s1  ;;  %999 = vrot.lane.b32.xlu1 %v3450_v1, %s6289_s13  ;;  %s6305_s13 = smov 15  }
 0x2a8   : > { %1197 = vrot.lane.b32.xlu0 %v3444_v0, %s6299_s10  ;;  %1039 = vrot.lane.b32.xlu1 %v3450_v1, %s6291_s22  ;;  %s6307_s22 = smov 14  }
 0x2ac   : > { %1237 = vrot.lane.b32.xlu0 %v3444_v0, %s6301_s28  ;;  %1079 = vrot.lane.b32.xlu1 %v3450_v1, %s6293_s17  ;;  %s6309_s17 = smov 13  }
 0x2b0   : > { %1277 = vrot.lane.b32.xlu0 %v3444_v0, %s6303_s30  ;;  %1119 = vrot.lane.b32.xlu1 %v3450_v1, %s6295_s20  ;;  %s6311_s20 = smov 3  }
 0x2b4   : > { %1317 = vrot.lane.b32.xlu0 %v3444_v0, %s6305_s13  ;;  %1159 = vrot.lane.b32.xlu1 %v3450_v1, %s6297_s1  ;;  %s6313_s1 = smov 2  }
 0x2b8   : > { %1357 = vrot.lane.b32.xlu0 %v3444_v0, %s6307_s22  ;;  %1199 = vrot.lane.b32.xlu1 %v3450_v1, %s6299_s10  ;;  %s6315_s10 = smov 1  }
 0x2bc   : > { %1397 = vrot.lane.b32.xlu0 %v3444_v0, %s6309_s17  ;;  %1239 = vrot.lane.b32.xlu1 %v3450_v1, %s6301_s28  ;;  %s6394_s28 = smov 127  }
 0x2c0   : > { %1437 = vrot.lane.b32.xlu0 %v3444_v0, %s6311_s20  ;;  %1279 = vrot.lane.b32.xlu1 %v3450_v1, %s6303_s30  ;;  %s6317_s30 = smov 126  }
 0x2c4   : > { %1477 = vrot.lane.b32.xlu0 %v3444_v0, %s6313_s1  ;;  %1319 = vrot.lane.b32.xlu1 %v3450_v1, %s6305_s13  ;;  %s6319_s13 = smov 125  }
 0x2c8   : > { %1517 = vrot.lane.b32.xlu0 %v3444_v0, %s6315_s10  ;;  %1359 = vrot.lane.b32.xlu1 %v3450_v1, %s6307_s22  ;;  %s6321_s22 = smov 115  }
 0x2cc   : > { %1584 = vrot.lane.b32.xlu0 %v3444_v0, %s6394_s28  ;;  %1399 = vrot.lane.b32.xlu1 %v3450_v1, %s6309_s17  ;;  %s6323_s17 = smov 114  }
 0x2d0   : > { %1624 = vrot.lane.b32.xlu0 %v3444_v0, %s6317_s30  ;;  %1439 = vrot.lane.b32.xlu1 %v3450_v1, %s6311_s20  ;;  %s6325_s20 = smov 113  }
 0x2d4   : > { %1664 = vrot.lane.b32.xlu0 %v3444_v0, %s6319_s13  ;;  %1479 = vrot.lane.b32.xlu1 %v3450_v1, %s6313_s1  ;;  %s6327_s1 = smov 112  }
 0x2d8   : > { %1704 = vrot.lane.b32.xlu0 %v3444_v0, %s6321_s22  ;;  %1519 = vrot.lane.b32.xlu1 %v3450_v1, %s6315_s10  ;;  %s6329_s10 = smov 111  }
 0x2dc   : > { %1744 = vrot.lane.b32.xlu0 %v3444_v0, %s6323_s17  ;;  %1586 = vrot.lane.b32.xlu1 %v3450_v1, %s6394_s28 }
 0x2e0   : > { %1784 = vrot.lane.b32.xlu0 %v3444_v0, %s6325_s20  ;;  %1626 = vrot.lane.b32.xlu1 %v3450_v1, %s6317_s30  ;;  %s6331_s30 = smov 110  }
 0x2e4   : > { %1824 = vrot.lane.b32.xlu0 %v3444_v0, %s6327_s1  ;;  %1666 = vrot.lane.b32.xlu1 %v3450_v1, %s6319_s13  ;;  %s6333_s13 = smov 109  }
 0x2e6   : > { %v3564_v33 = vpop.permute.xlu0 %677  ;;  %v3566_v34 = vpop.permute.xlu1 %596 }
 0x2e8   : > { %1864 = vrot.lane.b32.xlu0 %v3444_v0, %s6329_s10  ;;  %1706 = vrot.lane.b32.xlu1 %v3450_v1, %s6321_s22  ;;  %s6335_s22 = smov 99  }
 0x2ea   : > { %v3572_v35 = vpop.permute.xlu0 %717  ;;  %v3574_v37 = vpop.permute.xlu1 %598 }
 0x2ec   : > { %1904 = vrot.lane.b32.xlu0 %v3444_v0, %s6331_s30  ;;  %1746 = vrot.lane.b32.xlu1 %v3450_v1, %s6323_s17  ;;  %s6339_s17 = smov 98  }
 0x2ee   : > { %v3580_v38 = vpop.permute.xlu0 %757  ;;  %v3582_v39 = vpop.permute.xlu1 %637 }
 0x2f0   : > { %1944 = vrot.lane.b32.xlu0 %v3444_v0, %s6333_s13  ;;  %1786 = vrot.lane.b32.xlu1 %v3450_v1, %s6325_s20  ;;  %s6337_s20 = smov 97  }
 0x2f2   : > { %v3588_v40 = vpop.permute.xlu0 %797  ;;  %v3590_v41 = vpop.permute.xlu1 %639 }
 0x2f4   : > { %1984 = vrot.lane.b32.xlu0 %v3444_v0, %s6335_s22  ;;  %1826 = vrot.lane.b32.xlu1 %v3450_v1, %s6327_s1  ;;  %s6341_s1 = smov 96  }
 0x2f6   : > { %v3596_v42 = vpop.permute.xlu0 %837  ;;  %v3598_v43 = vpop.permute.xlu1 %679 }
 0x2f8   : > { %2024 = vrot.lane.b32.xlu0 %v3444_v0, %s6339_s17  ;;  %1866 = vrot.lane.b32.xlu1 %v3450_v1, %s6329_s10  ;;  %s6343_s10 = smov 95  }
 0x2fa   : > { %v3604_v44 = vpop.permute.xlu0 %877  ;;  %v3606_v45 = vpop.permute.xlu1 %719 }
 0x2fc   : > { %2064 = vrot.lane.b32.xlu0 %v3444_v0, %s6337_s20  ;;  %1906 = vrot.lane.b32.xlu1 %v3450_v1, %s6331_s30  ;;  %s6392_s30 = smov 94  }
 0x2fe   : > { %v3612_v46 = vpop.permute.xlu0 %917  ;;  %v3614_v47 = vpop.permute.xlu1 %759 }
 0x300   : > { %2104 = vrot.lane.b32.xlu0 %v3444_v0, %s6341_s1  ;;  %1946 = vrot.lane.b32.xlu1 %v3450_v1, %s6333_s13  ;;  %s6345_s13 = smov 93  }
 0x302   : > { %v3620_v48 = vpop.permute.xlu0 %957  ;;  %v3622_v49 = vpop.permute.xlu1 %799 }
 0x304   : > { %2144 = vrot.lane.b32.xlu0 %v3444_v0, %s6343_s10  ;;  %1986 = vrot.lane.b32.xlu1 %v3450_v1, %s6335_s22  ;;  %s6347_s22 = smov 83  }
 0x306   : > { %v3628_v50 = vpop.permute.xlu0 %997  ;;  %v3630_v51 = vpop.permute.xlu1 %839 }
 0x308   : > { %2184 = vrot.lane.b32.xlu0 %v3444_v0, %s6392_s30  ;;  %2026 = vrot.lane.b32.xlu1 %v3450_v1, %s6339_s17  ;;  %s6357_s17 = smov 81  }
 0x30a   : > { %v3636_v52 = vpop.permute.xlu0 %1037  ;;  %v3638_v53 = vpop.permute.xlu1 %879 }
 0x30c   : > { %2224 = vrot.lane.b32.xlu0 %v3444_v0, %s6345_s13  ;;  %2066 = vrot.lane.b32.xlu1 %v3450_v1, %s6337_s20  ;;  %s6390_s20 = smov 82  }
 0x30e   : > { %v3644_v54 = vpop.permute.xlu0 %1077  ;;  %v3646_v55 = vpop.permute.xlu1 %919 }
 0x310   : > { %2264 = vrot.lane.b32.xlu0 %v3444_v0, %s6347_s22  ;;  %2106 = vrot.lane.b32.xlu1 %v3450_v1, %s6341_s1  ;;  %s6353_s1 = smov 80  }
 0x312   : > { %v3654_v58 = vpop.permute.xlu0 %1117  ;;  %v3656_v59 = vpop.permute.xlu1 %959 }
 0x314   : > { %2304 = vrot.lane.b32.xlu0 %v3444_v0, %s6390_s20  ;;  %2146 = vrot.lane.b32.xlu1 %v3450_v1, %s6343_s10  ;;  %s6349_s10 = smov 79  }
 0x316   : > { %v3662_v61 = vpop.permute.xlu0 %1157  ;;  %v3664_v62 = vpop.permute.xlu1 %999 }
 0x318   : > { %2344 = vrot.lane.b32.xlu0 %v3444_v0, %s6357_s17  ;;  %2186 = vrot.lane.b32.xlu1 %v3450_v1, %s6392_s30  ;;  %s3922_s30 = sld [smem:[#allocation9 + $0x1]] }
 0x31a   : > { %v3670_v2 = vpop.permute.xlu0 %1197  ;;  %v3672_v3 = vpop.permute.xlu1 %1039 }
 0x31c   : > { %2384 = vrot.lane.b32.xlu0 %v3444_v0, %s6353_s1  ;;  %2226 = vrot.lane.b32.xlu1 %v3450_v1, %s6345_s13  ;;  %s6351_s13 = smov 78  }
 0x31e   : > { %v3678_v5 = vpop.permute.xlu0 %1237  ;;  %v3680_v6 = vpop.permute.xlu1 %1079  ;;  %6640 = sst [smem:[#allocation79_spill]] %s3922_s30  ;;  %s4038_s30 = sld [smem:[#allocation9 + $0x20]] }
 0x31f   : > { %s6676_s11 = sld [smem:[#allocation79_spill]] }
 0x320   : > { %2424 = vrot.lane.b32.xlu0 %v3444_v0, %s6349_s10  ;;  %2266 = vrot.lane.b32.xlu1 %v3450_v1, %s6347_s22  ;;  %s6355_s22 = smov 77  }
 0x322   : > { %v3686_v8 = vpop.permute.xlu0 %1277  ;;  %v3688_v9 = vpop.permute.xlu1 %1119 }
 0x323   : > { %6566 = vst [vmem:[#allocation27_spill] sm:$0xff] %v3686_v8 }
 0x324   : > { %2464 = vrot.lane.b32.xlu0 %v3444_v0, %s6351_s13  ;;  %2306 = vrot.lane.b32.xlu1 %v3450_v1, %s6390_s20  ;;  %s3920_s20 = sld [smem:[#allocation9]]  ;;  %6665 = sst [smem:[#allocation100_spill]] %s4038_s30 }
 0x326   : > { %v3696_v13 = vpop.permute.xlu0 %1317  ;;  %v3698_v14 = vpop.permute.xlu1 %1159 }
 0x327   : > { %6567 = vst [vmem:[#allocation28_spill] sm:$0xff] %v3696_v13 }
 0x328   : > { %2504 = vrot.lane.b32.xlu0 %v3444_v0, %s6355_s22  ;;  %2346 = vrot.lane.b32.xlu1 %v3450_v1, %s6357_s17  ;;  %s6586_s17 = smov 34  }
 0x32a   : > { %v3706_v19 = vpop.permute.xlu0 %1357  ;;  %v3708_v20 = vpop.permute.xlu1 %1199 }
 0x32b   : > { %6568 = vst [vmem:[#allocation29_spill] sm:$0xff] %v3706_v19  ;;  %v4426_v19 = vld [vmem:[#allocation7] ss:$8 sm:$0x3] }
 0x32c   : > { %644 = vrot.lane.b32.xlu0 %v3704_v16, %s3106_s16  ;;  %2386 = vrot.lane.b32.xlu1 %v3450_v1, %s6353_s1  ;;  %s6580_s1 = smov 45  }
 0x32e   : > { %v3714_v22 = vpop.permute.xlu0 %1397  ;;  %v3716_v23 = vpop.permute.xlu1 %1239 }
 0x32f   : > { %6569 = vst [vmem:[#allocation30_spill] sm:$0xff] %v3714_v22 }
 0x330   : > { %684 = vrot.lane.b32.xlu0 %v3704_v16, %s3102_s15  ;;  %2426 = vrot.lane.b32.xlu1 %v3450_v1, %s6349_s10  ;;  %s6576_s10 = smov 46  }
 0x332   : > { %v3722_v26 = vpop.permute.xlu0 %1437  ;;  %v3724_v27 = vpop.permute.xlu1 %1279 }
 0x333   : > { %6570 = vst [vmem:[#allocation31_spill] sm:$0xff] %v3722_v26  ;;  %6571 = vst [vmem:[#allocation32_spill] sm:$0xff] %v3724_v27  ;;  %v6713_v26 = vstv %s3947_s6  ;;  %s4363_s6 = sld [smem:[#allocation9 + $0x33]] }
 0x334   : > { %724 = vrot.lane.b32.xlu0 %v3704_v16, %s3104_s21  ;;  %2466 = vrot.lane.b32.xlu1 %v3450_v1, %s6351_s13  ;;  %s6577_s13 = smov 51  }
 0x336   : > { %v3730_v29 = vpop.permute.xlu0 %1477  ;;  %v3732_v30 = vpop.permute.xlu1 %1319 }
 0x337   : > { %6572 = vst [vmem:[#allocation33_spill] sm:$0xff] %v3730_v29  ;;  %6573 = vst [vmem:[#allocation34_spill] sm:$0xff] %v3732_v30 }
 0x338   : > { %764 = vrot.lane.b32.xlu0 %v3704_v16, %s3105_s27  ;;  %2506 = vrot.lane.b32.xlu1 %v3450_v1, %s6355_s22  ;;  %s6583_s22 = smov 35  }
 0x33a   : > { %v3738_v56 = vpop.permute.xlu0 %1517  ;;  %v3740_v57 = vpop.permute.xlu1 %1359 }
 0x33b   : > { %6574 = vst [vmem:[#allocation35_spill] sm:$0xff] %v3738_v56  ;;  %6575 = vst [vmem:[#allocation36_spill] sm:$0xff] %v3740_v57 }
 0x33c   : > { %804 = vrot.lane.b32.xlu0 %v3704_v16, %s6576_s10  ;;  %605 = vrot.lane.b32.xlu1 %v3704_v16, %s6577_s13 }
 0x33e   : > { %v3748_v63 = vpop.permute.xlu0 %1584  ;;  %v3750_v4 = vpop.permute.xlu1 %1399 }
 0x33f   : > { %6578 = vst [vmem:[#allocation37_spill] sm:$0xff] %v3748_v63  ;;  %6579 = vst [vmem:[#allocation38_spill] sm:$0xff] %v3750_v4 }
 0x340   : > { %844 = vrot.lane.b32.xlu0 %v3704_v16, %s6580_s1  ;;  %607 = vrot.lane.b32.xlu1 %v3746_v60, %s6577_s13  ;;  %s6589_s13 = smov 33  }
 0x342   : > { %v3756_v7 = vpop.permute.xlu0 %1624  ;;  %v3758_v10 = vpop.permute.xlu1 %1439 }
 0x343   : > { %6581 = vst [vmem:[#allocation39_spill] sm:$0xff] %v3756_v7  ;;  %6582 = vst [vmem:[#allocation40_spill] sm:$0xff] %v3758_v10 }
 0x344   : > { %884 = vrot.lane.b32.xlu0 %v3704_v16, %s6583_s22  ;;  %646 = vrot.lane.b32.xlu1 %v3746_v60, %s3106_s16  ;;  %s6592_s16 = smov 32  }
 0x346   : > { %v3764_v11 = vpop.permute.xlu0 %1664  ;;  %v3766_v12 = vpop.permute.xlu1 %1479 }
 0x347   : > { %6584 = vst [vmem:[#allocation41_spill] sm:$0xff] %v3764_v11  ;;  %6585 = vst [vmem:[#allocation42_spill] sm:$0xff] %v3766_v12 }
 0x348   : > { %924 = vrot.lane.b32.xlu0 %v3704_v16, %s6586_s17  ;;  %686 = vrot.lane.b32.xlu1 %v3746_v60, %s3102_s15  ;;  %s6595_s15 = smov 31  }
 0x34a   : > { %v3772_v15 = vpop.permute.xlu0 %1704  ;;  %v3774_v21 = vpop.permute.xlu1 %1519 }
 0x34b   : > { %6587 = vst [vmem:[#allocation43_spill] sm:$0xff] %v3772_v15  ;;  %6588 = vst [vmem:[#allocation44_spill] sm:$0xff] %v3774_v21 }
 0x34c   : > { %964 = vrot.lane.b32.xlu0 %v3704_v16, %s6589_s13  ;;  %726 = vrot.lane.b32.xlu1 %v3746_v60, %s3104_s21  ;;  %s6598_s21 = smov 30  }
 0x34e   : > { %v3780_v24 = vpop.permute.xlu0 %1744  ;;  %v3782_v28 = vpop.permute.xlu1 %1586 }
 0x34f   : > { %6590 = vst [vmem:[#allocation45_spill] sm:$0xff] %v3780_v24  ;;  %6591 = vst [vmem:[#allocation46_spill] sm:$0xff] %v3782_v28 }
 0x350   : > { %1004 = vrot.lane.b32.xlu0 %v3704_v16, %s6592_s16  ;;  %766 = vrot.lane.b32.xlu1 %v3746_v60, %s3105_s27  ;;  %s6601_s27 = smov 29  }
 0x352   : > { %v3788_v31 = vpop.permute.xlu0 %1784  ;;  %v3790_v25 = vpop.permute.xlu1 %1626 }
 0x353   : > { %6593 = vst [vmem:[#allocation47_spill] sm:$0xff] %v3788_v31  ;;  %6594 = vst [vmem:[#allocation48_spill] sm:$0xff] %v3790_v25 }
 0x354   : > { %1044 = vrot.lane.b32.xlu0 %v3704_v16, %s6595_s15  ;;  %806 = vrot.lane.b32.xlu1 %v3746_v60, %s6576_s10  ;;  %s6604_s10 = smov 19  }
 0x356   : > { %v3796_v18 = vpop.permute.xlu0 %1824  ;;  %v3798_v17 = vpop.permute.xlu1 %1666 }
 0x357   : > { %6596 = vst [vmem:[#allocation49_spill] sm:$0xff] %v3796_v18  ;;  %6597 = vst [vmem:[#allocation50_spill] sm:$0xff] %v3798_v17  ;;  %v3963_v17 = vsub.s32 1, %v3414_v32 }
 0x358   : > { %1084 = vrot.lane.b32.xlu0 %v3704_v16, %s6598_s21  ;;  %846 = vrot.lane.b32.xlu1 %v3746_v60, %s6580_s1  ;;  %s6607_s1 = smov 18  }
 0x35a   : > { %v3804_v24 = vpop.permute.xlu0 %1864  ;;  %v3806_v31 = vpop.permute.xlu1 %1706 }
 0x35b   : > { %6599 = vst [vmem:[#allocation51_spill] sm:$0xff] %v3804_v24  ;;  %6600 = vst [vmem:[#allocation52_spill] sm:$0xff] %v3806_v31 }
 0x35c   : > { %1124 = vrot.lane.b32.xlu0 %v3704_v16, %s6601_s27  ;;  %886 = vrot.lane.b32.xlu1 %v3746_v60, %s6583_s22  ;;  %s6610_s22 = smov 17  }
 0x35e   : > { %v3812_v15 = vpop.permute.xlu0 %1904  ;;  %v3814_v18 = vpop.permute.xlu1 %1746 }
 0x35f   : > { %6602 = vst [vmem:[#allocation53_spill] sm:$0xff] %v3812_v15  ;;  %6603 = vst [vmem:[#allocation54_spill] sm:$0xff] %v3814_v18 }
 0x360   : > { %1164 = vrot.lane.b32.xlu0 %v3704_v16, %s6604_s10  ;;  %926 = vrot.lane.b32.xlu1 %v3746_v60, %s6586_s17  ;;  %s6613_s17 = smov 16  }
 0x362   : > { %v3820_v11 = vpop.permute.xlu0 %1944  ;;  %v3822_v24 = vpop.permute.xlu1 %1786 }
 0x363   : > { %6605 = vst [vmem:[#allocation55_spill] sm:$0xff] %v3820_v11  ;;  %6606 = vst [vmem:[#allocation56_spill] sm:$0xff] %v3822_v24 }
 0x364   : > { %1204 = vrot.lane.b32.xlu0 %v3704_v16, %s6607_s1  ;;  %966 = vrot.lane.b32.xlu1 %v3746_v60, %s6589_s13  ;;  %s6616_s13 = smov 15  }
 0x366   : > { %v3828_v31 = vpop.permute.xlu0 %1984  ;;  %v3830_v15 = vpop.permute.xlu1 %1826 }
 0x367   : > { %6608 = vst [vmem:[#allocation57_spill] sm:$0xff] %v3828_v31  ;;  %6609 = vst [vmem:[#allocation58_spill] sm:$0xff] %v3830_v15 }
 0x368   : > { %1244 = vrot.lane.b32.xlu0 %v3704_v16, %s6610_s22  ;;  %1006 = vrot.lane.b32.xlu1 %v3746_v60, %s6592_s16  ;;  %s6619_s16 = smov 14  }
 0x36a   : > { %v3836_v18 = vpop.permute.xlu0 %2024  ;;  %v3838_v11 = vpop.permute.xlu1 %1866 }
 0x36b   : > { %6611 = vst [vmem:[#allocation59_spill] sm:$0xff] %v3836_v18  ;;  %6612 = vst [vmem:[#allocation60_spill] sm:$0xff] %v3838_v11 }
 0x36c   : > { %1284 = vrot.lane.b32.xlu0 %v3704_v16, %s6613_s17  ;;  %1046 = vrot.lane.b32.xlu1 %v3746_v60, %s6595_s15  ;;  %s6622_s15 = smov 13  }
 0x36e   : > { %v3844_v24 = vpop.permute.xlu0 %2064  ;;  %v3846_v31 = vpop.permute.xlu1 %1906 }
 0x36f   : > { %6614 = vst [vmem:[#allocation61_spill] sm:$0xff] %v3844_v24  ;;  %6615 = vst [vmem:[#allocation62_spill] sm:$0xff] %v3846_v31 }
 0x370   : > { %1324 = vrot.lane.b32.xlu0 %v3704_v16, %s6616_s13  ;;  %1086 = vrot.lane.b32.xlu1 %v3746_v60, %s6598_s21  ;;  %s6625_s21 = smov 3  }
 0x372   : > { %v3852_v15 = vpop.permute.xlu0 %2104  ;;  %v3854_v18 = vpop.permute.xlu1 %1946 }
 0x373   : > { %6617 = vst [vmem:[#allocation63_spill] sm:$0xff] %v3852_v15  ;;  %6618 = vst [vmem:[#allocation64_spill] sm:$0xff] %v3854_v18 }
 0x374   : > { %1364 = vrot.lane.b32.xlu0 %v3704_v16, %s6619_s16  ;;  %1126 = vrot.lane.b32.xlu1 %v3746_v60, %s6601_s27  ;;  %s6628_s27 = smov 2  }
 0x376   : > { %v3860_v11 = vpop.permute.xlu0 %2144  ;;  %v3862_v24 = vpop.permute.xlu1 %1986 }
 0x377   : > { %6620 = vst [vmem:[#allocation65_spill] sm:$0xff] %v3860_v11  ;;  %6621 = vst [vmem:[#allocation66_spill] sm:$0xff] %v3862_v24 }
 0x378   : > { %1404 = vrot.lane.b32.xlu0 %v3704_v16, %s6622_s15  ;;  %1166 = vrot.lane.b32.xlu1 %v3746_v60, %s6604_s10  ;;  %s6631_s10 = smov 1  }
 0x37a   : > { %v3868_v31 = vpop.permute.xlu0 %2184  ;;  %v3870_v15 = vpop.permute.xlu1 %2026 }
 0x37b   : > { %6623 = vst [vmem:[#allocation67_spill] sm:$0xff] %v3868_v31  ;;  %6624 = vst [vmem:[#allocation68_spill] sm:$0xff] %v3870_v15 }
 0x37c   : > { %1444 = vrot.lane.b32.xlu0 %v3704_v16, %s6625_s21  ;;  %1206 = vrot.lane.b32.xlu1 %v3746_v60, %s6607_s1  ;;  %s6636_s1 = smov 126  }
 0x37e   : > { %v3876_v18 = vpop.permute.xlu0 %2224  ;;  %v3878_v11 = vpop.permute.xlu1 %2066 }
 0x37f   : > { %6626 = vst [vmem:[#allocation69_spill] sm:$0xff] %v3876_v18  ;;  %6627 = vst [vmem:[#allocation70_spill] sm:$0xff] %v3878_v11 }
 0x380   : > { %1484 = vrot.lane.b32.xlu0 %v3704_v16, %s6628_s27  ;;  %1246 = vrot.lane.b32.xlu1 %v3746_v60, %s6610_s22  ;;  %s3908_s22 = sld [smem:[#allocation9 + $0x49]] }
 0x382   : > { %v3884_v24 = vpop.permute.xlu0 %2264  ;;  %v3886_v31 = vpop.permute.xlu1 %2106 }
 0x383   : > { %6629 = vst [vmem:[#allocation71_spill] sm:$0xff] %v3884_v24  ;;  %6630 = vst [vmem:[#allocation72_spill] sm:$0xff] %v3886_v31 }
 0x384   : > { %1524 = vrot.lane.b32.xlu0 %v3704_v16, %s6631_s10  ;;  %1286 = vrot.lane.b32.xlu1 %v3746_v60, %s6613_s17  ;;  %s3914_s17 = sld [smem:[#allocation9 + $0x18]] }
 0x386   : > { %v3892_v15 = vpop.permute.xlu0 %2304  ;;  %v3894_v18 = vpop.permute.xlu1 %2146 }
 0x387   : > { %6632 = vst [vmem:[#allocation73_spill] sm:$0xff] %v3892_v15  ;;  %6633 = vst [vmem:[#allocation74_spill] sm:$0xff] %v3894_v18 }
 0x388   : > { %1591 = vrot.lane.b32.xlu0 %v3704_v16, %s6394_s28  ;;  %1326 = vrot.lane.b32.xlu1 %v3746_v60, %s6616_s13  ;;  %s6639_s13 = smov 125   ;;  %s3926_s28 = sld [smem:[#allocation9 + $0x3]] }
 0x38a   : > { %v3900_v11 = vpop.permute.xlu0 %2344  ;;  %v3902_v24 = vpop.permute.xlu1 %2186  ;;  %v1561_v31 = vstv %s3914_s17  ;;  %s3978_s17 = sld [smem:[#allocation9 + $0x10]] }
 0x38b   : > { %6634 = vst [vmem:[#allocation75_spill] sm:$0xff] %v3900_v11  ;;  %6635 = vst [vmem:[#allocation76_spill] sm:$0xff] %v3902_v24  ;;  %v1560_v24 = vld [vmem:[#allocation7 + $0x30] ss:$8 sm:$0x3]  ;;  %v1563_v32 = vmul.f32 %v1561_v31, %v3450_v1 }
 0x38c   : > { %1631 = vrot.lane.b32.xlu0 %v3704_v16, %s6636_s1  ;;  %1366 = vrot.lane.b32.xlu1 %v3746_v60, %s6619_s16  ;;  %s3924_s16 = sld [smem:[#allocation9 + $0x2]]  ;;  %v1577_v1 = vrot.slane %v1560_v24, %v3963_v17 }
 0x38e   : > { %v3910_v15 = vpop.permute.xlu0 %2384  ;;  %v3912_v18 = vpop.permute.xlu1 %2226  ;;  %6642 = sst [smem:[#allocation81_spill]] %s3926_s28  ;;  %s6666_s28 = smov 112  }
 0x38f   : > { %6637 = vst [vmem:[#allocation77_spill] sm:$0xff] %v3910_v15  ;;  %6638 = vst [vmem:[#allocation78_spill] sm:$0xff] %v3912_v18  ;;  %v1564_v18 = vstv %s3908_s22  ;;  %s3968_s22 = sld [smem:[#allocation9 + $0xf]] }
 0x390   : > { %1671 = vrot.lane.b32.xlu0 %v3704_v16, %s6639_s13  ;;  %1406 = vrot.lane.b32.xlu1 %v3746_v60, %s6622_s15  ;;  %s3938_s15 = sld [smem:[#allocation9 + $0x7]]  ;;  %v1566_v7 = vmul.f32 %v1564_v18, %v3746_v60 }
 0x391   : > { %s4036_s13 = sld [smem:[#allocation9 + $0x1f]] }
 0x392   : > { %6641 = sst [smem:[#allocation80_spill]] %s3924_s16  ;;  %v3928_v15 = vpop.permute.xlu0 %2424  ;;  %v3930_v11 = vpop.permute.xlu1 %2266  ;;  %s4029_s16 = sld [smem:[#allocation9 + $0x1e]] }
 0x393   : > { %6643 = vst [vmem:[#allocation82_spill] sm:$0xff] %v3928_v15  ;;  %6644 = vst [vmem:[#allocation83_spill] sm:$0xff] %v3930_v11  ;;  %s6683_s30 = sld [smem:[#allocation80_spill]] }
 0x394   : > { %1711 = vrot.lane.b32.xlu0 %v3704_v16, %s6646_s4  ;;  %1446 = vrot.lane.b32.xlu1 %v3746_v60, %s6625_s21  ;;  %s3966_s21 = sld [smem:[#allocation9 + $0xe]]  ;;  %s4027_s4 = sld [smem:[#allocation9 + $0x1d]] }
 0x396   : > { %v3953_v15 = vpop.permute.xlu0 %2464  ;;  %v3955_v11 = vpop.permute.xlu1 %2306 }
 0x397   : > { %6648 = vst [vmem:[#allocation86_spill] sm:$0xff] %v3953_v15  ;;  %6649 = vst [vmem:[#allocation87_spill] sm:$0xff] %v3955_v11  ;;  %v1565_v15 = vmul.f32 %v1564_v18, %v3704_v16  ;;  %v6653_v11 = vlaneseq  ;;  %v1562_v18 = vmul.f32 %v1561_v31, %v3444_v0  ;;  %v1573_v0 = vrot.slane %v1560_v24, %v3417_v36  ;;  %6664 = sst [smem:[#allocation99_spill]] %s4036_s13  ;;  %s6695_s13 = smov 115  }
 0x398   : > { %1751 = vrot.lane.b32.xlu0 %v3704_v16, %s6652_s24  ;;  %1486 = vrot.lane.b32.xlu1 %v3746_v60, %s6628_s27  ;;  %s3992_s27 = sld [smem:[#allocation9 + $0x14]]  ;;  %s4010_s24 = sld [smem:[#allocation9 + $0x1a]] }
 0x399   : > { %v3976_v25 = vand.u32 127, %v6653_v11  ;;  %v1568_v11 = vadd.f32 %v1566_v7, %v1563_v32  ;;  %v1567_v31 = vadd.f32 %v1565_v15, %v1562_v18  ;;  %6662 = sst [smem:[#allocation97_spill]] %s4029_s16  ;;  %s6680_s16 = smov 125  }
 0x39a   : > { %6651 = sst [smem:[#allocation89_spill]] %s3966_s21  ;;  %v3987_v63 = vpop.permute.xlu0 %2504  ;;  %v3989_v28 = vpop.permute.xlu1 %2346  ;;  %s4073_s21 = sld [smem:[#allocation9 + $0x24]] }
 0x39b   : > { %6654 = vst [vmem:[#allocation90_spill] sm:$0xff] %v3987_v63  ;;  %6655 = vst [vmem:[#allocation91_spill] sm:$0xff] %v3989_v28  ;;  %vm602_vm3 = vcmp.lt.s32.totalorder %v3976_v25, 51  ;;  %vm641_vm4 = vcmp.lt.s32.totalorder %v3976_v25, 50  ;;  %vm681_vm5 = vcmp.lt.s32.totalorder %v3976_v25, 49  ;;  %vm721_vm6 = vcmp.lt.s32.totalorder %v3976_v25, 48 }
 0x39c   : > { %1791 = vrot.lane.b32.xlu0 %v3704_v16, %s6657_s19  ;;  %1526 = vrot.lane.b32.xlu1 %v3746_v60, %s6631_s10  ;;  %s4016_s10 = sld [smem:[#allocation9 + $0x1b]]  ;;  %s4018_s19 = sld [smem:[#allocation9 + $0x1c]]  ;;  %v4031_v63 = vmul.f32 %v1577_v1, %v1568_v11  ;;  %vm761_vm7 = vcmp.lt.s32.totalorder %v3976_v25, 47  ;;  %v4044_v11 = vmul.f32 %v1573_v0, %v1567_v31  ;;  %vm801_vm8 = vcmp.lt.s32.totalorder %v3976_v25, 46 }
 0x39d   : > { %vm841_vm9 = vcmp.lt.s32.totalorder %v3976_v25, 45  ;;  %vm881_vm10 = vcmp.lt.s32.totalorder %v3976_v25, 35  ;;  %v604_v21 = vsel %vm602_vm3, %v3574_v37, %v3566_v34  ;;  %vm921_vm11 = vcmp.lt.s32.totalorder %v3976_v25, 34 }
 0x39e   : > { %6659 = sst [smem:[#allocation94_spill]] %s4010_s24  ;;  %v4020_v15 = vpop.permute.xlu0 %644  ;;  %v4022_v24 = vpop.permute.xlu1 %2386  ;;  %6663 = vst [vmem:[#allocation98_spill] sm:$0xff] %v4031_v63  ;;  %6668 = vst [vmem:[#allocation101_spill] sm:$0xff] %v4044_v11  ;;  %v603_v63 = vsel %vm602_vm3, %v3566_v34, %v3574_v37  ;;  %vm961_vm12 = vcmp.lt.s32.totalorder %v3976_v25, 33  ;;  %v643_v34 = vsel %vm641_vm4, %v3590_v41, %v3582_v39  ;;  %s4108_s24 = sld [smem:[#allocation9 + $0x26]]  ;;  %v642_v7 = vsel %vm641_vm4, %v3582_v39, %v3590_v41 }
 0x39f   : > { %6661 = vst [vmem:[#allocation96_spill] sm:$0xff] %v4022_v24  ;;  %vm1001_vm13 = vcmp.lt.s32.totalorder %v3976_v25, 32  ;;  %v6681_v1 = vstv %s3920_s20  ;;  %v682_v39 = vsel %vm681_vm5, %v3564_v33, %v3598_v43  ;;  %v683_v41 = vsel %vm681_vm5, %v3598_v43, %v3564_v33  ;;  %s4150_s20 = sld [smem:[#allocation9 + $0x28]] }
 0x3a0   : > { %1831 = vrot.lane.b32.xlu0 %v3704_v16, %s6666_s28  ;;  %1593 = vrot.lane.b32.xlu1 %v3746_v60, %s6667_s0  ;;  %s4055_s28 = sld [smem:[#allocation9 + $0x21]]  ;;  %s4057_s0 = sld [smem:[#allocation9 + $0x22]]  ;;  %v4125_v28 = vmul.f32 %v6681_v1, %v604_v21  ;;  %v6682_v37 = vmov %v6681_v1  ;;  %vm1041_vm14 = vcmp.lt.s32.totalorder %v3976_v25, 31  ;;  %v763_v1 = vsel %vm761_vm7, %v3614_v47, %v3580_v38 }
 0x3a1   : > { %vm1081_vm15 = vcmp.lt.s32.totalorder %v3976_v25, 30  ;;  %vm1121_vm0 = vcmp.lt.s32.totalorder %v3976_v25, 29  ;;  %vm1161_vm1 = vcmp.lt.s32.totalorder %v3976_v25, 19  ;;  %vm1201_vm2 = vcmp.lt.s32.totalorder %v3976_v25, 18 }
 0x3a2   : > { %6660 = sst [smem:[#allocation95_spill]] %s4016_s10  ;;  %v4059_v0 = vpop.permute.xlu0 %684  ;;  %v4061_v31 = vpop.permute.xlu1 %2426  ;;  %s4117_s10 = sld [smem:[#allocation9 + $0x27]] }
 0x3a3   : > { %6671 = vst [vmem:[#allocation104_spill] sm:$0xff] %v4061_v31  ;;  %v4129_v31 = vmul.f32 %v6682_v37, %v603_v63  ;;  %v723_v63 = vsel %vm721_vm6, %v3606_v45, %v3572_v35 }
 0x3a4   : > { %1871 = vrot.lane.b32.xlu0 %v3704_v16, %s6673_s25  ;;  %1633 = vrot.lane.b32.xlu1 %v3746_v60, %s6636_s1  ;;  %s4095_s1 = sld [smem:[#allocation9 + $0x25]]  ;;  %6677 = sst [smem:[#allocation79_spill]] %s4108_s24 }
 0x3a5   : > { %6685 = sst [smem:[#allocation80_spill]] %s4150_s20  ;;  %s6716_s20 = smov 113  }
 0x3a6   : > { %6669 = sst [smem:[#allocation102_spill]] %s4055_s28  ;;  %v4097_v24 = vpop.permute.xlu0 %724  ;;  %v4099_v32 = vpop.permute.xlu1 %2466  ;;  %s6694_s28 = smov 109  }
 0x3a7   : > { %6670 = sst [smem:[#allocation103_spill]] %s4057_s0  ;;  %6675 = vst [vmem:[#allocation107_spill] sm:$0xff] %v4099_v32  ;;  %v6684_v32 = vstv %s6676_s11  ;;  %s6691_s11 = sld [smem:[#allocation84_spill]] }
 0x3a8   : > { %6678 = sst [smem:[#allocation108_spill]] %s4117_s10  ;;  %1911 = vrot.lane.b32.xlu0 %v3704_v16, %s6679_s18  ;;  %1673 = vrot.lane.b32.xlu1 %v3746_v60, %s6680_s16  ;;  %v4141_v18 = vmul.f32 %v6684_v32, %v643_v34  ;;  %v6688_v43 = vmov %v6684_v32  ;;  %v722_v34 = vsel %vm721_vm6, %v3572_v35, %v3606_v45  ;;  %s4170_s0 = sld [smem:[#allocation9 + $0x29]]  ;;  %v762_v35 = vsel %vm761_vm7, %v3580_v38, %v3614_v47 }
 0x3a9   : > { %s6686_s16 = sld [smem:[#allocation81_spill]]  ;;  %v4158_v32 = vmul.f32 %v6688_v43, %v642_v7  ;;  %6693 = sst [smem:[#allocation84_spill]] %s4186_s8  ;;  %v802_v38 = vsel %vm801_vm8, %v3588_v40, %v3622_v49  ;;  %v803_v47 = vsel %vm801_vm8, %v3622_v49, %v3588_v40  ;;  %v842_v40 = vsel %vm841_vm9, %v3596_v42, %v3630_v51 }
 0x3aa   : > { %6674 = sst [smem:[#allocation106_spill]] %s4095_s1  ;;  %v4152_v37 = vpop.permute.xlu0 %764  ;;  %v4154_v33 = vpop.permute.xlu1 %2506  ;;  %s4341_s8 = sld [smem:[#allocation9 + $0x30]] }
 0x3ab   : > { %6687 = vst [vmem:[#allocation109_spill] sm:$0xff] %v4154_v33  ;;  %v6690_v33 = vstv %s6683_s30  ;;  %s4209_s30 = sld [smem:[#allocation9 + $0x2b]]  ;;  %s6727_s10 = smov 97  }
 0x3ac   : > { %v4174_v7 = vmul.f32 %v6690_v33, %v683_v41  ;;  %v6692_v43 = vmov %v6690_v33  ;;  %1951 = vrot.lane.b32.xlu0 %v3704_v16, %s6694_s28  ;;  %1713 = vrot.lane.b32.xlu1 %v3746_v60, %s6695_s13  ;;  %v843_v33 = vsel %vm841_vm9, %v3630_v51, %v3596_v42  ;;  %v6701_v51 = vstv %s3934_s2  ;;  %s4252_s13 = sld [smem:[#allocation9 + $0x2c]]  ;;  %s4275_s2 = sld [smem:[#allocation9 + $0x2d]] }
 0x3ad   : > { %v4178_v11 = vmul.f32 %v6692_v43, %v682_v39  ;;  %s6728_s24 = sld [smem:[#allocation89_spill]]  ;;  %s4394_s1 = sld [smem:[#allocation9 + $0x34]] }
 0x3ae   : > { %6689 = sst [smem:[#allocation81_spill]] %s4170_s0  ;;  %v4224_v21 = vpop.permute.xlu0 %804  ;;  %v606_v56 = vpop.permute.xlu1 %605  ;;  %s6715_s0 = smov 98  }
 0x3af   : > { %v6696_v39 = vstv %s6686_s16  ;;  %s6705_s16 = smov 99  }
 0x3b0   : > { %v4194_v41 = vmul.f32 %v6696_v39, %v723_v63  ;;  %v6698_v63 = vmov %v6696_v39  ;;  %v6699_v39 = vstv %s6691_s11  ;;  %1991 = vrot.lane.b32.xlu0 %v3704_v16, %s6705_s16  ;;  %s6706_s11 = smov 114  }
 0x3b1   : > { %6697 = sst [smem:[#allocation110_spill]] %s4209_s30  ;;  %v4213_v43 = vmul.f32 %v6698_v63, %v722_v34  ;;  %v4217_v45 = vmul.f32 %v6699_v39, %v763_v1  ;;  %v6700_v29 = vmov %v6699_v39  ;;  %v882_v34 = vsel %vm881_vm10, %v3604_v44, %v3638_v53  ;;  %1753 = vrot.lane.b32.xlu1 %v3746_v60, %s6706_s11  ;;  %s4322_s11 = sld [smem:[#allocation9 + $0x31]] }
 0x3b2   : > { %v4228_v12 = vmul.f32 %v6700_v29, %v762_v35  ;;  %v883_v1 = vsel %vm881_vm10, %v3638_v53, %v3604_v44  ;;  %v4241_v63 = vmul.f32 %v6701_v51, %v803_v47  ;;  %v6702_v39 = vmov %v6701_v51  ;;  %6704 = sst [smem:[#allocation111_spill]] %s4252_s13  ;;  %v608_v10 = vpop.permute.xlu1 %607  ;;  %s6722_s30 = sld [smem:[#allocation88_spill]] }
 0x3b3   : > { %v4245_v29 = vmul.f32 %v6702_v39, %v802_v38  ;;  %v6703_v35 = vstv %s3936_s3  ;;  %v922_v38 = vsel %vm921_vm11, %v3612_v46, %v3646_v55  ;;  %v923_v47 = vsel %vm921_vm11, %v3646_v55, %v3612_v46  ;;  %s4290_s3 = sld [smem:[#allocation9 + $0x2e]]  ;;  %s4411_s13 = sld [smem:[#allocation9 + $0x35]] }
 0x3b4   : > { %v4249_v49 = vmul.f32 %v6703_v35, %v843_v33  ;;  %v6707_v44 = vmov %v6703_v35  ;;  %v963_v33 = vsel %vm961_vm12, %v3656_v59, %v3620_v48  ;;  %v962_v46 = vsel %vm961_vm12, %v3620_v48, %v3656_v59  ;;  %2031 = vrot.lane.b32.xlu0 %v3704_v16, %s6715_s0 }
 0x3b5   : > { %v4260_v53 = vmul.f32 %v6707_v44, %v842_v40  ;;  %v6708_v40 = vstv %s3938_s15  ;;  %v4292_v44 = vpop.permute.xlu0 %844  ;;  %s4299_s15 = sld [smem:[#allocation9 + $0x2f]]  ;;  %v4303_v48 = vsel %vm602_vm3, %v606_v56, %v608_v10  ;;  %v4307_v59 = vsel %vm602_vm3, %v608_v10, %v606_v56  ;;  %1793 = vrot.lane.b32.xlu1 %v3746_v60, %s6716_s20  ;;  %s4343_s20 = sld [smem:[#allocation9 + $0x32]] }
 0x3b6   : > { %v4279_v51 = vmul.f32 %v6708_v40, %v883_v1  ;;  %v6709_v39 = vmov %v6708_v40  ;;  %v1003_v1 = vsel %vm1001_vm13, %v3664_v62, %v3628_v50  ;;  %v6710_v40 = vstv %s3945_s5  ;;  %s6719_s5 = sld [smem:[#allocation85_spill]] }
 0x3b7   : > { %v4283_v35 = vmul.f32 %v6709_v39, %v882_v34  ;;  %v4311_v39 = vmul.f32 %v6710_v40, %v923_v47  ;;  %v6711_v55 = vmov %v6710_v40  ;;  %v4319_v4 = vmul.f32 %v6713_v26, %v963_v33 }
 0x3b8   : > { %v4315_v42 = vmul.f32 %v6711_v55, %v922_v38  ;;  %v6717_v56 = vmov %v6713_v26  ;;  %v1002_v38 = vsel %vm1001_vm13, %v3628_v50, %v3664_v62  ;;  %v1043_v26 = vsel %vm1041_vm14, %v3672_v3, %v3636_v52  ;;  %2071 = vrot.lane.b32.xlu0 %v3704_v16, %s6727_s10 }
 0x3b9   : > { %6714 = vst [vmem:[#allocation113_spill] sm:$0xff] %v4319_v4  ;;  %v4330_v10 = vmul.f32 %v6717_v56, %v962_v46  ;;  %v6720_v33 = vstv %s3949_s7  ;;  %v1042_v50 = vsel %vm1041_vm14, %v3636_v52, %v3672_v3  ;;  %v1082_v62 = vsel %vm1081_vm15, %v3644_v54, %v3680_v6  ;;  %v4361_v40 = vpop.permute.xlu0 %884  ;;  %s6733_s7 = smov 112  }
 0x3ba   : > { %6712 = vst [vmem:[#allocation112_spill] sm:$0xff] %v4315_v42  ;;  %v4347_v46 = vmul.f32 %v6720_v33, %v1003_v1  ;;  %v1083_v55 = vsel %vm1081_vm15, %v3680_v6, %v3644_v54  ;;  %v647_v1 = vpop.permute.xlu1 %646  ;;  %v1122_v52 = vsel %vm1121_vm0, %v3654_v58, %v3688_v9  ;;  %v1123_v3 = vsel %vm1121_vm0, %v3688_v9, %v3654_v58 }
 0x3bb   : > { %6718 = vst [vmem:[#allocation114_spill] sm:$0xff] %v4330_v10  ;;  %v648_v54 = vsel %vm641_vm4, %v4020_v15, %v647_v1  ;;  %v649_v6 = vsel %vm641_vm4, %v647_v1, %v4020_v15  ;;  %v6723_v56 = vmov %v6720_v33  ;;  %v1163_v58 = vsel %vm1161_vm1, %v3698_v14, %v3662_v61  ;;  %1833 = vrot.lane.b32.xlu1 %v3746_v60, %s6733_s7  ;;  %s4738_s7 = sld [smem:[#allocation9 + $0x3e]] }
 0x3bc   : > { %6721 = vst [vmem:[#allocation115_spill] sm:$0xff] %v4347_v46  ;;  %v4381_v33 = vmul.f32 %v6723_v56, %v1002_v38  ;;  %v6725_v47 = vstv %s6719_s5  ;;  %v6731_v38 = vstv %s3958_s9  ;;  %s4430_s5 = sld [smem:[#allocation9 + $0x36]]  ;;  %s6744_s9 = smov 96   ;;  %v737_v46 = vstv %s4394_s1 }
 0x3bd   : > { %v4385_v34 = vmul.f32 %v6725_v47, %v1043_v26  ;;  %v6729_v15 = vmov %v6725_v47  ;;  %v4402_v56 = vmul.f32 %v6731_v38, %v1083_v55  ;;  %v1162_v26 = vsel %vm1161_vm1, %v3662_v61, %v3698_v14  ;;  %v4428_v61 = vpop.permute.xlu0 %924  ;;  %2111 = vrot.lane.b32.xlu0 %v3704_v16, %s6744_s9  ;;  %s4560_s1 = sld [smem:[#allocation9 + $0x39]] }
 0x3be   : > { %6724 = vst [vmem:[#allocation116_spill] sm:$0xff] %v4381_v33  ;;  %v4398_v1 = vmul.f32 %v6729_v15, %v1042_v50  ;;  %v6734_v9 = vmov %v6731_v38  ;;  %v6736_v50 = vstv %s6722_s30  ;;  %v687_v14 = vpop.permute.xlu1 %686  ;;  %v6740_v47 = vstv %s6728_s24  ;;  %s4466_s30 = sld [smem:[#allocation9 + $0x37]]  ;;  %s4487_s24 = sld [smem:[#allocation9 + $0x38]]  ;;  %v4514_v33 = vld [vmem:[#allocation7 + $0x6] ss:$8 sm:$0x3] }
 0x3bf   : > { %6726 = vst [vmem:[#allocation117_spill] sm:$0xff] %v4385_v34  ;;  %6732 = vst [vmem:[#allocation119_spill] sm:$0xff] %v4402_v56  ;;  %v4415_v22 = vmul.f32 %v6734_v9, %v1082_v62  ;;  %v4419_v15 = vmul.f32 %v6736_v50, %v1123_v3  ;;  %v6738_v55 = vmov %v6736_v50  ;;  %v4434_v62 = vmul.f32 %v6740_v47, %v1163_v58  ;;  %v4437_v3 = vld [vmem:[#allocation7 + $0x1] ss:$8 sm:$0x3] }
 0x3c0   : > { %6730 = vst [vmem:[#allocation118_spill] sm:$0xff] %v4398_v1  ;;  %v4423_v38 = vmul.f32 %v6738_v55, %v1122_v52  ;;  %v4439_v50 = vld [vmem:[#allocation7 + $0x2] ss:$8 sm:$0x3]  ;;  %v688_v52 = vsel %vm681_vm5, %v4059_v0, %v687_v14  ;;  %v689_v55 = vsel %vm681_vm5, %v687_v14, %v4059_v0  ;;  %v6742_v56 = vmov %v6740_v47 }
 0x3c1   : > { %6735 = vst [vmem:[#allocation120_spill] sm:$0xff] %v4415_v22  ;;  %6737 = vst [vmem:[#allocation121_spill] sm:$0xff] %v4419_v15  ;;  %v4455_v58 = vsel %vm1201_vm2, %v3670_v2, %v3708_v20  ;;  %v4461_v47 = vsel %vm1201_vm2, %v3708_v20, %v3670_v2  ;;  %v617_v9 = vstv %s4322_s11  ;;  %v657_v14 = vstv %s4343_s20  ;;  %1873 = vrot.lane.b32.xlu1 %v3746_v60, %s6673_s25  ;;  %v4476_v2 = vld [vmem:[#allocation7 + $0x3] ss:$8 sm:$0x3]  ;;  %v4485_v15 = vpop.permute.xlu0 %964  ;;  %s6746_s25 = smov 95  }
 0x3c2   : > { %6739 = vst [vmem:[#allocation122_spill] sm:$0xff] %v4423_v38  ;;  %6741 = vst [vmem:[#allocation123_spill] sm:$0xff] %v4434_v62  ;;  %v4449_v38 = vmul.f32 %v6742_v56, %v1162_v26  ;;  %v626_v56 = vrot.slane %v4426_v19, %v3417_v36  ;;  %v630_v26 = vrot.slane %v4426_v19, %v3963_v17  ;;  %v697_v0 = vstv %s4363_s6  ;;  %v727_v19 = vpop.permute.xlu1 %726  ;;  %v773_v22 = vld [vmem:[#allocation7 + $0x4] ss:$8 sm:$0x3]  ;;  %s4624_s11 = sld [smem:[#allocation9 + $0x3b]] }
 0x3c3   : > { %v666_v20 = vrot.slane %v4437_v3, %v3417_v36  ;;  %6745 = vst [vmem:[#allocation125_spill] sm:$0xff] %v4485_v15  ;;  %v618_v57 = vmul.f32 %v617_v9, %v4307_v59  ;;  %v619_v1 = vmul.f32 %v617_v9, %v4303_v48  ;;  %v4494_v34 = vsel %vm721_vm6, %v4097_v24, %v727_v19  ;;  %v4499_v62 = vld [vmem:[#allocation7 + $0x5] ss:$8 sm:$0x3]  ;;  %s4665_s20 = sld [smem:[#allocation9 + $0x3c]]  ;;  %s4700_s6 = sld [smem:[#allocation9 + $0x3d]] }
 0x3c4   : > { %6743 = vst [vmem:[#allocation124_spill] sm:$0xff] %v4449_v38  ;;  %v670_v38 = vrot.slane %v4437_v3, %v3963_v17  ;;  %v729_v3 = vsel %vm721_vm6, %v727_v19, %v4097_v24  ;;  %2151 = vrot.lane.b32.xlu0 %v3704_v16, %s6746_s25  ;;  %v658_v9 = vmul.f32 %v657_v14, %v649_v6  ;;  %v777_v24 = vstv %s4411_s13  ;;  %s6750_s13 = smov 83  }
 0x3c5   : > { %v659_v30 = vmul.f32 %v657_v14, %v648_v54  ;;  %1913 = vrot.lane.b32.xlu1 %v3746_v60, %s6679_s18  ;;  %v786_v19 = vrot.slane %v773_v22, %v3417_v36  ;;  %v4516_v13 = vpop.permute.xlu0 %1004  ;;  %v790_v59 = vrot.slane %v773_v22, %v3963_v17  ;;  %v817_v48 = vstv %s4430_s5  ;;  %s6748_s18 = smov 94   ;;  %s6776_s5 = smov 78  }
 0x3c6   : > { %6747 = vst [vmem:[#allocation126_spill] sm:$0xff] %v4516_v13  ;;  %v767_v10 = vpop.permute.xlu1 %766  ;;  %v826_v4 = vrot.slane %v4499_v62, %v3417_v36  ;;  %v830_v54 = vrot.slane %v4499_v62, %v3963_v17  ;;  %v620_v6 = vadd.f32 %v618_v57, %v4125_v28  ;;  %v621_v14 = vadd.f32 %v619_v1, %v4129_v31 }
 0x3c7   : > { %v768_v27 = vsel %vm761_vm7, %v4152_v37, %v767_v10  ;;  %v769_v22 = vsel %vm761_vm7, %v767_v10, %v4152_v37  ;;  %v857_v15 = vstv %s4466_s30  ;;  %v660_v28 = vadd.f32 %v658_v9, %v4141_v18  ;;  %s4814_s30 = sld [smem:[#allocation9 + $0x40]] }
 0x3c8   : > { %v778_v13 = vmul.f32 %v777_v24, %v769_v22  ;;  %v779_v8 = vmul.f32 %v777_v24, %v768_v27  ;;  %2191 = vrot.lane.b32.xlu0 %v3704_v16, %s6748_s18  ;;  %v661_v31 = vadd.f32 %v659_v30, %v4158_v32  ;;  %v698_v1 = vmul.f32 %v697_v0, %v689_v55 }
 0x3c9   : > { %v699_v62 = vmul.f32 %v697_v0, %v688_v52  ;;  %1953 = vrot.lane.b32.xlu1 %v3746_v60, %s6694_s28  ;;  %v4543_v10 = vpop.permute.xlu0 %1044  ;;  %v870_v22 = vrot.slane %v4514_v33, %v3963_v17  ;;  %v897_v57 = vstv %s4487_s24  ;;  %v633_v42 = vmul.f32 %v626_v56, %v620_v6  ;;  %s6749_s28 = smov 93   ;;  %s4921_s24 = sld [smem:[#allocation9 + $0x43]] }
 0x3ca   : > { %v780_v37 = vadd.f32 %v778_v13, %v4217_v45  ;;  %v781_v27 = vadd.f32 %v779_v8, %v4228_v12  ;;  %v807_v24 = vpop.permute.xlu1 %806  ;;  %v634_v18 = vmul.f32 %v630_v26, %v621_v14  ;;  %v673_v52 = vmul.f32 %v666_v20, %v660_v28 }
 0x3cb   : > { %v808_v30 = vsel %vm801_vm8, %v4224_v21, %v807_v24  ;;  %v809_v32 = vsel %vm801_vm8, %v807_v24, %v4224_v21  ;;  %v674_v55 = vmul.f32 %v670_v38, %v661_v31  ;;  %v700_v0 = vadd.f32 %v698_v1, %v4174_v7 }
 0x3cc   : > { %v793_v13 = vmul.f32 %v786_v19, %v780_v37  ;;  %v794_v45 = vmul.f32 %v790_v59, %v781_v27  ;;  %v818_v8 = vmul.f32 %v817_v48, %v809_v32  ;;  %v819_v12 = vmul.f32 %v817_v48, %v808_v30  ;;  %2231 = vrot.lane.b32.xlu0 %v3704_v16, %s6749_s28  ;;  %v893_v48 = vld [vmem:[#allocation7 + $0x7] ss:$8 sm:$0x3]  ;;  %v933_v37 = vld [vmem:[#allocation7 + $0x10] ss:$8 sm:$0x3] }
 0x3cd   : > { %v701_v56 = vadd.f32 %v699_v62, %v4178_v11  ;;  %1993 = vrot.lane.b32.xlu1 %v3746_v60, %s6705_s16  ;;  %vm1241_vm3 = vcmp.lt.s32.totalorder %v3976_v25, 17  ;;  %v4569_v38 = vpop.permute.xlu0 %1084  ;;  %v738_v11 = vmul.f32 %v737_v46, %v729_v3  ;;  %v739_v9 = vmul.f32 %v737_v46, %v4494_v34  ;;  %s4590_s16 = sld [smem:[#allocation9 + $0x3a]] }
 0x3ce   : > { %v4563_v21 = vadd.f32 %v793_v13, %v633_v42  ;;  %v4565_v26 = vadd.f32 %v794_v45, %v634_v18  ;;  %v820_v59 = vadd.f32 %v818_v8, %v4241_v63  ;;  %v821_v20 = vadd.f32 %v819_v12, %v4245_v29  ;;  %v847_v7 = vpop.permute.xlu1 %846 }
 0x3cf   : > { %v848_v19 = vsel %vm841_vm9, %v4292_v44, %v847_v7  ;;  %v849_v42 = vsel %vm841_vm9, %v847_v7, %v4292_v44  ;;  %v6751_v29 = vrot.slane %v4439_v50, %v3417_v36  ;;  %v6752_v34 = vrot.slane %v4439_v50, %v3963_v17 }
 0x3d0   : > { %v833_v6 = vmul.f32 %v826_v4, %v820_v59  ;;  %v834_v14 = vmul.f32 %v830_v54, %v821_v20  ;;  %v858_v63 = vmul.f32 %v857_v15, %v849_v42  ;;  %v859_v28 = vmul.f32 %v857_v15, %v848_v19  ;;  %2271 = vrot.lane.b32.xlu0 %v3704_v16, %s6750_s13  ;;  %v973_v19 = vld [vmem:[#allocation7 + $0x11] ss:$8 sm:$0x3] }
 0x3d1   : > { %v713_v3 = vmul.f32 %v6751_v29, %v700_v0  ;;  %v714_v46 = vmul.f32 %v6752_v34, %v701_v56  ;;  %2033 = vrot.lane.b32.xlu1 %v3746_v60, %s6715_s0  ;;  %v906_v44 = vrot.slane %v893_v48, %v3417_v36  ;;  %v910_v4 = vrot.slane %v893_v48, %v3963_v17  ;;  %v4599_v1 = vpop.permute.xlu0 %1124  ;;  %s6754_s0 = smov 82   ;;  %v6760_v29 = vld [vmem:[#allocation112_spill] sm:$0xff] }
 0x3d2   : > { %vm1281_vm4 = vcmp.lt.s32.totalorder %v3976_v25, 16  ;;  %v4593_v15 = vadd.f32 %v833_v6, %v673_v52  ;;  %v4595_v54 = vadd.f32 %v834_v14, %v674_v55  ;;  %v860_v31 = vadd.f32 %v858_v63, %v4249_v49  ;;  %v887_v62 = vpop.permute.xlu1 %886 }
 0x3d3   : > { %v861_v50 = vadd.f32 %v859_v28, %v4260_v53  ;;  %v740_v27 = vadd.f32 %v738_v11, %v4194_v41  ;;  %v741_v24 = vadd.f32 %v739_v9, %v4213_v43  ;;  %v888_v18 = vsel %vm881_vm10, %v4361_v40, %v887_v62 }
 0x3d4   : > { %v889_v30 = vsel %vm881_vm10, %v887_v62, %v4361_v40  ;;  %v6753_v49 = vrot.slane %v4514_v33, %v3417_v36  ;;  %v899_v45 = vmul.f32 %v897_v57, %v888_v18  ;;  %2311 = vrot.lane.b32.xlu0 %v3704_v16, %s6754_s0  ;;  %v6755_v41 = vstv %s3968_s22  ;;  %s6762_s22 = smov 80  }
 0x3d5   : > { %v874_v32 = vmul.f32 %v870_v22, %v861_v50  ;;  %v898_v13 = vmul.f32 %v897_v57, %v889_v30  ;;  %v4617_v43 = vmul.f32 %v6755_v41, %v4461_v47  ;;  %2073 = vrot.lane.b32.xlu1 %v3746_v60, %s6727_s10  ;;  %v937_v8 = vstv %s4560_s1  ;;  %v4633_v52 = vpop.permute.xlu0 %1164  ;;  %s6758_s10 = smov 81   ;;  %s5096_s1 = sld [smem:[#allocation9 + $0x48]] }
 0x3d6   : > { %v873_v53 = vmul.f32 %v6753_v49, %v860_v31  ;;  %v946_v40 = vrot.slane %v933_v37, %v3417_v36  ;;  %v950_v12 = vrot.slane %v933_v37, %v3963_v17  ;;  %vm1321_vm5 = vcmp.lt.s32.totalorder %v3976_v25, 15  ;;  %v927_v55 = vpop.permute.xlu1 %926 }
 0x3d7   : > { %v4629_v57 = vadd.f32 %v874_v32, %v714_v46  ;;  %v900_v47 = vadd.f32 %v898_v13, %v4279_v51  ;;  %v901_v22 = vadd.f32 %v899_v45, %v4283_v35  ;;  %v6756_v0 = vrot.slane %v4476_v2, %v3417_v36  ;;  %v6766_v32 = vld [vmem:[#allocation32_spill] sm:$0xff] }
 0x3d8   : > { %v4627_v33 = vadd.f32 %v873_v53, %v713_v3  ;;  %v6757_v59 = vrot.slane %v4476_v2, %v3963_v17  ;;  %v928_v7 = vsel %vm921_vm11, %v4428_v61, %v927_v55  ;;  %v929_v51 = vsel %vm921_vm11, %v927_v55, %v4428_v61  ;;  %2351 = vrot.lane.b32.xlu0 %v3704_v16, %s6758_s10  ;;  %v6765_v53 = vld [vmem:[#allocation27_spill] sm:$0xff] }
 0x3d9   : > { %v753_v56 = vmul.f32 %v6756_v0, %v740_v27  ;;  %v913_v35 = vmul.f32 %v906_v44, %v900_v47  ;;  %v914_v48 = vmul.f32 %v910_v4, %v901_v22  ;;  %v938_v11 = vmul.f32 %v937_v8, %v929_v51  ;;  %2113 = vrot.lane.b32.xlu1 %v3746_v60, %s6744_s9  ;;  %v4673_v34 = vpop.permute.xlu0 %1204  ;;  %v6761_v44 = vld [vmem:[#allocation125_spill] sm:$0xff]  ;;  %v6768_v47 = vld [vmem:[#allocation114_spill] sm:$0xff]  ;;  %s4776_s9 = sld [smem:[#allocation9 + $0x3f]] }
 0x3da   : > { %v754_v20 = vmul.f32 %v6757_v59, %v741_v24  ;;  %v939_v9 = vmul.f32 %v937_v8, %v928_v7  ;;  %v6759_v42 = vmov %v6755_v41  ;;  %v1242_v6 = vsel %vm1241_vm3, %v3678_v5, %v3716_v23  ;;  %v1013_v27 = vld [vmem:[#allocation7 + $0x12] ss:$8 sm:$0x3] }
 0x3db   : > { %v4652_v2 = vmul.f32 %v6759_v42, %v4455_v58  ;;  %v1243_v61 = vsel %vm1241_vm3, %v3716_v23, %v3678_v5  ;;  %v977_v14 = vstv %s4590_s16  ;;  %v4667_v63 = vadd.f32 %v913_v35, %v753_v56  ;;  %v967_v5 = vpop.permute.xlu1 %966  ;;  %s5129_s16 = sld [smem:[#allocation9 + $0x4a]] }
 0x3dc   : > { %v4669_v58 = vadd.f32 %v914_v48, %v754_v20  ;;  %v940_v28 = vadd.f32 %v938_v11, %v4311_v39  ;;  %v941_v3 = vadd.f32 %v939_v9, %v6760_v29  ;;  %v986_v23 = vrot.slane %v973_v19, %v3417_v36  ;;  %2391 = vrot.lane.b32.xlu0 %v3704_v16, %s6762_s22  ;;  %v6769_v20 = vld [vmem:[#allocation126_spill] sm:$0xff]  ;;  %v1053_v11 = vld [vmem:[#allocation7 + $0x13] ss:$8 sm:$0x3] }
 0x3dd   : > { %v990_v46 = vrot.slane %v973_v19, %v3963_v17  ;;  %v968_v4 = vsel %vm961_vm12, %v6761_v44, %v967_v5  ;;  %v969_v31 = vsel %vm961_vm12, %v967_v5, %v6761_v44  ;;  %v6763_v24 = vstv %s3978_s17  ;;  %2153 = vrot.lane.b32.xlu1 %v3746_v60, %s6746_s25  ;;  %v4711_v55 = vpop.permute.xlu0 %1244  ;;  %s6770_s17 = smov 79   ;;  %v6774_v5 = vld [vmem:[#allocation115_spill] sm:$0xff]  ;;  %s5028_s25 = sld [smem:[#allocation9 + $0x46]] }
 0x3de   : > { %v953_v50 = vmul.f32 %v946_v40, %v940_v28  ;;  %v954_v39 = vmul.f32 %v950_v12, %v941_v3  ;;  %v978_v62 = vmul.f32 %v977_v14, %v969_v31  ;;  %v979_v37 = vmul.f32 %v977_v14, %v968_v4  ;;  %v6767_v40 = vld [vmem:[#allocation113_spill] sm:$0xff] }
 0x3df   : > { %v4687_v18 = vmul.f32 %v6763_v24, %v1243_v61  ;;  %v6764_v30 = vmov %v6763_v24  ;;  %v1283_v13 = vsel %vm1281_vm4, %v6766_v32, %v6765_v53  ;;  %v1017_v45 = vstv %s4624_s11  ;;  %v1007_v0 = vpop.permute.xlu1 %1006  ;;  %v6773_v61 = vld [vmem:[#allocation34_spill] sm:$0xff]  ;;  %s5163_s11 = sld [smem:[#allocation9 + $0x4b]] }
 0x3e0   : > { %v4691_v49 = vmul.f32 %v6764_v30, %v1242_v6  ;;  %vm1361_vm6 = vcmp.lt.s32.totalorder %v3976_v25, 14  ;;  %v4704_v41 = vadd.f32 %v953_v50, %v4563_v21  ;;  %v4707_v8 = vadd.f32 %v954_v39, %v4565_v26  ;;  %2431 = vrot.lane.b32.xlu0 %v3704_v16, %s6770_s17  ;;  %v6772_v6 = vld [vmem:[#allocation28_spill] sm:$0xff] }
 0x3e1   : > { %v980_v12 = vadd.f32 %v978_v62, %v6767_v40  ;;  %v981_v22 = vadd.f32 %v979_v37, %v6768_v47  ;;  %v1026_v56 = vrot.slane %v1013_v27, %v3417_v36  ;;  %v1030_v59 = vrot.slane %v1013_v27, %v3963_v17  ;;  %2193 = vrot.lane.b32.xlu1 %v3746_v60, %s6748_s18  ;;  %v4749_v4 = vpop.permute.xlu0 %1284  ;;  %v1093_v30 = vld [vmem:[#allocation7 + $0x14] ss:$8 sm:$0x3]  ;;  %s6811_s18 = sld [smem:[#allocation93_spill]] }
 0x3e2   : > { %v1008_v21 = vsel %vm1001_vm13, %v6769_v20, %v1007_v0  ;;  %v1009_v26 = vsel %vm1001_vm13, %v1007_v0, %v6769_v20  ;;  %v1282_v9 = vsel %vm1281_vm4, %v6765_v53, %v6766_v32  ;;  %v6771_v19 = vstv %s3980_s14  ;;  %s6781_s14 = smov 77  }
 0x3e3   : > { %v993_v7 = vmul.f32 %v986_v23, %v980_v12  ;;  %v994_v51 = vmul.f32 %v990_v46, %v981_v22  ;;  %v1018_v35 = vmul.f32 %v1017_v45, %v1009_v26  ;;  %v1019_v48 = vmul.f32 %v1017_v45, %v1008_v21  ;;  %v6775_v46 = vld [vmem:[#allocation116_spill] sm:$0xff]  ;;  %v1047_v31 = vpop.permute.xlu1 %1046  ;;  %v6779_v22 = vld [vmem:[#allocation117_spill] sm:$0xff] }
 0x3e4   : > { %v4729_v42 = vmul.f32 %v6771_v19, %v1283_v13  ;;  %v1323_v14 = vsel %vm1321_vm5, %v6773_v61, %v6772_v6  ;;  %v1057_v28 = vstv %s4665_s20  ;;  %vm1401_vm7 = vcmp.lt.s32.totalorder %v3976_v25, 13  ;;  %2471 = vrot.lane.b32.xlu0 %v3704_v16, %s6776_s5  ;;  %s5223_s20 = sld [smem:[#allocation9 + $0x4d]] }
 0x3e5   : > { %v4742_v29 = vadd.f32 %v993_v7, %v4593_v15  ;;  %v4745_v3 = vadd.f32 %v994_v51, %v4595_v54  ;;  %v1020_v23 = vadd.f32 %v1018_v35, %v6774_v5  ;;  %v1021_v44 = vadd.f32 %v1019_v48, %v6775_v46  ;;  %2233 = vrot.lane.b32.xlu1 %v3746_v60, %s6749_s28  ;;  %v4787_v20 = vpop.permute.xlu0 %1324  ;;  %v6785_v46 = vld [vmem:[#allocation119_spill] sm:$0xff]  ;;  %s5062_s28 = sld [smem:[#allocation9 + $0x47]] }
 0x3e6   : > { %v1066_v50 = vrot.slane %v1053_v11, %v3417_v36  ;;  %v1070_v39 = vrot.slane %v1053_v11, %v3963_v17  ;;  %v1048_v15 = vsel %vm1041_vm14, %v4543_v10, %v1047_v31  ;;  %v1049_v54 = vsel %vm1041_vm14, %v1047_v31, %v4543_v10  ;;  %v6786_v31 = vld [vmem:[#allocation120_spill] sm:$0xff] }
 0x3e7   : > { %v1033_v62 = vmul.f32 %v1026_v56, %v1020_v23  ;;  %v1034_v37 = vmul.f32 %v1030_v59, %v1021_v44  ;;  %v1058_v27 = vmul.f32 %v1057_v28, %v1049_v54  ;;  %v1059_v24 = vmul.f32 %v1057_v28, %v1048_v15  ;;  %v6780_v56 = vld [vmem:[#allocation118_spill] sm:$0xff]  ;;  %v1087_v21 = vpop.permute.xlu1 %1086 }
 0x3e8   : > { %v6777_v53 = vmov %v6771_v19  ;;  %v1322_v13 = vsel %vm1321_vm5, %v6772_v6, %v6773_v61  ;;  %v6778_v45 = vstv %s3983_s26  ;;  %v1097_v10 = vstv %s4700_s6  ;;  %2511 = vrot.lane.b32.xlu0 %v3704_v16, %s6781_s14  ;;  %v6783_v61 = vld [vmem:[#allocation36_spill] sm:$0xff]  ;;  %s4849_s26 = sld [smem:[#allocation9 + $0x41]]  ;;  %s6839_s6 = sld [smem:[#allocation99_spill]] }
 0x3e9   : > { %v4763_v32 = vmul.f32 %v6777_v53, %v1282_v9  ;;  %v4771_v40 = vmul.f32 %v6778_v45, %v1323_v14  ;;  %vm1441_vm8 = vcmp.lt.s32.totalorder %v3976_v25, 3  ;;  %v4780_v12 = vadd.f32 %v1033_v62, %v4627_v33  ;;  %v1133_v9 = vld [vmem:[#allocation7 + $0x15] ss:$8 sm:$0x3]  ;;  %v6784_v14 = vld [vmem:[#allocation29_spill] sm:$0xff]  ;;  %2273 = vrot.lane.b32.xlu1 %v3746_v60, %s6750_s13  ;;  %s6817_s13 = sld [smem:[#allocation94_spill]] }
 0x3ea   : > { %v4783_v47 = vadd.f32 %v1034_v37, %v4629_v57  ;;  %v1060_v0 = vadd.f32 %v1058_v27, %v6779_v22  ;;  %v1061_v59 = vadd.f32 %v1059_v24, %v6780_v56  ;;  %v1106_v26 = vrot.slane %v1093_v30, %v3417_v36  ;;  %v1173_v53 = vld [vmem:[#allocation7 + $0x16] ss:$8 sm:$0x3]  ;;  %v6790_v56 = vld [vmem:[#allocation38_spill] sm:$0xff] }
 0x3eb   : > { %v1110_v7 = vrot.slane %v1093_v30, %v3963_v17  ;;  %v1088_v33 = vsel %vm1081_vm15, %v4569_v38, %v1087_v21  ;;  %v1089_v57 = vsel %vm1081_vm15, %v1087_v21, %v4569_v38  ;;  %v6782_v19 = vmov %v6778_v45  ;;  %v1127_v15 = vpop.permute.xlu1 %1126 }
 0x3ec   : > { %v1073_v51 = vmul.f32 %v1066_v50, %v1060_v0  ;;  %v1074_v35 = vmul.f32 %v1070_v39, %v1061_v59  ;;  %v1098_v48 = vmul.f32 %v1097_v10, %v1089_v57  ;;  %v1099_v11 = vmul.f32 %v1097_v10, %v1088_v33  ;;  %v4824_v39 = vpop.permute.xlu0 %1364  ;;  %v6789_v0 = vld [vmem:[#allocation30_spill] sm:$0xff]  ;;  %v6792_v57 = vld [vmem:[#allocation122_spill] sm:$0xff] }
 0x3ed   : > { %v4801_v6 = vmul.f32 %v6782_v19, %v1322_v13  ;;  %v1362_v28 = vsel %vm1361_vm6, %v6784_v14, %v6783_v61  ;;  %v1363_v38 = vsel %vm1361_vm6, %v6783_v61, %v6784_v14  ;;  %v1137_v5 = vstv %s4738_s7  ;;  %2313 = vrot.lane.b32.xlu1 %v3746_v60, %s6754_s0  ;;  %s6822_s0 = sld [smem:[#allocation95_spill]]  ;;  %s6852_s7 = sld [smem:[#allocation102_spill]] }
 0x3ee   : > { %v4817_v16 = vadd.f32 %v1073_v51, %v4667_v63  ;;  %v4820_v23 = vadd.f32 %v1074_v35, %v4669_v58  ;;  %v1100_v44 = vadd.f32 %v1098_v48, %v6785_v46  ;;  %v1101_v50 = vadd.f32 %v1099_v11, %v6786_v31  ;;  %v6794_v31 = vld [vmem:[#allocation31_spill] sm:$0xff] }
 0x3ef   : > { %v1146_v54 = vrot.slane %v1133_v9, %v3417_v36  ;;  %v1150_v62 = vrot.slane %v1133_v9, %v3963_v17  ;;  %v1128_v63 = vsel %vm1121_vm0, %v4599_v1, %v1127_v15  ;;  %v1129_v58 = vsel %vm1121_vm0, %v1127_v15, %v4599_v1  ;;  %v1167_v48 = vpop.permute.xlu1 %1166 }
 0x3f0   : > { %v1113_v37 = vmul.f32 %v1106_v26, %v1100_v44  ;;  %v1114_v27 = vmul.f32 %v1110_v7, %v1101_v50  ;;  %v1138_v24 = vmul.f32 %v1137_v5, %v1129_v58  ;;  %v1139_v30 = vmul.f32 %v1137_v5, %v1128_v63  ;;  %v6791_v7 = vld [vmem:[#allocation121_spill] sm:$0xff]  ;;  %v4860_v35 = vpop.permute.xlu0 %1404  ;;  %v6796_v63 = vld [vmem:[#allocation123_spill] sm:$0xff] }
 0x3f1   : > { %v6787_v13 = vstv %s3985_s29  ;;  %v1403_v59 = vsel %vm1401_vm7, %v6790_v56, %v6789_v0  ;;  %v1177_v1 = vstv %s4776_s9  ;;  %vm1481_vm9 = vcmp.lt.s32.totalorder %v3976_v25, 2  ;;  %v6795_v50 = vld [vmem:[#allocation40_spill] sm:$0xff]  ;;  %2353 = vrot.lane.b32.xlu1 %v3746_v60, %s6758_s10  ;;  %s4885_s29 = sld [smem:[#allocation9 + $0x42]]  ;;  %s5193_s10 = sld [smem:[#allocation9 + $0x4c]] }
 0x3f2   : > { %v4836_v45 = vmul.f32 %v6787_v13, %v1363_v38  ;;  %v6788_v10 = vmov %v6787_v13  ;;  %v4853_v21 = vadd.f32 %v1113_v37, %v4704_v41  ;;  %v4856_v26 = vadd.f32 %v1114_v27, %v4707_v8  ;;  %v1213_v38 = vld [vmem:[#allocation7 + $0x17] ss:$8 sm:$0x3]  ;;  %s6858_s9 = sld [smem:[#allocation105_spill]] }
 0x3f3   : > { %v4840_v22 = vmul.f32 %v6788_v10, %v1362_v28  ;;  %v1140_v33 = vadd.f32 %v1138_v24, %v6791_v7  ;;  %v1141_v51 = vadd.f32 %v1139_v30, %v6792_v57  ;;  %v1186_v11 = vrot.slane %v1173_v53, %v3417_v36  ;;  %v6797_v37 = vld [vmem:[#allocation124_spill] sm:$0xff]  ;;  %v1207_v30 = vpop.permute.xlu1 %1206 }
 0x3f4   : > { %v1190_v9 = vrot.slane %v1173_v53, %v3963_v17  ;;  %v1168_v41 = vsel %vm1161_vm1, %v4633_v52, %v1167_v48  ;;  %v1169_v8 = vsel %vm1161_vm1, %v1167_v48, %v4633_v52  ;;  %v1402_v5 = vsel %vm1401_vm7, %v6789_v0, %v6790_v56  ;;  %v4896_v24 = vpop.permute.xlu0 %1444 }
 0x3f5   : > { %v1153_v19 = vmul.f32 %v1146_v54, %v1140_v33  ;;  %v1154_v61 = vmul.f32 %v1150_v62, %v1141_v51  ;;  %v1178_v14 = vmul.f32 %v1177_v1, %v1169_v8  ;;  %v1179_v28 = vmul.f32 %v1177_v1, %v1168_v41  ;;  %v1253_v1 = vld [vmem:[#allocation7 + $0x20] ss:$8 sm:$0x3]  ;;  %2393 = vrot.lane.b32.xlu1 %v3746_v60, %s6762_s22  ;;  %s6835_s22 = sld [smem:[#allocation97_spill]] }
 0x3f6   : > { %v6793_v46 = vstv %s3992_s27  ;;  %v1443_v15 = vsel %vm1441_vm8, %v6795_v50, %v6794_v31  ;;  %v1217_v52 = vstv %s4814_s30  ;;  %vm1521_vm10 = vcmp.lt.s32.totalorder %v3976_v25, 1  ;;  %s4957_s27 = sld [smem:[#allocation9 + $0x44]]  ;;  %s6870_s30 = sld [smem:[#allocation79_spill]] }
 0x3f7   : > { %v4876_v44 = vmul.f32 %v6793_v46, %v1403_v59  ;;  %v4889_v54 = vadd.f32 %v1153_v19, %v4742_v29  ;;  %v4892_v62 = vadd.f32 %v1154_v61, %v4745_v3  ;;  %v1180_v58 = vadd.f32 %v1178_v14, %v6796_v63  ;;  %v1247_v61 = vpop.permute.xlu1 %1246 }
 0x3f8   : > { %v1181_v27 = vadd.f32 %v1179_v28, %v6797_v37  ;;  %v1226_v53 = vrot.slane %v1213_v38, %v3417_v36  ;;  %v1230_v13 = vrot.slane %v1213_v38, %v3963_v17  ;;  %v1208_v29 = vsel %vm1201_vm2, %v4673_v34, %v1207_v30  ;;  %v4932_v19 = vpop.permute.xlu0 %1484 }
 0x3f9   : > { %v1209_v3 = vsel %vm1201_vm2, %v1207_v30, %v4673_v34  ;;  %v1193_v10 = vmul.f32 %v1186_v11, %v1180_v58  ;;  %v1219_v59 = vmul.f32 %v1217_v52, %v1208_v29  ;;  %v6798_v7 = vmov %v6793_v46  ;;  %v1293_v46 = vld [vmem:[#allocation7 + $0x21] ss:$8 sm:$0x3]  ;;  %2433 = vrot.lane.b32.xlu1 %v3746_v60, %s6770_s17  ;;  %s6849_s17 = sld [smem:[#allocation100_spill]] }
 0x3fa   : > { %v1194_v0 = vmul.f32 %v1190_v9, %v1181_v27  ;;  %v1218_v56 = vmul.f32 %v1217_v52, %v1209_v3  ;;  %v4908_v33 = vmul.f32 %v6798_v7, %v1402_v5  ;;  %v1442_v57 = vsel %vm1441_vm8, %v6794_v31, %v6795_v50  ;;  %v6802_v52 = vld [vmem:[#allocation33_spill] sm:$0xff] }
 0x3fb   : > { %v6799_v51 = vstv %s3994_s23  ;;  %v1257_v34 = vstv %s4849_s26  ;;  %vm1588_vm11 = vcmp.lt.s32.totalorder %v3976_v25, 127  ;;  %v4925_v11 = vadd.f32 %v1193_v10, %v4780_v12  ;;  %v1287_v29 = vpop.permute.xlu1 %1286  ;;  %s4992_s23 = sld [smem:[#allocation9 + $0x45]]  ;;  %s6878_s26 = sld [smem:[#allocation80_spill]] }
 0x3fc   : > { %v4916_v48 = vmul.f32 %v6799_v51, %v1443_v15  ;;  %v4928_v9 = vadd.f32 %v1194_v0, %v4783_v47  ;;  %v1220_v41 = vadd.f32 %v1218_v56, %v4617_v43  ;;  %v1221_v8 = vadd.f32 %v1219_v59, %v4652_v2  ;;  %v6801_v15 = vld [vmem:[#allocation42_spill] sm:$0xff] }
 0x3fd   : > { %v1266_v14 = vrot.slane %v1253_v1, %v3417_v36  ;;  %v1270_v28 = vrot.slane %v1253_v1, %v3963_v17  ;;  %v1248_v12 = vsel %vm1241_vm3, %v4711_v55, %v1247_v61  ;;  %v1249_v47 = vsel %vm1241_vm3, %v1247_v61, %v4711_v55  ;;  %v1333_v59 = vld [vmem:[#allocation7 + $0x22] ss:$8 sm:$0x3]  ;;  %2473 = vrot.lane.b32.xlu1 %v3746_v60, %s6776_s5  ;;  %s6855_s5 = sld [smem:[#allocation103_spill]] }
 0x3fe   : > { %v1233_v38 = vmul.f32 %v1226_v53, %v1220_v41  ;;  %v1234_v43 = vmul.f32 %v1230_v13, %v1221_v8  ;;  %v1258_v5 = vmul.f32 %v1257_v34, %v1249_v47  ;;  %v1259_v2 = vmul.f32 %v1257_v34, %v1248_v12  ;;  %v4967_v13 = vpop.permute.xlu0 %1524  ;;  %v6805_v34 = vld [vmem:[#allocation35_spill] sm:$0xff]  ;;  %v6806_v41 = vld [vmem:[#allocation44_spill] sm:$0xff] }
 0x3ff   : > { %v6800_v31 = vmov %v6799_v51  ;;  %v1482_v63 = vsel %vm1481_vm9, %v6802_v52, %v6801_v15  ;;  %v1483_v58 = vsel %vm1481_vm9, %v6801_v15, %v6802_v52  ;;  %v1297_v55 = vstv %s4885_s29  ;;  %s6883_s29 = sld [smem:[#allocation81_spill]] }
 0x400   : > { %v4944_v50 = vmul.f32 %v6800_v31, %v1442_v57  ;;  %v4960_v37 = vadd.f32 %v1233_v38, %v4817_v16  ;;  %v4963_v27 = vadd.f32 %v1234_v43, %v4820_v23  ;;  %v1260_v30 = vadd.f32 %v1258_v5, %v4687_v18  ;;  %v1327_v38 = vpop.permute.xlu1 %1326  ;;  %v1373_v31 = vld [vmem:[#allocation7 + $0x23] ss:$8 sm:$0x3] }
 0x401   : > { %v1261_v53 = vadd.f32 %v1259_v2, %v4691_v49  ;;  %v1306_v3 = vrot.slane %v1293_v46, %v3417_v36  ;;  %v1310_v10 = vrot.slane %v1293_v46, %v3963_v17  ;;  %v1288_v16 = vsel %vm1281_vm4, %v4749_v4, %v1287_v29  ;;  %2513 = vrot.lane.b32.xlu1 %v3746_v60, %s6781_s14  ;;  %s6868_s14 = sld [smem:[#allocation106_spill]] }
 0x402   : > { %v1289_v23 = vsel %vm1281_vm4, %v1287_v29, %v4749_v4  ;;  %v1273_v0 = vmul.f32 %v1266_v14, %v1260_v30  ;;  %v1299_v49 = vmul.f32 %v1297_v55, %v1288_v16  ;;  %v6803_v1 = vstv %s3997_s12  ;;  %s6807_s12 = sld [smem:[#allocation92_spill]]  ;;  %v5003_v47 = vpop.permute.xlu0 %1591 }
 0x403   : > { %v1274_v18 = vmul.f32 %v1270_v28, %v1261_v53  ;;  %v1298_v56 = vmul.f32 %v1297_v55, %v1289_v23  ;;  %v4979_v7 = vmul.f32 %v6803_v1, %v1483_v58  ;;  %v6804_v57 = vmov %v6803_v1  ;;  %v6809_v58 = vld [vmem:[#allocation46_spill] sm:$0xff]  ;;  %v6810_v55 = vld [vmem:[#allocation37_spill] sm:$0xff] }
 0x404   : > { %v4983_v51 = vmul.f32 %v6804_v57, %v1482_v63  ;;  %v1523_v8 = vsel %vm1521_vm10, %v6806_v41, %v6805_v34  ;;  %v1337_v4 = vstv %s4921_s24  ;;  %vm1628_vm12 = vcmp.lt.s32.totalorder %v3976_v25, 126  ;;  %v1367_v60 = vpop.permute.xlu1 %1366  ;;  %s6886_s24 = sld [smem:[#allocation84_spill]] }
 0x405   : > { %v4996_v61 = vadd.f32 %v1273_v0, %v4853_v21  ;;  %v4999_v14 = vadd.f32 %v1274_v18, %v4856_v26  ;;  %v1300_v28 = vadd.f32 %v1298_v56, %v4729_v42  ;;  %v1301_v12 = vadd.f32 %v1299_v49, %v4763_v32 }
 0x406   : > { %v1346_v43 = vrot.slane %v1333_v59, %v3417_v36  ;;  %v1350_v5 = vrot.slane %v1333_v59, %v3963_v17  ;;  %v1328_v21 = vsel %vm1321_vm5, %v4787_v20, %v1327_v38  ;;  %v1329_v26 = vsel %vm1321_vm5, %v1327_v38, %v4787_v20  ;;  %v5039_v16 = vpop.permute.xlu0 %1631 }
 0x407   : > { %v1313_v2 = vmul.f32 %v1306_v3, %v1300_v28  ;;  %v1314_v42 = vmul.f32 %v1310_v10, %v1301_v12  ;;  %v1338_v46 = vmul.f32 %v1337_v4, %v1329_v26  ;;  %v1339_v32 = vmul.f32 %v1337_v4, %v1328_v21 }
 0x408   : > { %v1522_v15 = vsel %vm1521_vm10, %v6805_v34, %v6806_v41  ;;  %v6808_v52 = vstv %s6807_s12  ;;  %v1589_v30 = vsel %vm1588_vm11, %v6810_v55, %v6809_v58  ;;  %v1377_v20 = vstv %s4957_s27  ;;  %s5559_s27 = sld [smem:[#allocation9 + $0x50]]  ;;  %s5579_s12 = sld [smem:[#allocation9 + $0x52]] }
 0x409   : > { %v5019_v63 = vmul.f32 %v6808_v52, %v1523_v8  ;;  %vm1668_vm13 = vcmp.lt.s32.totalorder %v3976_v25, 125  ;;  %v5032_v53 = vadd.f32 %v1313_v2, %v4889_v54  ;;  %v5035_v29 = vadd.f32 %v1314_v42, %v4892_v62 }
 0x40a   : > { %v1340_v3 = vadd.f32 %v1338_v46, %v4771_v40  ;;  %v1341_v10 = vadd.f32 %v1339_v32, %v4801_v6  ;;  %v1386_v23 = vrot.slane %v1373_v31, %v3417_v36  ;;  %v1390_v0 = vrot.slane %v1373_v31, %v3963_v17  ;;  %v1413_v6 = vld [vmem:[#allocation7 + $0x24] ss:$8 sm:$0x3]  ;;  %v5073_v38 = vpop.permute.xlu0 %1671  ;;  %v6815_v31 = vld [vmem:[#allocation48_spill] sm:$0xff] }
 0x40b   : > { %v1368_v54 = vsel %vm1361_vm6, %v4824_v39, %v1367_v60  ;;  %v1369_v62 = vsel %vm1361_vm6, %v1367_v60, %v4824_v39  ;;  %v6812_v59 = vmov %v6808_v52  ;;  %v1590_v57 = vsel %vm1588_vm11, %v6809_v58, %v6810_v55 }
 0x40c   : > { %v1353_v18 = vmul.f32 %v1346_v43, %v1340_v3  ;;  %v1354_v40 = vmul.f32 %v1350_v5, %v1341_v10  ;;  %v1378_v56 = vmul.f32 %v1377_v20, %v1369_v62  ;;  %v1379_v49 = vmul.f32 %v1377_v20, %v1368_v54  ;;  %v1407_v43 = vpop.permute.xlu1 %1406 }
 0x40d   : > { %v5051_v1 = vmul.f32 %v6812_v59, %v1522_v15  ;;  %v6813_v34 = vstv %s6811_s18  ;;  %v1417_v8 = vstv %s4992_s23  ;;  %vm1708_vm14 = vcmp.lt.s32.totalorder %v3976_v25, 115  ;;  %v6816_v15 = vld [vmem:[#allocation39_spill] sm:$0xff]  ;;  %v6820_v59 = vld [vmem:[#allocation50_spill] sm:$0xff]  ;;  %s5561_s23 = sld [smem:[#allocation9 + $0x51]]  ;;  %s5597_s18 = sld [smem:[#allocation9 + $0x53]] }
 0x40e   : > { %v5059_v41 = vmul.f32 %v6813_v34, %v1589_v30  ;;  %v5066_v39 = vadd.f32 %v1353_v18, %v4925_v11  ;;  %v5069_v4 = vadd.f32 %v1354_v40, %v4928_v9  ;;  %v1380_v28 = vadd.f32 %v1378_v56, %v4836_v45  ;;  %v5106_v10 = vpop.permute.xlu0 %1711 }
 0x40f   : > { %v1381_v12 = vadd.f32 %v1379_v49, %v4840_v22  ;;  %v1426_v5 = vrot.slane %v1413_v6, %v3417_v36  ;;  %v1430_v21 = vrot.slane %v1413_v6, %v3963_v17  ;;  %v1408_v11 = vsel %vm1401_vm7, %v4860_v35, %v1407_v43  ;;  %v1453_v22 = vld [vmem:[#allocation7 + $0x25] ss:$8 sm:$0x3] }
 0x410   : > { %v1409_v9 = vsel %vm1401_vm7, %v1407_v43, %v4860_v35  ;;  %v1393_v26 = vmul.f32 %v1386_v23, %v1380_v28  ;;  %v1419_v42 = vmul.f32 %v1417_v8, %v1408_v11  ;;  %v6814_v46 = vmov %v6813_v34  ;;  %v1447_v60 = vpop.permute.xlu1 %1446 }
 0x411   : > { %v1394_v45 = vmul.f32 %v1390_v0, %v1381_v12  ;;  %v1418_v2 = vmul.f32 %v1417_v8, %v1409_v9  ;;  %v5085_v32 = vmul.f32 %v6814_v46, %v1590_v57  ;;  %v1629_v52 = vsel %vm1628_vm12, %v6816_v15, %v6815_v31  ;;  %v6821_v57 = vld [vmem:[#allocation41_spill] sm:$0xff] }
 0x412   : > { %v1630_v58 = vsel %vm1628_vm12, %v6815_v31, %v6816_v15  ;;  %v1457_v55 = vstv %s5028_s25  ;;  %v5099_v35 = vadd.f32 %v1393_v26, %v4960_v37  ;;  %v1421_v3 = vadd.f32 %v1419_v42, %v4908_v33  ;;  %v1493_v33 = vld [vmem:[#allocation7 + $0x26] ss:$8 sm:$0x3]  ;;  %v6824_v31 = vld [vmem:[#allocation52_spill] sm:$0xff]  ;;  %v6825_v15 = vld [vmem:[#allocation43_spill] sm:$0xff]  ;;  %s6911_s25 = sld [smem:[#allocation110_spill]] }
 0x413   : > { %v5102_v30 = vadd.f32 %v1394_v45, %v4963_v27  ;;  %v1420_v20 = vadd.f32 %v1418_v2, %v4876_v44  ;;  %v1466_v23 = vrot.slane %v1453_v22, %v3417_v36  ;;  %v1470_v0 = vrot.slane %v1453_v22, %v3963_v17 }
 0x414   : > { %v1448_v37 = vsel %vm1441_vm8, %v4896_v24, %v1447_v60  ;;  %v1449_v27 = vsel %vm1441_vm8, %v1447_v60, %v4896_v24  ;;  %v1434_v44 = vmul.f32 %v1430_v21, %v1421_v3  ;;  %v6818_v40 = vstv %s6817_s13  ;;  %v1487_v21 = vpop.permute.xlu1 %1486  ;;  %s5621_s13 = sld [smem:[#allocation9 + $0x55]] }
 0x415   : > { %v1433_v54 = vmul.f32 %v1426_v5, %v1420_v20  ;;  %v1458_v62 = vmul.f32 %v1457_v55, %v1449_v27  ;;  %v1459_v18 = vmul.f32 %v1457_v55, %v1448_v37  ;;  %v5118_v56 = vmul.f32 %v6818_v40, %v1629_v52  ;;  %v5140_v5 = vpop.permute.xlu0 %1751 }
 0x416   : > { %v6819_v49 = vmov %v6818_v40  ;;  %v1669_v34 = vsel %vm1668_vm13, %v6821_v57, %v6820_v59  ;;  %v1497_v8 = vstv %s5062_s28  ;;  %vm1748_vm15 = vcmp.lt.s32.totalorder %v3976_v25, 114  ;;  %s6914_s28 = sld [smem:[#allocation111_spill]] }
 0x417   : > { %v5122_v6 = vmul.f32 %v6819_v49, %v1630_v58  ;;  %v5133_v24 = vadd.f32 %v1433_v54, %v4996_v61  ;;  %v5136_v28 = vadd.f32 %v1434_v44, %v4999_v14  ;;  %v1460_v12 = vadd.f32 %v1458_v62, %v4916_v48 }
 0x418   : > { %v1461_v43 = vadd.f32 %v1459_v18, %v4944_v50  ;;  %v1506_v11 = vrot.slane %v1493_v33, %v3417_v36  ;;  %v1510_v9 = vrot.slane %v1493_v33, %v3963_v17  ;;  %v1488_v61 = vsel %vm1481_vm9, %v4932_v19, %v1487_v21  ;;  %v1533_v50 = vld [vmem:[#allocation7 + $0x27] ss:$8 sm:$0x3] }
 0x419   : > { %v1489_v14 = vsel %vm1481_vm9, %v1487_v21, %v4932_v19  ;;  %v1473_v26 = vmul.f32 %v1466_v23, %v1460_v12  ;;  %v1499_v2 = vmul.f32 %v1497_v8, %v1488_v61  ;;  %v1670_v42 = vsel %vm1668_vm13, %v6820_v59, %v6821_v57  ;;  %v5170_v60 = vpop.permute.xlu0 %1791  ;;  %v1527_v23 = vpop.permute.xlu1 %1526 }
 0x41a   : > { %v1474_v48 = vmul.f32 %v1470_v0, %v1461_v43  ;;  %v1498_v45 = vmul.f32 %v1497_v8, %v1489_v14  ;;  %v6823_v22 = vstv %s6822_s0  ;;  %v1709_v52 = vsel %vm1708_vm14, %v6825_v15, %v6824_v31  ;;  %s5663_s0 = sld [smem:[#allocation9 + $0x57]] }
 0x41b   : > { %v5156_v46 = vmul.f32 %v6823_v22, %v1669_v34  ;;  %v1537_v58 = vstv %s5096_s1  ;;  %vm1788_vm0 = vcmp.lt.s32.totalorder %v3976_v25, 113  ;;  %v1475_v19 = vadd.f32 %v1473_v26, %v5032_v53  ;;  %s5619_s1 = sld [smem:[#allocation9 + $0x54]] }
 0x41c   : > { %v1476_v55 = vadd.f32 %v1474_v48, %v5035_v29  ;;  %v1500_v20 = vadd.f32 %v1498_v45, %v4979_v7  ;;  %v1501_v3 = vadd.f32 %v1499_v2, %v4983_v51  ;;  %v1546_v0 = vrot.slane %v1533_v50, %v3417_v36  ;;  %v1600_v51 = vld [vmem:[#allocation7 + $0x31] ss:$8 sm:$0x3]  ;;  %v6829_v45 = vld [vmem:[#allocation54_spill] sm:$0xff]  ;;  %v6830_v2 = vld [vmem:[#allocation45_spill] sm:$0xff] }
 0x41d   : > { %v1550_v37 = vrot.slane %v1533_v50, %v3963_v17  ;;  %v1528_v27 = vsel %vm1521_vm10, %v4967_v13, %v1527_v23  ;;  %v1529_v53 = vsel %vm1521_vm10, %v1527_v23, %v4967_v13  ;;  %v6826_v62 = vmov %v6823_v22  ;;  %v5200_v12 = vpop.permute.xlu0 %1831  ;;  %v1594_v43 = vpop.permute.xlu1 %1593 }
 0x41e   : > { %v1513_v29 = vmul.f32 %v1506_v11, %v1500_v20  ;;  %v1514_v7 = vmul.f32 %v1510_v9, %v1501_v3  ;;  %v1538_v54 = vmul.f32 %v1537_v58, %v1529_v53  ;;  %v1539_v44 = vmul.f32 %v1537_v58, %v1528_v27 }
 0x41f   : > { %v5182_v18 = vmul.f32 %v6826_v62, %v1670_v42  ;;  %v1710_v33 = vsel %vm1708_vm14, %v6824_v31, %v6825_v15  ;;  %v6827_v40 = vstv %s4018_s19  ;;  %v1604_v59 = vstv %s5129_s16  ;;  %s5256_s19 = sld [smem:[#allocation9 + $0x4e]] }
 0x420   : > { %v5190_v49 = vmul.f32 %v6827_v40, %v1709_v52  ;;  %vm1828_vm1 = vcmp.lt.s32.totalorder %v3976_v25, 112  ;;  %v1515_v13 = vadd.f32 %v1513_v29, %v5066_v39  ;;  %v1516_v57 = vadd.f32 %v1514_v7, %v5069_v4  ;;  %s5641_s16 = sld [smem:[#allocation9 + $0x56]] }
 0x421   : > { %v1540_v34 = vadd.f32 %v1538_v54, %v5019_v63  ;;  %v1541_v8 = vadd.f32 %v1539_v44, %v5051_v1  ;;  %v1613_v21 = vrot.slane %v1600_v51, %v3417_v36  ;;  %v1617_v11 = vrot.slane %v1600_v51, %v3963_v17  ;;  %v1640_v1 = vld [vmem:[#allocation7 + $0x32] ss:$8 sm:$0x3]  ;;  %v5233_v58 = vpop.permute.xlu0 %1871  ;;  %v1634_v20 = vpop.permute.xlu1 %1633 }
 0x422   : > { %v1595_v9 = vsel %vm1588_vm11, %v5003_v47, %v1594_v43  ;;  %v1596_v39 = vsel %vm1588_vm11, %v1594_v43, %v5003_v47  ;;  %v6828_v26 = vmov %v6827_v40  ;;  %v1749_v50 = vsel %vm1748_vm15, %v6830_v2, %v6829_v45  ;;  %v6833_v44 = vld [vmem:[#allocation56_spill] sm:$0xff]  ;;  %v6834_v51 = vld [vmem:[#allocation47_spill] sm:$0xff] }
 0x423   : > { %v1553_v4 = vmul.f32 %v1546_v0, %v1540_v34  ;;  %v1554_v63 = vmul.f32 %v1550_v37, %v1541_v8  ;;  %v1605_v61 = vmul.f32 %v1604_v59, %v1595_v9  ;;  %v1606_v14 = vmul.f32 %v1604_v59, %v1596_v39 }
 0x424   : > { %v5212_v48 = vmul.f32 %v6828_v26, %v1710_v33  ;;  %v1750_v42 = vsel %vm1748_vm15, %v6829_v45, %v6830_v2  ;;  %v1644_v22 = vstv %s5163_s11  ;;  %v1653_v3 = vrot.slane %v1640_v1, %v3417_v36  ;;  %v6838_v26 = vld [vmem:[#allocation49_spill] sm:$0xff]  ;;  %s5683_s11 = sld [smem:[#allocation9 + $0x58]] }
 0x425   : > { %v5226_v47 = vadd.f32 %v1553_v4, %v5099_v35  ;;  %v5229_v31 = vadd.f32 %v1554_v63, %v5102_v30  ;;  %v1607_v15 = vadd.f32 %v1605_v61, %v5059_v41  ;;  %v1608_v52 = vadd.f32 %v1606_v14, %v5085_v32  ;;  %v1680_v32 = vld [vmem:[#allocation7 + $0x33] ss:$8 sm:$0x3]  ;;  %v5264_v8 = vpop.permute.xlu0 %1911  ;;  %v1674_v43 = vpop.permute.xlu1 %1673 }
 0x426   : > { %v1657_v23 = vrot.slane %v1640_v1, %v3963_v17  ;;  %v1635_v35 = vsel %vm1628_vm12, %v5039_v16, %v1634_v20  ;;  %v1636_v30 = vsel %vm1628_vm12, %v1634_v20, %v5039_v16  ;;  %v6831_v53 = vstv %s4027_s4  ;;  %v6837_v1 = vld [vmem:[#allocation58_spill] sm:$0xff]  ;;  %s5287_s4 = sld [smem:[#allocation9 + $0x4f]]  ;;  %v1760_v20 = vld [vmem:[#allocation7 + $0x35] ss:$8 sm:$0x3] }
 0x427   : > { %v1620_v0 = vmul.f32 %v1613_v21, %v1607_v15  ;;  %v1621_v41 = vmul.f32 %v1617_v11, %v1608_v52  ;;  %v1645_v37 = vmul.f32 %v1644_v22, %v1635_v35  ;;  %v1646_v27 = vmul.f32 %v1644_v22, %v1636_v30 }
 0x428   : > { %v5245_v29 = vmul.f32 %v6831_v53, %v1749_v50  ;;  %v6832_v7 = vmov %v6831_v53  ;;  %v1789_v62 = vsel %vm1788_vm0, %v6834_v51, %v6833_v44  ;;  %v1684_v33 = vstv %s5193_s10  ;;  %s5751_s10 = sld [smem:[#allocation9 + $0x5d]] }
 0x429   : > { %v5249_v54 = vmul.f32 %v6832_v7, %v1750_v42  ;;  %v5258_v16 = vadd.f32 %v1620_v0, %v1475_v19  ;;  %v5260_v40 = vadd.f32 %v1621_v41, %v1476_v55  ;;  %v1647_v59 = vadd.f32 %v1645_v37, %v5118_v56  ;;  %v5297_v15 = vpop.permute.xlu0 %1951  ;;  %v1714_v52 = vpop.permute.xlu1 %1713 }
 0x42a   : > { %v1648_v34 = vadd.f32 %v1646_v27, %v5122_v6  ;;  %v1693_v21 = vrot.slane %v1680_v32, %v3417_v36  ;;  %v1697_v11 = vrot.slane %v1680_v32, %v3963_v17  ;;  %v1675_v19 = vsel %vm1668_vm13, %v5073_v38, %v1674_v43  ;;  %v1720_v6 = vld [vmem:[#allocation7 + $0x34] ss:$8 sm:$0x3] }
 0x42b   : > { %v1676_v55 = vsel %vm1668_vm13, %v1674_v43, %v5073_v38  ;;  %v1660_v9 = vmul.f32 %v1653_v3, %v1647_v59  ;;  %v1685_v39 = vmul.f32 %v1684_v33, %v1675_v19  ;;  %v1790_v63 = vsel %vm1788_vm0, %v6833_v44, %v6834_v51  ;;  %v6841_v59 = vld [vmem:[#allocation101_spill] sm:$0xff] }
 0x42c   : > { %v1661_v56 = vmul.f32 %v1657_v23, %v1648_v34  ;;  %v1686_v4 = vmul.f32 %v1684_v33, %v1676_v55  ;;  %v6836_v61 = vstv %s6835_s22  ;;  %v1829_v45 = vsel %vm1828_vm1, %v6838_v26, %v6837_v1  ;;  %s5817_s22 = sld [smem:[#allocation9 + $0x60]] }
 0x42d   : > { %v5280_v14 = vmul.f32 %v6836_v61, %v1789_v62  ;;  %v1724_v2 = vstv %s5223_s20  ;;  %vm1868_vm2 = vcmp.lt.s32.totalorder %v3976_v25, 111  ;;  %vm1908_vm3 = vcmp.lt.s32.totalorder %v3976_v25, 110  ;;  %v5325_v44 = vpop.permute.xlu0 %1991  ;;  %v1754_v51 = vpop.permute.xlu1 %1753  ;;  %v6840_v62 = vld [vmem:[#allocation98_spill] sm:$0xff]  ;;  %s5773_s20 = sld [smem:[#allocation9 + $0x5e]] }
 0x42e   : > { %v5291_v38 = vadd.f32 %v1660_v9, %v1515_v13  ;;  %v5293_v50 = vadd.f32 %v1661_v56, %v1516_v57  ;;  %v1687_v42 = vadd.f32 %v1685_v39, %v5156_v46  ;;  %v1688_v22 = vadd.f32 %v1686_v4, %v5182_v18 }
 0x42f   : > { %v1733_v3 = vrot.slane %v1720_v6, %v3417_v36  ;;  %v1737_v23 = vrot.slane %v1720_v6, %v3963_v17  ;;  %v1715_v13 = vsel %vm1708_vm14, %v5106_v10, %v1714_v52  ;;  %v1716_v57 = vsel %vm1708_vm14, %v1714_v52, %v5106_v10 }
 0x430   : > { %vm1948_vm4 = vcmp.lt.s32.totalorder %v3976_v25, 109  ;;  %vm6495_vm5 = vcmp.lt.s32.totalorder %v3976_v25, 99  ;;  %v1700_v46 = vmul.f32 %v1693_v21, %v1687_v42  ;;  %v1701_v18 = vmul.f32 %v1697_v11, %v1688_v22  ;;  %v1800_v11 = vld [vmem:[#allocation7 + $0x36] ss:$8 sm:$0x3] }
 0x431   : > { %v1725_v35 = vmul.f32 %v1724_v2, %v1715_v13  ;;  %v1726_v30 = vmul.f32 %v1724_v2, %v1716_v57  ;;  %v1830_v0 = vsel %vm1828_vm1, %v6837_v1, %v6838_v26  ;;  %vm6494_vm6 = vcmp.lt.s32.totalorder %v3976_v25, 98  ;;  %v5360_v1 = vpop.permute.xlu0 %2031  ;;  %v6847_v57 = vld [vmem:[#allocation62_spill] sm:$0xff] }
 0x432   : > { %v1764_v41 = vstv %s5256_s19  ;;  %v1773_v37 = vrot.slane %v1760_v20, %v3417_v36  ;;  %v1777_v10 = vrot.slane %v1760_v20, %v3963_v17  ;;  %v5318_v27 = vadd.f32 %v1700_v46, %v5226_v47  ;;  %v6845_v20 = vld [vmem:[#allocation60_spill] sm:$0xff]  ;;  %v6848_v46 = vld [vmem:[#allocation53_spill] sm:$0xff]  ;;  %s5775_s19 = sld [smem:[#allocation9 + $0x5f]] }
 0x433   : > { %v5321_v32 = vadd.f32 %v1701_v18, %v5229_v31  ;;  %v1727_v53 = vadd.f32 %v1725_v35, %v5190_v49  ;;  %v1728_v7 = vadd.f32 %v1726_v30, %v5212_v48  ;;  %v1583_v33 = vadd.f32 %v6840_v62, %v5136_v28 }
 0x434   : > { %v1582_v47 = vadd.f32 %v6841_v59, %v5133_v24  ;;  %v1755_v31 = vsel %vm1748_vm15, %v5140_v5, %v1754_v51  ;;  %v1756_v49 = vsel %vm1748_vm15, %v1754_v51, %v5140_v5  ;;  %v6842_v19 = vmov %v6836_v61  ;;  %v1794_v61 = vpop.permute.xlu1 %1793  ;;  %v6857_v59 = vld [vmem:[#allocation59_spill] sm:$0xff] }
 0x435   : > { %v1740_v34 = vmul.f32 %v1733_v3, %v1727_v53  ;;  %v1741_v48 = vmul.f32 %v1737_v23, %v1728_v7  ;;  %v1765_v43 = vmul.f32 %v1764_v41, %v1755_v31  ;;  %v1766_v21 = vmul.f32 %v1764_v41, %v1756_v49  ;;  %v6846_v3 = vld [vmem:[#allocation51_spill] sm:$0xff]  ;;  %v6853_v7 = vld [vmem:[#allocation66_spill] sm:$0xff] }
 0x436   : > { %v1803_v55 = vmul.f32 %v6842_v19, %v1790_v63  ;;  %v6843_v9 = vstv %s6839_s6  ;;  %vm2068_vm7 = vcmp.lt.s32.totalorder %v3976_v25, 97  ;;  %vm2108_vm8 = vcmp.lt.s32.totalorder %v3976_v25, 96  ;;  %s2550_s6 = sld [smem:[#allocation2]] }
 0x437   : > { %v5341_v28 = vmul.f32 %v6843_v9, %v1829_v45  ;;  %v6844_v56 = vmov %v6843_v9  ;;  %v1804_v39 = vstv %s5287_s4  ;;  %vm2148_vm9 = vcmp.lt.s32.totalorder %v3976_v25, 95  ;;  %s5828_s4 = sld [smem:[#allocation9 + $0x61]] }
 0x438   : > { %v5345_v24 = vmul.f32 %v6844_v56, %v1830_v0  ;;  %vm2188_vm10 = vcmp.lt.s32.totalorder %v3976_v25, 94  ;;  %v5352_v5 = vadd.f32 %v1740_v34, %v1582_v47  ;;  %v5354_v4 = vadd.f32 %v1741_v48, %v1583_v33  ;;  %v5411_v62 = vpop.permute.xlu1 %1833  ;;  %v6856_v33 = vld [vmem:[#allocation68_spill] sm:$0xff] }
 0x439   : > { %v1767_v6 = vadd.f32 %v1765_v43, %v5245_v29  ;;  %v1768_v63 = vadd.f32 %v1766_v21, %v5249_v54  ;;  %vm2228_vm11 = vcmp.lt.s32.totalorder %v3976_v25, 93  ;;  %vm2268_vm12 = vcmp.lt.s32.totalorder %v3976_v25, 83 }
 0x43a   : > { %v1813_v26 = vrot.slane %v1800_v11, %v3417_v36  ;;  %v1817_v45 = vrot.slane %v1800_v11, %v3963_v17  ;;  %v1795_v2 = vsel %vm1788_vm0, %v5170_v60, %v1794_v61  ;;  %v1796_v29 = vsel %vm1788_vm0, %v1794_v61, %v5170_v60 }
 0x43b   : > { %v1780_v54 = vmul.f32 %v1773_v37, %v1767_v6  ;;  %v1781_v42 = vmul.f32 %v1777_v10, %v1768_v63  ;;  %v1805_v22 = vmul.f32 %v1804_v39, %v1795_v2  ;;  %v1806_v52 = vmul.f32 %v1804_v39, %v1796_v29  ;;  %v6850_v37 = vld [vmem:[#allocation64_spill] sm:$0xff]  ;;  %v6851_v10 = vld [vmem:[#allocation55_spill] sm:$0xff]  ;;  %v5441_v39 = vpop.permute.xlu0 %2071 }
 0x43c   : > { %v1869_v23 = vsel %vm1868_vm2, %v6846_v3, %v6845_v20  ;;  %v1870_v13 = vsel %vm1868_vm2, %v6845_v20, %v6846_v3  ;;  %v1909_v18 = vsel %vm1908_vm3, %v6848_v46, %v6847_v57  ;;  %v1910_v60 = vsel %vm1908_vm3, %v6847_v57, %v6848_v46 }
 0x43d   : > { %v5387_v35 = vadd.f32 %v1780_v54, %v5258_v16  ;;  %v5390_v30 = vadd.f32 %v1781_v42, %v5260_v40  ;;  %v1807_v0 = vadd.f32 %v1805_v22, %v5280_v14  ;;  %v1808_v41 = vadd.f32 %v1806_v52, %v1803_v55  ;;  %v6854_v40 = vld [vmem:[#allocation57_spill] sm:$0xff] }
 0x43e   : > { %v1949_v53 = vsel %vm1948_vm4, %v6851_v10, %v6850_v37  ;;  %v1950_v16 = vsel %vm1948_vm4, %v6850_v37, %v6851_v10  ;;  %v1989_v51 = vsel %vm6495_vm5, %v6854_v40, %v6853_v7  ;;  %v1990_v14 = vsel %vm6495_vm5, %v6853_v7, %v6854_v40  ;;  %v6876_v37 = vld [vmem:[#allocation74_spill] sm:$0xff]  ;;  %v6877_v10 = vld [vmem:[#allocation65_spill] sm:$0xff]  ;;  %v6879_v7 = vld [vmem:[#allocation76_spill] sm:$0xff] }
 0x43f   : > { %vm2308_vm13 = vcmp.lt.s32.totalorder %v3976_v25, 82  ;;  %vm2348_vm14 = vcmp.lt.s32.totalorder %v3976_v25, 81  ;;  %v2029_v47 = vsel %vm6494_vm6, %v6857_v59, %v6856_v33  ;;  %v2030_v31 = vsel %vm6494_vm6, %v6856_v33, %v6857_v59  ;;  %v6880_v40 = vld [vmem:[#allocation67_spill] sm:$0xff]  ;;  %v6881_v33 = vld [vmem:[#allocation78_spill] sm:$0xff]  ;;  %v6882_v59 = vld [vmem:[#allocation69_spill] sm:$0xff] }
 0x440   : > { %vm2388_vm15 = vcmp.lt.s32.totalorder %v3976_v25, 80  ;;  %vm2428_vm0 = vcmp.lt.s32.totalorder %v3976_v25, 79  ;;  %v1820_v49 = vmul.f32 %v1813_v26, %v1807_v0  ;;  %v1821_v34 = vmul.f32 %v1817_v45, %v1808_v41 }
 0x441   : > { %v6859_v48 = vstv %s6849_s17  ;;  %v6861_v19 = vstv %s6852_s7  ;;  %vm2468_vm6 = vcmp.lt.s32.totalorder %v3976_v25, 78  ;;  %vm2508_vm5 = vcmp.lt.s32.totalorder %v3976_v25, 77  ;;  %s7058_s17 = sld [smem:[#allocation19_spill]]  ;;  %s7059_s7 = sld [smem:[#allocation24_spill]] }
 0x442   : > { %v5425_v43 = vmul.f32 %v6859_v48, %v1869_v23  ;;  %v6860_v21 = vmov %v6859_v48  ;;  %v5433_v55 = vmul.f32 %v6861_v19, %v1909_v18  ;;  %v6862_v9 = vmov %v6861_v19  ;;  %v6873_v18 = vld [vmem:[#allocation72_spill] sm:$0xff] }
 0x443   : > { %v5429_v11 = vmul.f32 %v6860_v21, %v1870_v13  ;;  %v5437_v56 = vmul.f32 %v6862_v9, %v1910_v60  ;;  %v6863_v6 = vstv %s6855_s5  ;;  %v5452_v45 = vadd.f32 %v1820_v49, %v5291_v38  ;;  %v5473_v38 = vpop.permute.xlu1 %1873  ;;  %v6871_v13 = vld [vmem:[#allocation70_spill] sm:$0xff]  ;;  %v6874_v60 = vld [vmem:[#allocation63_spill] sm:$0xff]  ;;  %v6884_v49 = vld [vmem:[#allocation83_spill] sm:$0xff] }
 0x444   : > { %v5445_v63 = vmul.f32 %v6863_v6, %v1949_v53  ;;  %v6864_v61 = vmov %v6863_v6  ;;  %v5455_v2 = vadd.f32 %v1821_v34, %v5293_v50  ;;  %v6865_v29 = vstv %s6858_s9  ;;  %v6872_v50 = vld [vmem:[#allocation61_spill] sm:$0xff]  ;;  %v6885_v34 = vld [vmem:[#allocation71_spill] sm:$0xff] }
 0x445   : > { %v5449_v26 = vmul.f32 %v6864_v61, %v1950_v16  ;;  %v5459_v54 = vmul.f32 %v6865_v29, %v1989_v51  ;;  %v6866_v42 = vmov %v6865_v29  ;;  %v6867_v52 = vstv %s4073_s21  ;;  %s6875_s21 = sld [smem:[#allocation108_spill]] }
 0x446   : > { %v5463_v22 = vmul.f32 %v6866_v42, %v1990_v14  ;;  %v5467_v20 = vmul.f32 %v6867_v52, %v2029_v47  ;;  %v6869_v3 = vmov %v6867_v52  ;;  %v2069_v57 = vsel %vm2068_vm7, %v6872_v50, %v6871_v13 }
 0x447   : > { %v5471_v23 = vmul.f32 %v6869_v3, %v2030_v31  ;;  %v2070_v46 = vsel %vm2068_vm7, %v6871_v13, %v6872_v50  ;;  %v2109_v0 = vsel %vm2108_vm8, %v6874_v60, %v6873_v18  ;;  %v2110_v41 = vsel %vm2108_vm8, %v6873_v18, %v6874_v60  ;;  %v5539_v13 = vpop.permute.xlu0 %2111  ;;  %v5541_v50 = vpop.permute.xlu1 %1913  ;;  %s2809_s9 = sshll.u32 %s7058_s17, 7 }
 0x448   : > { %v2149_v53 = vsel %vm2148_vm9, %v6877_v10, %v6876_v37  ;;  %v2150_v16 = vsel %vm2148_vm9, %v6876_v37, %v6877_v10  ;;  %v2189_v51 = vsel %vm2188_vm10, %v6880_v40, %v6879_v7  ;;  %v2190_v14 = vsel %vm2188_vm10, %v6879_v7, %v6880_v40 }
 0x449   : > { %v2229_v47 = vsel %vm2228_vm11, %v6882_v59, %v6881_v33  ;;  %v2230_v31 = vsel %vm2228_vm11, %v6881_v33, %v6882_v59  ;;  %v2269_v48 = vsel %vm2268_vm12, %v6885_v34, %v6884_v49  ;;  %v2270_v21 = vsel %vm2268_vm12, %v6884_v49, %v6885_v34 }
 0x44a   : > { %v6887_v19 = vstv %s6868_s14  ;;  %v6889_v29 = vstv %s6870_s30  ;;  %s7062_s14 = sshll.u32 %s7059_s7, 3 }
 0x44b   : > { %v5525_v9 = vmul.f32 %v6887_v19, %v2069_v57  ;;  %v6888_v6 = vmov %v6887_v19  ;;  %v5533_v42 = vmul.f32 %v6889_v29, %v2109_v0  ;;  %v6890_v52 = vmov %v6889_v29  ;;  %v6912_v29 = vld [vmem:[#allocation96_spill] sm:$0xff]  ;;  %s459_s30 = scalar_lea.vmem [#allocation10], %s7062_s14 }
 0x44c   : > { %v5529_v61 = vmul.f32 %v6888_v6, %v2070_v46  ;;  %v5537_v3 = vmul.f32 %v6890_v52, %v2110_v41  ;;  %v6891_v18 = vstv %s6875_s21  ;;  %v6895_v57 = vstv %s6878_s26  ;;  %v6910_v6 = vld [vmem:[#allocation75_spill] sm:$0xff]  ;;  %v6913_v52 = vld [vmem:[#allocation77_spill] sm:$0xff]  ;;  %s2596_s21 = sshll.u32 %s459_s30, 4  ;;  %s6218_s21 = int_to_ptr.vmem [resolvable:$true] %s2596_s21 }
 0x44d   : > { %v5545_v60 = vmul.f32 %v6891_v18, %v2149_v53  ;;  %v6893_v37 = vmov %v6891_v18  ;;  %v5553_v7 = vmul.f32 %v6895_v57, %v2189_v51  ;;  %v6897_v46 = vmov %v6895_v57  ;;  %v6907_v51 = vld [vmem:[#allocation87_spill] sm:$0xff]  ;;  %v6915_v57 = vld [vmem:[#allocation104_spill] sm:$0xff] }
 0x44e   : > { %v5549_v10 = vmul.f32 %v6893_v37, %v2150_v16  ;;  %v5557_v40 = vmul.f32 %v6897_v46, %v2190_v14  ;;  %v6899_v0 = vstv %s6883_s29  ;;  %v6903_v53 = vstv %s6886_s24  ;;  %v6908_v14 = vld [vmem:[#allocation73_spill] sm:$0xff]  ;;  %v6916_v46 = vld [vmem:[#allocation82_spill] sm:$0xff]  ;;  %s7064_s24 = sld [smem:[#allocation138_spill]] }
 0x44f   : > { %6892 = vst [vmem:[#allocation112_spill] sm:$0xff] %v5545_v60  ;;  %6896 = vst [vmem:[#allocation27_spill] sm:$0xff] %v5553_v7  ;;  %v5565_v41 = vmul.f32 %v6899_v0, %v2229_v47  ;;  %v6901_v33 = vmov %v6899_v0  ;;  %v5573_v49 = vmul.f32 %v6903_v53, %v2269_v48  ;;  %v6905_v16 = vmov %v6903_v53  ;;  %v5615_v53 = vld [vmem:[#allocation7 + $0x37] ss:$8 sm:$0x3] }
 0x450   : > { %6894 = vst [vmem:[#allocation125_spill] sm:$0xff] %v5549_v10  ;;  %6898 = vst [vmem:[#allocation32_spill] sm:$0xff] %v5557_v40  ;;  %v5569_v59 = vmul.f32 %v6901_v33, %v2230_v31  ;;  %v5577_v34 = vmul.f32 %v6905_v16, %v2270_v21  ;;  %v2309_v19 = vsel %vm2308_vm13, %v6908_v14, %v6907_v51  ;;  %v6909_v31 = vld [vmem:[#allocation91_spill] sm:$0xff]  ;;  %v5617_v16 = vpop.permute.xlu1 %1953  ;;  %v6929_v60 = vstv %s4275_s2  ;;  %s5705_s2 = sld [smem:[#allocation9 + $0x59]] }
 0x451   : > { %6900 = vst [vmem:[#allocation113_spill] sm:$0xff] %v5565_v41  ;;  %6904 = vst [vmem:[#allocation126_spill] sm:$0xff] %v5573_v49  ;;  %v2310_v47 = vsel %vm2308_vm13, %v6907_v51, %v6908_v14  ;;  %v2349_v48 = vsel %vm2348_vm14, %v6910_v6, %v6909_v31  ;;  %v2350_v21 = vsel %vm2348_vm14, %v6909_v31, %v6910_v6  ;;  %v6917_v51 = vld [vmem:[#allocation107_spill] sm:$0xff]  ;;  %v6921_v41 = vstv %s6911_s25  ;;  %s3021_s25 = scalar_lea.vmem %s6218_s21, 128 }
 0x452   : > { %6902 = vst [vmem:[#allocation114_spill] sm:$0xff] %v5569_v59  ;;  %6906 = vst [vmem:[#allocation28_spill] sm:$0xff] %v5577_v34  ;;  %v2389_v18 = vsel %vm2388_vm15, %v6913_v52, %v6912_v29  ;;  %v2390_v37 = vsel %vm2388_vm15, %v6912_v29, %v6913_v52  ;;  %v2429_v0 = vsel %vm2428_vm0, %v6916_v46, %v6915_v57  ;;  %v6918_v14 = vld [vmem:[#allocation86_spill] sm:$0xff]  ;;  %v6919_v29 = vld [vmem:[#allocation109_spill] sm:$0xff]  ;;  %v6925_v49 = vstv %s6914_s28  ;;  %p3022_p9 = scmp.ne.s32.totalorder %s6218_s21, %s3021_s25 }
 0x453   : > { %v2430_v33 = vsel %vm2428_vm0, %v6915_v57, %v6916_v46  ;;  %v2469_v31 = vsel %vm2468_vm6, %v6918_v14, %v6917_v51  ;;  %v2470_v6 = vsel %vm2468_vm6, %v6917_v51, %v6918_v14  ;;  %v6920_v52 = vld [vmem:[#allocation90_spill] sm:$0xff]  ;;  %v5639_v59 = vld [vmem:[#allocation7 + $0x40] ss:$8 sm:$0x3]  ;;  %v5645_v34 = vmul.f32 %v6921_v41, %v2309_v19 }
 0x454   : > { %v2509_v57 = vsel %vm2508_vm5, %v6920_v52, %v6919_v29  ;;  %v2510_v46 = vsel %vm2508_vm5, %v6919_v29, %v6920_v52  ;;  %v6923_v51 = vmov %v6921_v41  ;;  %v5653_v40 = vmul.f32 %v6925_v49, %v2349_v48  ;;  %v5659_v29 = vpop.permute.xlu0 %2151  ;;  %v5661_v52 = vld [vmem:[#allocation7 + $0x41] ss:$8 sm:$0x3]  ;;  %p3023_p12 = pnand %p3022_p9, %p3320_p7 }
 0x455   : > { %6922 = vst [vmem:[#allocation34_spill] sm:$0xff] %v5645_v34  ;;  %v5649_v14 = vmul.f32 %v6923_v51, %v2310_v47  ;;  %v6927_v7 = vmov %v6925_v49  ;;  %v5667_v41 = vmul.f32 %v6929_v60, %v2389_v18  ;;  %v6931_v19 = vmov %v6929_v60 }
 0x456   : > { %6926 = vst [vmem:[#allocation116_spill] sm:$0xff] %v5653_v40  ;;  %v5657_v10 = vmul.f32 %v6927_v7, %v2350_v21  ;;  %v5671_v47 = vmul.f32 %v6931_v19, %v2390_v37  ;;  %v6933_v51 = vstv %s4290_s3  ;;  %v5681_v21 = vld [vmem:[#allocation7 + $0x42] ss:$8 sm:$0x3]  ;;  %s5726_s3 = sld [smem:[#allocation9 + $0x5b]]  ;;  %p3024_p10 = pneg %p3023_p12 }
 0x457   : > { %6924 = vst [vmem:[#allocation115_spill] sm:$0xff] %v5649_v14  ;;  %6930 = vst [vmem:[#allocation118_spill] sm:$0xff] %v5667_v41  ;;  %v5675_v49 = vmul.f32 %v6933_v51, %v2429_v0  ;;  %v6935_v48 = vmov %v6933_v51  ;;  %v6941_v41 = vstv %s4341_s8  ;;  %v5701_v51 = vld [vmem:[#allocation7 + $0x43] ss:$8 sm:$0x3]  ;;  %s5724_s8 = sld [smem:[#allocation9 + $0x5a]] }
 0x458   : > { %6928 = vst [vmem:[#allocation117_spill] sm:$0xff] %v5657_v10  ;;  %6932 = vst [vmem:[#allocation36_spill] sm:$0xff] %v5671_v47  ;;  %v5679_v7 = vmul.f32 %v6935_v48, %v2430_v33  ;;  %v6937_v10 = vstv %s4299_s15  ;;  %v5695_v37 = vmul.f32 %v6941_v41, %v2509_v57  ;;  %v6943_v19 = vmov %v6941_v41  ;;  %v5703_v33 = vpop.permute.xlu1 %1993  ;;  %v5713_v57 = vld [vmem:[#allocation7 + $0x44] ss:$8 sm:$0x3]  ;;  %s5737_s15 = sld [smem:[#allocation9 + $0x5c]] }
 0x459   : > { %6934 = vst [vmem:[#allocation29_spill] sm:$0xff] %v5675_v49  ;;  %v5687_v40 = vmul.f32 %v6937_v10, %v2469_v31  ;;  %v6939_v60 = vmov %v6937_v10  ;;  %v5699_v0 = vmul.f32 %v6943_v19, %v2510_v46  ;;  %v1844_v48 = vstv %s5559_s27  ;;  %v5715_v46 = vld [vmem:[#allocation7 + $0x45] ss:$8 sm:$0x3]  ;;  %v5739_v10 = vpop.permute.xlu0 %2191  ;;  %s7065_s27 = smov %s7064_s24 }
 0x45a   : > { %6936 = vst [vmem:[#allocation119_spill] sm:$0xff] %v5679_v7  ;;  %v5691_v18 = vmul.f32 %v6939_v60, %v2470_v6  ;;  %6942 = vst [vmem:[#allocation38_spill] sm:$0xff] %v5695_v37  ;;  %v5735_v60 = vld [vmem:[#allocation7 + $0x46] ss:$8 sm:$0x3]  ;;  %v1835_v6 = vsel %vm1828_vm1, %v5200_v12, %v5411_v62  ;;  %v1875_v19 = vsel %vm1868_vm2, %v5233_v58, %v5473_v38 }
 0x45b   : > { %6938 = vst [vmem:[#allocation120_spill] sm:$0xff] %v5687_v40  ;;  %6944 = vst [vmem:[#allocation121_spill] sm:$0xff] %v5699_v0  ;;  %v5749_v41 = vld [vmem:[#allocation7 + $0x47] ss:$8 sm:$0x3]  ;;  %v1836_v0 = vsel %vm1828_vm1, %v5411_v62, %v5200_v12  ;;  %v1845_v49 = vmul.f32 %v1844_v48, %v1835_v6  ;;  %v1876_v37 = vsel %vm1868_vm2, %v5473_v38, %v5233_v58  ;;  %vm6961_vm1 = vcmp.lt.s32.totalorder %v3976_v25, 99 }
 0x45c   : > { %6940 = vst [vmem:[#allocation30_spill] sm:$0xff] %v5691_v18  ;;  %6945 = vst [vmem:[#allocation122_spill] sm:$0xff] %v5715_v46  ;;  %v5747_v18 = vpop.permute.xlu1 %2033  ;;  %v5760_v31 = vld [vmem:[#allocation7 + $0x50] ss:$8 sm:$0x3]  ;;  %v1846_v34 = vmul.f32 %v1844_v48, %v1836_v0  ;;  %v6955_v0 = vstv %s5561_s23  ;;  %s6216_s23 = scalar_lea.hbm %s7064_s24, %s2809_s9 }
 0x45d   : > { %6946 = vst [vmem:[#allocation31_spill] sm:$0xff] %v5735_v60  ;;  %6947 = vst [vmem:[#allocation40_spill] sm:$0xff] %v5749_v41  ;;  %v5784_v12 = vld [vmem:[#allocation7 + $0x51] ss:$8 sm:$0x3]  ;;  %v5807_v47 = vpop.permute.xlu0 %2231  ;;  %v1885_v48 = vmul.f32 %v6955_v0, %v1875_v19  ;;  %v1847_v38 = vadd.f32 %v1845_v49, %v5341_v28  ;;  %v1915_v28 = vsel %vm1908_vm3, %v5264_v8, %v5541_v50 }
 0x45e   : > { %6948 = vst [vmem:[#allocation123_spill] sm:$0xff] %v5760_v31  ;;  %6949 = vst [vmem:[#allocation124_spill] sm:$0xff] %v5784_v12  ;;  %v5795_v7 = vld [vmem:[#allocation7 + $0x52] ss:$8 sm:$0x3]  ;;  %v6956_v12 = vmov %v6955_v0  ;;  %v1848_v40 = vadd.f32 %v1846_v34, %v5345_v24  ;;  %v1916_v24 = vsel %vm1908_vm3, %v5541_v50, %v5264_v8  ;;  %v1955_v8 = vsel %vm1948_vm4, %v5297_v15, %v5617_v16 }
 0x45f   : > { %6950 = vst [vmem:[#allocation42_spill] sm:$0xff] %v5795_v7  ;;  %v5797_v14 = vld [vmem:[#allocation7 + $0x53] ss:$8 sm:$0x3]  ;;  %6952 = vst [vmem:[#allocation35_spill] sm:$0xff] %v5807_v47  ;;  %v1886_v47 = vmul.f32 %v6956_v12, %v1876_v37  ;;  %v1887_v37 = vadd.f32 %v1885_v48, %v5425_v43  ;;  %v1956_v50 = vsel %vm1948_vm4, %v5617_v16, %v5297_v15  ;;  %v6963_v16 = vstv %s5579_s12  ;;  %s2582_s12 = scalar_lea.sflag [#allocation5], %s7059_s7 }
 0x460   : > { %v5786_v62 = vpop.permute.xlu1 %2073  ;;  %6951 = vst [vmem:[#allocation33_spill] sm:$0xff] %v5797_v14  ;;  %v5815_v31 = vld [vmem:[#allocation7 + $0x54] ss:$8 sm:$0x3]  ;;  %v6959_v43 = vrot.slane %v5615_v53, %v3417_v36  ;;  %v1995_v34 = vsel %vm6961_vm1, %v5325_v44, %v5703_v33  ;;  %vm6962_vm2 = vmmov %vm6961_vm1  ;;  %v1925_v0 = vmul.f32 %v6963_v16, %v1915_v28  ;;  %v6964_v41 = vmov %v6963_v16 }
 0x461   : > { %6953 = vst [vmem:[#allocation44_spill] sm:$0xff] %v5815_v31  ;;  %v5826_v6 = vld [vmem:[#allocation7 + $0x55] ss:$8 sm:$0x3]  ;;  %v1888_v19 = vadd.f32 %v1886_v47, %v5429_v11  ;;  %v5877_v7 = vpop.permute.xlu0 %2271  ;;  %v6960_v11 = vrot.slane %v5615_v53, %v3963_v17  ;;  %v1996_v15 = vsel %vm6962_vm2, %v5703_v33, %v5325_v44  ;;  %v1926_v46 = vmul.f32 %v6964_v41, %v1916_v24 }
 0x462   : > { %6954 = vst [vmem:[#allocation46_spill] sm:$0xff] %v5826_v6  ;;  %v5839_v58 = vld [vmem:[#allocation7 + $0x56] ss:$8 sm:$0x3]  ;;  %6958 = vst [vmem:[#allocation48_spill] sm:$0xff] %v5877_v7  ;;  %v1860_v48 = vmul.f32 %v6959_v43, %v1847_v38  ;;  %v2524_v14 = vstv %s5828_s4  ;;  %v6967_v44 = vrot.slane %v5639_v59, %v3417_v36  ;;  %v6968_v41 = vrot.slane %v5639_v59, %v3963_v17 }
 0x463   : > { %6957 = vst [vmem:[#allocation37_spill] sm:$0xff] %v5839_v58  ;;  %v5865_v12 = vld [vmem:[#allocation7 + $0x57] ss:$8 sm:$0x3]  ;;  %v1861_v47 = vmul.f32 %v6960_v11, %v1848_v40  ;;  %v6965_v40 = vstv %s5597_s18  ;;  %v6969_v24 = vstv %s5619_s1  ;;  %v1927_v59 = vadd.f32 %v1925_v0, %v5433_v55  ;;  %s3150_s18 = smov [#allocation10]  }
 0x464   : > { %v5834_v60 = vpop.permute.xlu1 %2113  ;;  %v5900_v43 = vld [vmem:[#allocation7 + $0x60] ss:$8 sm:$0x3]  ;;  %v1965_v11 = vmul.f32 %v6965_v40, %v1955_v8  ;;  %v6966_v6 = vmov %v6965_v40  ;;  %v2497_v58 = vrot.slane %v5865_v12, %v3963_v17  ;;  %v1900_v33 = vmul.f32 %v6967_v44, %v1887_v37  ;;  %s3025_s28 = sshll.u32 %s3150_s18, 4  ;;  %s3026_s28 = int_to_ptr.vmem [resolvable:$false] %s3025_s28 }
 0x465   : > { %v1966_v31 = vmul.f32 %v6966_v6, %v1956_v50  ;;  %v1901_v28 = vmul.f32 %v6968_v41, %v1888_v19  ;;  %v2005_v16 = vmul.f32 %v6969_v24, %v1995_v34  ;;  %v6970_v53 = vmov %v6969_v24  ;;  %s3027_s1 = scalar_lea.vmem %s3026_s28, 256  ;;  %p3028_p1 = scmp.lt.s32.totalorder %s6218_s21, %s3026_s28 }
 0x466   : > { %v2006_v38 = vmul.f32 %v6970_v53, %v1996_v15  ;;  %v1862_v8 = vadd.f32 %v1860_v48, %v5318_v27  ;;  %v1863_v6 = vadd.f32 %v1861_v47, %v5321_v32  ;;  %v2533_v50 = vrot.slane %v5900_v43, %v3417_v36  ;;  %v5935_v32 = vpop.permute.xlu0 %2311  ;;  %p3029_p6 = scmp.lt.s32.totalorder %s3027_s1, %s3021_s25 }
 0x467   : > { %v2537_v37 = vrot.slane %v5900_v43, %v3963_v17  ;;  %v1928_v19 = vadd.f32 %v1926_v46, %v5437_v56  ;;  %vm6971_vm3 = vcmp.lt.s32.totalorder %v3976_v25, 98  ;;  %v1967_v48 = vadd.f32 %v1965_v11, %v5445_v63 }
 0x468   : > { %v2154_v49 = vpop.permute.xlu1 %2153  ;;  %v2035_v34 = vsel %vm6971_vm3, %v5360_v1, %v5747_v18  ;;  %vm6972_vm4 = vmmov %vm6971_vm3  ;;  %v1968_v55 = vadd.f32 %v1966_v31, %v5449_v26  ;;  %v2075_v56 = vsel %vm2068_vm7, %v5441_v39, %v5786_v62  ;;  %v2076_v46 = vsel %vm2068_vm7, %v5786_v62, %v5441_v39  ;;  %p3030_p8 = por %p3029_p6, %p3028_p1 }
 0x469   : > { %v2036_v27 = vsel %vm6972_vm4, %v5747_v18, %v5360_v1  ;;  %v5948_v0 = vadd.f32 %v1900_v33, %v5352_v5  ;;  %v1903_v1 = vadd.f32 %v1901_v28, %v5354_v4  ;;  %v2007_v18 = vadd.f32 %v2005_v16, %v5459_v54 }
 0x46a   : > { %v2008_v63 = vadd.f32 %v2006_v38, %v5463_v22  ;;  %v6973_v31 = vstv %s5621_s13  ;;  %v2115_v39 = vsel %vm2108_vm8, %v5539_v13, %v5834_v60  ;;  %v2116_v5 = vsel %vm2108_vm8, %v5834_v60, %v5539_v13  ;;  %v5987_v16 = vpop.permute.xlu0 %2351  ;;  %p3031_p13 = pnand %p3030_p8, %p3024_p10 }
 0x46b   : > { %v2045_v47 = vmul.f32 %v6973_v31, %v2035_v34  ;;  %v6974_v15 = vmov %v6973_v31  ;;  %v6975_v4 = vstv %s5641_s16  ;;  %v2155_v38 = vsel %vm2148_vm9, %v5659_v29, %v2154_v49 }
 0x46c   : > { %v2194_v7 = vpop.permute.xlu1 %2193  ;;  %v2046_v53 = vmul.f32 %v6974_v15, %v2036_v27  ;;  %v2085_v54 = vmul.f32 %v6975_v4, %v2075_v56  ;;  %v6976_v62 = vmov %v6975_v4  ;;  %v2156_v40 = vsel %vm2148_vm9, %v2154_v49, %v5659_v29 }
 0x46d   : > { %v2086_v22 = vmul.f32 %v6976_v62, %v2076_v46  ;;  %v6977_v11 = vrot.slane %v5661_v52, %v3417_v36  ;;  %v6978_v13 = vrot.slane %v5661_v52, %v3963_v17  ;;  %v6979_v33 = vrot.slane %v5681_v21, %v3417_v36 }
 0x46e   : > { %v6980_v28 = vrot.slane %v5681_v21, %v3963_v17  ;;  %v6981_v34 = vstv %s5663_s0  ;;  %v2195_v52 = vsel %vm2188_vm10, %v5739_v10, %v2194_v7  ;;  %v6983_v21 = vrot.slane %v5701_v51, %v3417_v36 }
 0x46f   : > { %v1940_v44 = vmul.f32 %v6977_v11, %v1927_v59  ;;  %v1941_v60 = vmul.f32 %v6978_v13, %v1928_v19  ;;  %v1980_v41 = vmul.f32 %v6979_v33, %v1967_v48  ;;  %v2125_v29 = vmul.f32 %v6981_v34, %v2115_v39 }
 0x470   : > { %v2234_v26 = vpop.permute.xlu1 %2233  ;;  %v1981_v24 = vmul.f32 %v6980_v28, %v1968_v55  ;;  %v6982_v49 = vmov %v6981_v34  ;;  %v2196_v19 = vsel %vm2188_vm10, %v2194_v7, %v5739_v10  ;;  %v2020_v48 = vmul.f32 %v6983_v21, %v2007_v18 }
 0x471   : > { %v2126_v59 = vmul.f32 %v6982_v49, %v2116_v5  ;;  %v6984_v55 = vrot.slane %v5701_v51, %v3963_v17  ;;  %v6985_v46 = vstv %s5683_s11  ;;  %v2047_v5 = vadd.f32 %v2045_v47, %v5467_v20 }
 0x472   : > { %v2165_v31 = vmul.f32 %v6985_v46, %v2155_v38  ;;  %v6986_v15 = vmov %v6985_v46  ;;  %v2048_v4 = vadd.f32 %v2046_v53, %v5471_v23  ;;  %v2087_v62 = vadd.f32 %v2085_v54, %v5525_v9 }
 0x473   : > { %v2021_v56 = vmul.f32 %v6984_v55, %v2008_v63  ;;  %v2166_v39 = vmul.f32 %v6986_v15, %v2156_v40  ;;  %v2088_v7 = vadd.f32 %v2086_v22, %v5529_v61  ;;  %v1942_v10 = vadd.f32 %v1940_v44, %v5387_v35  ;;  %v6989_v61 = vld [vmem:[#allocation112_spill] sm:$0xff]  ;;  %v6990_v35 = vld [vmem:[#allocation125_spill] sm:$0xff] }
 0x474   : > { %v2274_v27 = vpop.permute.xlu1 %2273  ;;  %v1943_v18 = vadd.f32 %v1941_v60, %v5390_v30  ;;  %v6987_v11 = vstv %s5705_s2  ;;  %v1982_v38 = vadd.f32 %v1980_v41, %v5452_v45  ;;  %v1983_v40 = vadd.f32 %v1981_v24, %v5455_v2  ;;  %v6993_v2 = vld [vmem:[#allocation122_spill] sm:$0xff]  ;;  %v6996_v41 = vld [vmem:[#allocation27_spill] sm:$0xff]  ;;  %v6997_v24 = vld [vmem:[#allocation32_spill] sm:$0xff] }
 0x475   : > { %v2205_v13 = vmul.f32 %v6987_v11, %v2195_v52  ;;  %v6988_v51 = vmov %v6987_v11  ;;  %v2127_v20 = vadd.f32 %v2125_v29, %v5533_v42  ;;  %v2128_v23 = vadd.f32 %v2126_v59, %v5537_v3  ;;  %v6998_v29 = vld [vmem:[#allocation48_spill] sm:$0xff]  ;;  %v6999_v59 = vld [vmem:[#allocation31_spill] sm:$0xff] }
 0x476   : > { %v2206_v63 = vmul.f32 %v6988_v51, %v2196_v19  ;;  %v2022_v9 = vadd.f32 %v2020_v48, %v1862_v8  ;;  %v2023_v53 = vadd.f32 %v2021_v56, %v1863_v6  ;;  %v2167_v54 = vadd.f32 %v2165_v31, %v6989_v61  ;;  %v2392_v6 = vpop.permute.xlu0 %2391  ;;  %v7002_v55 = vld [vmem:[#allocation35_spill] sm:$0xff] }
 0x477   : > { %v2168_v22 = vadd.f32 %v2166_v39, %v6990_v35  ;;  %v6991_v30 = vrot.slane %v5713_v57, %v3417_v36  ;;  %v6992_v45 = vrot.slane %v5713_v57, %v3963_v17  ;;  %v6994_v42 = vrot.slane %v6993_v2, %v3417_v36 }
 0x478   : > { %v2314_v47 = vpop.permute.xlu1 %2313  ;;  %v6995_v3 = vrot.slane %v6993_v2, %v3963_v17  ;;  %v2207_v28 = vadd.f32 %v2205_v13, %v6996_v41  ;;  %v2208_v34 = vadd.f32 %v2206_v63, %v6997_v24  ;;  %v2275_v57 = vsel %vm2268_vm12, %v6998_v29, %v2274_v27 }
 0x479   : > { %v2060_v44 = vmul.f32 %v6991_v30, %v2047_v5  ;;  %v2061_v60 = vmul.f32 %v6992_v45, %v2048_v4  ;;  %v2100_v33 = vmul.f32 %v6994_v42, %v2087_v62  ;;  %v2276_v49 = vsel %vm2268_vm12, %v2274_v27, %v6998_v29  ;;  %v7003_v27 = vld [vmem:[#allocation40_spill] sm:$0xff] }
 0x47a   : > { %v2101_v8 = vmul.f32 %v6995_v3, %v2088_v7  ;;  %v7000_v52 = vrot.slane %v6999_v59, %v3417_v36  ;;  %v7001_v21 = vrot.slane %v6999_v59, %v3963_v17  ;;  %v2235_v56 = vsel %vm2228_vm11, %v7002_v55, %v2234_v26  ;;  %v7016_v59 = vld [vmem:[#allocation28_spill] sm:$0xff] }
 0x47b   : > { %v2236_v46 = vsel %vm2228_vm11, %v2234_v26, %v7002_v55  ;;  %v7004_v15 = vrot.slane %v7003_v27, %v3417_v36  ;;  %v7005_v5 = vrot.slane %v7003_v27, %v3963_v17  ;;  %v2315_v62 = vsel %vm2308_vm13, %v5935_v32, %v2314_v47 }
 0x47c   : > { %v2140_v19 = vmul.f32 %v7000_v52, %v2127_v20  ;;  %v2141_v48 = vmul.f32 %v7001_v21, %v2128_v23  ;;  %v2354_v31 = vpop.permute.xlu1 %2353  ;;  %v2316_v7 = vsel %vm2308_vm13, %v2314_v47, %v5935_v32  ;;  %v2062_v26 = vadd.f32 %v2060_v44, %v5948_v0  ;;  %v7008_v23 = vld [vmem:[#allocation123_spill] sm:$0xff] }
 0x47d   : > { %v2180_v39 = vmul.f32 %v7004_v15, %v2167_v54  ;;  %v2181_v4 = vmul.f32 %v7005_v5, %v2168_v22  ;;  %v2063_v11 = vadd.f32 %v2061_v60, %v1903_v1  ;;  %v7006_v13 = vstv %s5726_s3  ;;  %v2432_v1 = vpop.permute.xlu0 %2431 }
 0x47e   : > { %v2285_v51 = vmul.f32 %v7006_v13, %v2275_v57  ;;  %v7007_v63 = vmov %v7006_v13  ;;  %v7009_v61 = vrot.slane %v7008_v23, %v3417_v36  ;;  %v7010_v35 = vrot.slane %v7008_v23, %v3963_v17  ;;  %v7015_v57 = vld [vmem:[#allocation126_spill] sm:$0xff] }
 0x47f   : > { %v2286_v20 = vmul.f32 %v7007_v63, %v2276_v49  ;;  %v7011_v30 = vstv %s5724_s8  ;;  %v6084_v32 = vadd.f32 %v2100_v33, %v1942_v10  ;;  %v6086_v0 = vadd.f32 %v2101_v8, %v1943_v18 }
 0x480   : > { %v2220_v54 = vmul.f32 %v7009_v61, %v2207_v28  ;;  %v2221_v22 = vmul.f32 %v7010_v35, %v2208_v34  ;;  %v2245_v45 = vmul.f32 %v7011_v30, %v2235_v56  ;;  %v7012_v2 = vmov %v7011_v30  ;;  %v2394_v41 = vpop.permute.xlu1 %2393  ;;  %v7028_v61 = vld [vmem:[#allocation124_spill] sm:$0xff] }
 0x481   : > { %v2246_v42 = vmul.f32 %v7012_v2, %v2236_v46  ;;  %v7013_v47 = vstv %s5737_s15  ;;  %v2142_v24 = vadd.f32 %v2140_v19, %v1982_v38  ;;  %v2143_v28 = vadd.f32 %v2141_v48, %v1983_v40  ;;  %v7017_v40 = vld [vmem:[#allocation113_spill] sm:$0xff]  ;;  %v7019_v19 = vld [vmem:[#allocation34_spill] sm:$0xff] }
 0x482   : > { %v2325_v44 = vmul.f32 %v7013_v47, %v2315_v62  ;;  %v7014_v60 = vmov %v7013_v47  ;;  %v2182_v29 = vadd.f32 %v2180_v39, %v2022_v9  ;;  %v2183_v34 = vadd.f32 %v2181_v4, %v2023_v53  ;;  %v7018_v53 = vld [vmem:[#allocation114_spill] sm:$0xff]  ;;  %v7020_v48 = vld [vmem:[#allocation115_spill] sm:$0xff]  ;;  %v2472_v62 = vpop.permute.xlu0 %2471 }
 0x483   : > { %v2326_v3 = vmul.f32 %v7014_v60, %v2316_v7  ;;  %v2287_v49 = vadd.f32 %v2285_v51, %v7015_v57  ;;  %v2288_v52 = vadd.f32 %v2286_v20, %v7016_v59  ;;  %v2355_v10 = vsel %vm2348_vm14, %v5987_v16, %v2354_v31  ;;  %v7023_v7 = vld [vmem:[#allocation42_spill] sm:$0xff]  ;;  %v7033_v47 = vld [vmem:[#allocation33_spill] sm:$0xff] }
 0x484   : > { %v2356_v18 = vsel %vm2348_vm14, %v2354_v31, %v5987_v16  ;;  %v6100_v33 = vadd.f32 %v2220_v54, %v2062_v26  ;;  %v6102_v38 = vadd.f32 %v2221_v22, %v2063_v11  ;;  %v2247_v9 = vadd.f32 %v2245_v45, %v7017_v40  ;;  %v2434_v46 = vpop.permute.xlu1 %2433  ;;  %v7036_v57 = vld [vmem:[#allocation29_spill] sm:$0xff]  ;;  %v7037_v59 = vld [vmem:[#allocation119_spill] sm:$0xff] }
 0x485   : > { %v2248_v8 = vadd.f32 %v2246_v42, %v7018_v53  ;;  %v2327_v21 = vadd.f32 %v2325_v44, %v7019_v19  ;;  %v2328_v55 = vadd.f32 %v2326_v3, %v7020_v48  ;;  %v2395_v56 = vsel %vm2388_vm15, %v2392_v6, %v2394_v41 }
 0x486   : > { %v2396_v16 = vsel %vm2388_vm15, %v2394_v41, %v2392_v6  ;;  %v7021_v31 = vstv %s5751_s10  ;;  %v2435_v5 = vsel %vm2428_vm0, %v2432_v1, %v2434_v46  ;;  %v2436_v4 = vsel %vm2428_vm0, %v2434_v46, %v2432_v1 }
 0x487   : > { %v2365_v27 = vmul.f32 %v7021_v31, %v2355_v10  ;;  %v7022_v15 = vmov %v7021_v31  ;;  %v7024_v26 = vrot.slane %v7023_v7, %v3417_v36  ;;  %v7025_v13 = vrot.slane %v7023_v7, %v3963_v17  ;;  %v7042_v31 = vld [vmem:[#allocation118_spill] sm:$0xff] }
 0x488   : > { %v2366_v39 = vmul.f32 %v7022_v15, %v2356_v18  ;;  %v7026_v51 = vstv %s5775_s19  ;;  %v7029_v54 = vrot.slane %v7028_v61, %v3417_v36  ;;  %v7030_v22 = vrot.slane %v7028_v61, %v3963_v17  ;;  %v2474_v10 = vpop.permute.xlu1 %2473  ;;  %v7038_v18 = vld [vmem:[#allocation116_spill] sm:$0xff] }
 0x489   : > { %v2300_v11 = vmul.f32 %v7024_v26, %v2287_v49  ;;  %v2301_v6 = vmul.f32 %v7025_v13, %v2288_v52  ;;  %v2445_v63 = vmul.f32 %v7026_v51, %v2435_v5  ;;  %v7027_v20 = vmov %v7026_v51  ;;  %v7043_v5 = vld [vmem:[#allocation36_spill] sm:$0xff]  ;;  %v7047_v13 = vld [vmem:[#allocation120_spill] sm:$0xff]  ;;  %v7048_v51 = vld [vmem:[#allocation30_spill] sm:$0xff] }
 0x48a   : > { %v2446_v23 = vmul.f32 %v7027_v20, %v2436_v4  ;;  %v2260_v35 = vmul.f32 %v7029_v54, %v2247_v9  ;;  %v2261_v30 = vmul.f32 %v7030_v22, %v2248_v8  ;;  %v7031_v45 = vstv %s5773_s20  ;;  %v7039_v9 = vld [vmem:[#allocation117_spill] sm:$0xff] }
 0x48b   : > { %v2405_v2 = vmul.f32 %v7031_v45, %v2395_v56  ;;  %v7032_v42 = vmov %v7031_v45  ;;  %v7034_v44 = vrot.slane %v7033_v47, %v3417_v36  ;;  %v7035_v3 = vrot.slane %v7033_v47, %v3963_v17 }
 0x48c   : > { %v2406_v1 = vmul.f32 %v7032_v42, %v2396_v16  ;;  %v2447_v49 = vadd.f32 %v2445_v63, %v7036_v57  ;;  %v2448_v52 = vadd.f32 %v2446_v23, %v7037_v59  ;;  %v2367_v40 = vadd.f32 %v2365_v27, %v7038_v18  ;;  %v7044_v27 = vld [vmem:[#allocation37_spill] sm:$0xff]  ;;  %v2514_v20 = vpop.permute.xlu1 %2513  ;;  %v7049_v23 = vld [vmem:[#allocation44_spill] sm:$0xff]  ;;  %v7056_v18 = vld [vmem:[#allocation38_spill] sm:$0xff] }
 0x48d   : > { %v2340_v60 = vmul.f32 %v7034_v44, %v2327_v21  ;;  %v2341_v41 = vmul.f32 %v7035_v3, %v2328_v55  ;;  %v2368_v53 = vadd.f32 %v2366_v39, %v7039_v9  ;;  %v2475_v8 = vsel %vm2468_vm6, %v2472_v62, %v2474_v10 }
 0x48e   : > { %v2476_v19 = vsel %vm2468_vm6, %v2474_v10, %v2472_v62  ;;  %v2302_v21 = vadd.f32 %v2300_v11, %v2142_v24  ;;  %v2303_v48 = vadd.f32 %v2301_v6, %v2143_v28  ;;  %v7040_v56 = vstv %s5817_s22  ;;  %v2512_v24 = vpop.permute.xlu0 %2511 }
 0x48f   : > { %v2485_v16 = vmul.f32 %v7040_v56, %v2475_v8  ;;  %v7041_v55 = vmov %v7040_v56  ;;  %v2407_v15 = vadd.f32 %v2405_v2, %v7042_v31  ;;  %v2408_v4 = vadd.f32 %v2406_v1, %v7043_v5 }
 0x490   : > { %v2486_v46 = vmul.f32 %v7041_v55, %v2476_v19  ;;  %v7045_v39 = vrot.slane %v7044_v27, %v3417_v36  ;;  %v7046_v26 = vrot.slane %v7044_v27, %v3963_v17  ;;  %v2342_v28 = vadd.f32 %v2340_v60, %v2182_v29  ;;  %v7053_v60 = vld [vmem:[#allocation46_spill] sm:$0xff] }
 0x491   : > { %v2343_v11 = vadd.f32 %v2341_v41, %v2183_v34  ;;  %v2487_v6 = vadd.f32 %v2485_v16, %v7047_v13  ;;  %v7050_v61 = vrot.slane %v7049_v23, %v3417_v36  ;;  %v7051_v22 = vrot.slane %v7049_v23, %v3963_v17 }
 0x492   : > { %v2460_v7 = vmul.f32 %v7045_v39, %v2447_v49  ;;  %v2461_v62 = vmul.f32 %v7046_v26, %v2448_v52  ;;  %v2488_v63 = vadd.f32 %v2486_v46, %v7048_v51  ;;  %v2515_v2 = vsel %vm2508_vm5, %v2512_v24, %v2514_v20 }
 0x493   : > { %v2380_v54 = vmul.f32 %v7050_v61, %v2367_v40  ;;  %v2381_v45 = vmul.f32 %v7051_v22, %v2368_v53  ;;  %v2516_v29 = vsel %vm2508_vm5, %v2514_v20, %v2512_v24  ;;  %v7052_v34 = vrot.slane %v5865_v12, %v3417_v36 }
 0x494   : > { %v2501_v1 = vmul.f32 %v2497_v58, %v2488_v63  ;;  %v2525_v47 = vmul.f32 %v2524_v14, %v2515_v2  ;;  %v2526_v44 = vmul.f32 %v2524_v14, %v2516_v29  ;;  %v7054_v3 = vrot.slane %v7053_v60, %v3417_v36  ;;  %v7057_v58 = vld [vmem:[#allocation121_spill] sm:$0xff] }
 0x495   : > { %v2500_v42 = vmul.f32 %v7052_v34, %v2487_v6  ;;  %v7055_v25 = vrot.slane %v7053_v60, %v3963_v17  ;;  %v2462_v49 = vadd.f32 %v2460_v7, %v2302_v21  ;;  %v2463_v59 = vadd.f32 %v2461_v62, %v2303_v48  ;;  %v7061_v62 = vld [vmem:[#allocation25_spill] sm:$0xff] }
 0x496   : > { %v2420_v41 = vmul.f32 %v7054_v3, %v2407_v15  ;;  %v2503_v10 = vadd.f32 %v2501_v1, %v2343_v11  ;;  %v2527_v12 = vadd.f32 %v2525_v47, %v7056_v18  ;;  %v2528_v40 = vadd.f32 %v2526_v44, %v7057_v58 }
 0x497   : > { %v2421_v57 = vmul.f32 %v7055_v25, %v2408_v4  ;;  %v2502_v52 = vadd.f32 %v2500_v42, %v2342_v28  ;;  %v2262_v9 = vadd.f32 %v2260_v35, %v6084_v32  ;;  %v2263_v14 = vadd.f32 %v2261_v30, %v6086_v0  ;;  %v7063_v28 = vld [vmem:[#allocation26_spill] sm:$0xff] }
 0x498   : > { %v2382_v53 = vadd.f32 %v2380_v54, %v6100_v33  ;;  %v2383_v8 = vadd.f32 %v2381_v45, %v6102_v38  ;;  %v2547_v56 = vadd.f32 %v2503_v10, %v2463_v59  ;;  %v2540_v21 = vmul.f32 %v2533_v50, %v2527_v12 }
 0x499   : > { %v2546_v19 = vadd.f32 %v2502_v52, %v2462_v49  ;;  %v2541_v48 = vmul.f32 %v2537_v37, %v2528_v40  ;;  %v2422_v16 = vadd.f32 %v2420_v41, %v2262_v9  ;;  %v2423_v55 = vadd.f32 %v2421_v57, %v2263_v14 }
 0x49a   : > { %v2542_v46 = vadd.f32 %v2540_v21, %v2382_v53  ;;  %v2551_v30 = vstv %s2550_s6 }
 0x49b   : > { %v2543_v32 = vadd.f32 %v2541_v48, %v2383_v8 }
 0x49c   : > { %v2544_v35 = vadd.f32 %v2542_v46, %v2422_v16 }
 0x49d   : > { %v2545_v0 = vadd.f32 %v2543_v32, %v2423_v55 }
 0x49e   : > { %v2548_v33 = vadd.f32 %v2546_v19, %v2544_v35 }
 0x49f   : > { %v2549_v31 = vadd.f32 %v2547_v56, %v2545_v0 }
 0x4a0   : > { %v2552_v38 = vadd.f32 %v2551_v30, %v2548_v33 }
 0x4a1   : > { %v2553_v15 = vadd.f32 %v2551_v30, %v2549_v31 }
 0x4a2   : > { %v2801_v5 = vmul.f32 -1.442695, %v2552_v38 }
 0x4a3   : > { %v2802_v4 = vmul.f32 -1.442695, %v2553_v15 }
 0x4a4   : > { %2940 = vpow2.f32 %v2801_v5 }
 0x4a5   : > { %2942 = vpow2.f32 %v2802_v4 }
 0x4ae   : > { %v2941_v50 = vpop.eup %2940 }
 0x4af   : > { %v2943_v17 = vpop.eup %2942  ;;  %v2560_v43 = vadd.f32 1.0, %v2941_v50 }
 0x4b0   : > { %v2561_v37 = vadd.f32 1.0, %v2943_v17 }
 0x4b1   : > { %2944 = vrcp.f32 %v2560_v43 }
 0x4b2   : > { %2946 = vrcp.f32 %v2561_v37 }
 0x4bb   : > { %v2945_v27 = vpop.eup %2944 }
 0x4bc   : > { %v2947_v39 = vpop.eup %2946  ;;  %v2569_v7 = vrot.slane %v2945_v27, %v3417_v36 }
 0x4bd   : > { %v2573_v26 = vrot.slane %v2947_v39, %v3417_v36 }
 0x4be   : > { %v2574_v24 = vmul.f32 %v2569_v7, %v7061_v62 }
 0x4bf   : > { %v2575_v11 = vmul.f32 %v2573_v26, %v7063_v28 }
 0x4c1   : > { %v2578_v13 = vcombine.low %v2574_v24, %v2575_v11 }
 0x4c3   : > { %2580 = vst [vmem:[%s459_s30] sm:$0xff] %v2578_v13 }
 0x4c4   : > { %3034 = shalt.err (!%p3031_p13)
}
 0x4c5   : > { %s3035_s13 = scalar_lea.hbm %s6216_s23, 128  ;;  %s3039_s11 = scalar_lea.hbm %s7065_s27, 256 }
 0x4c6   : > { %p3036_p4 = scmp.ne.s32.totalorder %s6216_s23, %s3035_s13  ;;  %p3040_p0 = scmp.lt.u32.totalorder %s6216_s23, %s7065_s27 }
 0x4c7   : > { %p3041_p3 = scmp.lt.u32.totalorder %s3039_s11, %s3035_s13  ;;  %p3043_p9 = scmp.lt.u32.totalorder %s3035_s13, %s6216_s23 }
 0x4c8   : > { %p3037_p2 = pnand %p3036_p4, %p3320_p7 }
 0x4c9   : > { %p3042_p5 = por %p3041_p3, %p3040_p0 }
 0x4ca   : > { %p3038_p11 = pneg %p3037_p2 }
 0x4cb   : > { %p3044_p12 = por %p3043_p9, %p3042_p5 }
 0x4cd   : > { %p3045_p10 = pnand %p3044_p12, %p3038_p11 }
 0x4cf   : > { %3048 = shalt.err (!%p3045_p10)
}
 0x4d0   : > { %2820 = dma.vmem_to_hbm [thread:$0]  (%p3320_p7), %s6218_s21, 128, %s6216_s23, %s2582_s12  }
 0x4d1 PF: > { %s7066_s3 = sld [smem:[#allocation15_spill]]  ;;  %s7067_s15 = sld [smem:[#allocation20_spill]] }
 0x4d2   : > { %s7068_s10 = sld [smem:[#allocation18_spill]] }
 0x4d7   : > { %s2608_s20 = sand.u32 1, %s7066_s3   ;;  %p7069_p1 = scmp.ne.s32.totalorder %s7067_s15, 0 }
 0x4d8   : > { %p7070_p6 = scmp.ge.s32.totalorder %s7068_s10, 2  ;;  %s2609_s19 = scalar_lea.sflag [#allocation5], %s2608_s20 }
 0x4da   : > { %p2834_p8 = pnand %p7070_p6, %p7069_p1 }
 0x4dc   : > { %3078 = dma.done.wait (!%p2834_p8), %s2609_s19, 128  }
 0x4dd   : > { %3080 = vsyncadd (!%p2834_p8), %s2609_s19, 4294967168  ;;  %s7071_s26 = sld [smem:[#allocation21_spill]]  ;;  %s7072_s23 = sld [smem:[#allocation16_spill]] }
 0x4de   : > { %s7073_s24 = sld [smem:[#allocation17_spill]]  ;;  %s7074_s25 = sld [smem:[#allocation23_spill]] }
 0x4e3   : > { %p28_p13 = scmp.ge.s32.totalorder %s7071_s26, 4  }
 0x4e5   :  { %30 = sbr.rel (!%p28_p13) target bundleno = 21 (0x15), region = 170 }
 0x4ec   :  { %2614 = vsyncpa [#allocation4], 1 }
 0x4ed   :  { %2616 = vsyncpa [#allocation4 + $0x1], 1 }
 0x4ee   :  { %2617 = vsyncpa [#allocation8], 1 }
 0x4ef   :  { %2618 = vsyncpa [#allocation5], 1 }
 0x4f0   :  { %2620 = vsyncpa [#allocation5 + $0x1], 1 }
 0x4f1   :  { %2621 = vsyncpa [#allocation6], 1 }
 0x4f2   :  { %2623 = vsyncpa [#allocation6 + $0x1], 1 }

</bundles_post_ra>
